<compile_context>
chip_gen: v7x
topology: tpu7x:2x2x1
jax: 0.10.0
libtpu: 0.0.40
codegen_flags: <defaults>
</compile_context>

<pallas_src>
import functools

import jax
import jax.numpy as jnp
from jax import lax
from jax.experimental import pallas as pl
from jax.experimental.pallas import tpu as pltpu

CONV_LAYERS = 6
CONV_CHANS = (32, 32, 64, 64, 128, 128)
K = 3
STRIDE = 2
PAD = 1
GRU_UNITS = 128          # ReferenceEncoderDynamic default
E_DIM = 128              # ResidualVQ2 default
NUM_VQ = 2               # ResidualVQ2 default
CODEBOOK_SIZE = 16       # ResidualVQ2 default
BETA = 0.2
BN_EPS = 1e-5

C_MAX = max(CONV_CHANS)  # 128
NUM_ENC = 3


# --------------------------- fused Pallas kernel -----------------------------

def _srvq3_kernel(*refs, batch, seq):
    """One grid step == one encoder: 6x(Conv1d+BN+ReLU) + GRU + 2-stage residual VQ."""
    x_ref = refs[0]
    w_refs = refs[1:1 + CONV_LAYERS]
    (g_ref, b_ref, wih_ref, whh_ref, bih_ref, bhh_ref,
     cb_ref, cbsq_ref, emap_ref,
     q_ref, loss_ref, logits_ref, perp_ref,
     scr_a, scr_b) = refs[1 + CONV_LAYERS:]
    scratch = (scr_a, scr_b)

    def conv_taps(src_ref, t, cin):
        """Strided-sublane tap reads for a stride-2, k=3, pad=1 Conv1d.

        src_ref rows are batch-major / time-minor (row = b*t + s).  Returns the
        three taps as (B*t/2, cin) f32 arrays ordered like the output rows."""
        t_next = t // 2
        rows = batch * t_next
        cent = src_ref[pl.ds(0, rows, stride=2), :cin]            # x[b, 2v]
        plus = src_ref[pl.ds(1, rows, stride=2), :cin]            # x[b, 2v+1]
        # x[b, 2v-1] == "plus" shifted down one output row; zero at v==0 (left pad,
        # and kills the cross-batch leak for b > 0).
        minus = jnp.concatenate(
            [jnp.zeros((1, cin), jnp.float32), plus[:-1, :]], axis=0)
        keep = (lax.broadcasted_iota(jnp.int32, (rows, 1), 0) % t_next) != 0
        minus = minus * keep.astype(jnp.float32)
        return minus, cent, plus, rows, t_next

    def bn_relu(acc, layer, cout, rows):
        """Training-mode BatchNorm1d (biased batch stats, single pass) + ReLU."""
        inv_n = 1.0 / rows
        mean = jnp.sum(acc, axis=0, keepdims=True) * inv_n
        var = jnp.maximum(
            jnp.sum(acc * acc, axis=0, keepdims=True) * inv_n - mean * mean, 0.0)
        gamma = g_ref[layer:layer + 1, :cout]
        beta = b_ref[layer:layer + 1, :cout]
        scale = lax.rsqrt(var + BN_EPS) * gamma
        return jnp.maximum((acc - mean) * scale + beta, 0.0)

    # ---------------- layer 0 (cin = 1): VPU broadcast "matmul" -----------------
    t = seq
    m0, c0, p0, rows, t_next = conv_taps(x_ref, t, 1)
    w0 = w_refs[0][...].astype(jnp.float32)                       # (3, cout0)
    acc = m0 * w0[0:1, :] + c0 * w0[1:2, :] + p0 * w0[2:3, :]
    cout = CONV_CHANS[0]
    scratch[0][:rows, :cout] = bn_relu(acc, 0, cout, rows)
    t, cin, src = t_next, cout, 0

    # ---------------- layers 1..5: strided taps + bf16 MXU matmuls --------------
    for l in range(1, CONV_LAYERS):
        cout = CONV_CHANS[l]
        mt, ct, pt, rows, t_next = conv_taps(scratch[src], t, cin)
        wl = w_refs[l][...]                                       # (3*cin, cout) bf16
        acc = jnp.dot(mt.astype(jnp.bfloat16), wl[:cin, :],
                      preferred_element_type=jnp.float32)
        acc = acc + jnp.dot(ct.astype(jnp.bfloat16), wl[cin:2 * cin, :],
                            preferred_element_type=jnp.float32)
        acc = acc + jnp.dot(pt.astype(jnp.bfloat16), wl[2 * cin:, :],
                            preferred_element_type=jnp.float32)
        dst = 1 - src
        scratch[dst][:rows, :cout] = bn_relu(acc, l, cout, rows)
        t, cin, src = t_next, cout, dst

    # ---------------- GRU (PyTorch gate layout r|z|n), h0 = 0 -------------------
    H = GRU_UNITS
    wih = wih_ref[...]                                            # (C, 3H) bf16
    whh = whh_ref[...]                                            # (H, 3H) bf16
    bih = bih_ref[...]                                            # (1, 3H) f32
    bhh = bhh_ref[...]                                            # (1, 3H) f32
    h = jnp.zeros((batch, H), jnp.float32)
    for u in range(t):                                            # tiny, fully unrolled
        xu = scratch[src][pl.ds(u, batch, stride=t), :cin]        # rows (b, u), b=0..B-1
        gi = jnp.dot(xu.astype(jnp.bfloat16), wih,
                     preferred_element_type=jnp.float32) + bih
        gh = jnp.dot(h.astype(jnp.bfloat16), whh,
                     preferred_element_type=jnp.float32) + bhh
        r = jax.nn.sigmoid(gi[:, :H] + gh[:, :H])
        zg = jax.nn.sigmoid(gi[:, H:2 * H] + gh[:, H:2 * H])
        ng = jnp.tanh(gi[:, 2 * H:] + r * gh[:, 2 * H:])
        h = (1.0 - zg) * ng + zg * h

    # ---------------- 2-stage residual VQ (distances / argmin kept f32) ---------
    S, D = CODEBOOK_SIZE, E_DIM
    residual = h
    total = jnp.zeros((1, 1), jnp.float32)
    iota_s = lax.broadcasted_iota(jnp.int32, (batch, S), 1)
    emap = emap_ref[...]                                          # (1, S)
    for l in range(NUM_VQ):
        cb = cb_ref[l]                                            # (S, D)
        cross = lax.dot_general(residual, cb, (((1,), (1,)), ((), ())),
                                preferred_element_type=jnp.float32)   # (B, S)
        rsq = jnp.sum(residual * residual, axis=1, keepdims=True)
        d = rsq - 2.0 * cross + cbsq_ref[l]                       # (B, S)
        min_d = jnp.min(d, axis=1, keepdims=True)
        idx = jnp.min(jnp.where(d <= min_d, iota_s, S), axis=1, keepdims=True)
        onehot = (iota_s == idx).astype(jnp.float32)              # (B, S)
        quantized = jnp.dot(onehot, cb, preferred_element_type=jnp.float32)
        diff = residual - quantized
        # mean((r.detach()-q)^2) + beta*mean((r-q.detach())^2) == (1+beta)*MSE fwd
        sq = jnp.sum(diff * diff, axis=1, keepdims=True)
        total = total + (1.0 + BETA) * jnp.sum(sq, axis=0, keepdims=True) / (batch * D)
        residual = diff

        e_mean = jnp.sum(onehot, axis=0, keepdims=True) / batch
        ent = -jnp.sum(e_mean * jnp.log(e_mean + 1e-10), axis=1, keepdims=True)
        perp_ref[:, l:l + 1] = jnp.exp(ent)

        q_ref[:, l * D:(l + 1) * D] = quantized
        if l == 0:
            logits_ref[...] = jnp.sum(onehot * emap, axis=1,
                                      keepdims=True).astype(jnp.int32)
    loss_ref[...] = total


# --------------------------- wrapper ------------------------------------------

def fused_srvq3(x, enc, rvq, batch, seq):
    """x: (3, B*T, 1) -> (q (3,B,2D), loss (3,1,1), logits (3,B,1) i32, perp (3,1,2))."""
    assert seq % (2 ** CONV_LAYERS) == 0, "seq must be divisible by 2**conv_layers"
    kernel = functools.partial(_srvq3_kernel, batch=batch, seq=seq)

    in_specs = [pl.BlockSpec((None, batch * seq, 1), lambda e: (e, 0, 0))]
    cin = 1
    for l in range(CONV_LAYERS):                      # exact per-layer conv weights
        cout = CONV_CHANS[l]
        in_specs.append(pl.BlockSpec((None, K * cin, cout), lambda e: (e, 0, 0)))
        cin = cout
    in_specs += [
        pl.BlockSpec((None, CONV_LAYERS, C_MAX), lambda e: (e, 0, 0)),      # bn gamma
        pl.BlockSpec((None, CONV_LAYERS, C_MAX), lambda e: (e, 0, 0)),      # bn beta
        pl.BlockSpec((None, CONV_CHANS[-1], 3 * GRU_UNITS), lambda e: (e, 0, 0)),
        pl.BlockSpec((None, GRU_UNITS, 3 * GRU_UNITS), lambda e: (e, 0, 0)),
        pl.BlockSpec((None, 1, 3 * GRU_UNITS), lambda e: (e, 0, 0)),
        pl.BlockSpec((None, 1, 3 * GRU_UNITS), lambda e: (e, 0, 0)),
        pl.BlockSpec((None, NUM_VQ, CODEBOOK_SIZE, E_DIM), lambda e: (e, 0, 0, 0)),
        pl.BlockSpec((None, NUM_VQ, 1, CODEBOOK_SIZE), lambda e: (e, 0, 0, 0)),
        pl.BlockSpec((None, 1, CODEBOOK_SIZE), lambda e: (e, 0, 0)),
    ]
    out_shapes = (
        jax.ShapeDtypeStruct((NUM_ENC, batch, NUM_VQ * E_DIM), jnp.float32),
        jax.ShapeDtypeStruct((NUM_ENC, 1, 1), jnp.float32),
        jax.ShapeDtypeStruct((NUM_ENC, batch, 1), jnp.int32),
        jax.ShapeDtypeStruct((NUM_ENC, 1, NUM_VQ), jnp.float32),
    )
    out_specs = (
        pl.BlockSpec((None, batch, NUM_VQ * E_DIM), lambda e: (e, 0, 0)),
        pl.BlockSpec((None, 1, 1), lambda e: (e, 0, 0)),
        pl.BlockSpec((None, batch, 1), lambda e: (e, 0, 0)),
        pl.BlockSpec((None, 1, NUM_VQ), lambda e: (e, 0, 0)),
    )
    grid_spec = pltpu.PrefetchScalarGridSpec(
        num_scalar_prefetch=0,
        grid=(NUM_ENC,),
        in_specs=in_specs,
        out_specs=out_specs,
        scratch_shapes=[pltpu.VMEM((batch * seq // 2, C_MAX), jnp.float32),
                        pltpu.VMEM((batch * seq // 2, C_MAX), jnp.float32)],
    )
    conv_ws = [enc[f"conv_w{l}"] for l in range(CONV_LAYERS)]
    return pl.pallas_call(
        kernel,
        out_shape=out_shapes,
        grid_spec=grid_spec,
        compiler_params=pltpu.CompilerParams(dimension_semantics=("parallel",)),
    )(x, *conv_ws, enc["bn_gamma"], enc["bn_beta"],
      enc["gru_wih_t"], enc["gru_whh_t"], enc["gru_bih"], enc["gru_bhh"],
      rvq["codebooks"], rvq["cb_sq"], rvq["emotion_map_f"])


@jax.jit
def srvq3_forward(speech, p_targets, d_targets, e_targets, params):
    del speech  # unused by the reference forward
    B, T = p_targets.shape
    x = jnp.stack([p_targets, d_targets, e_targets], axis=0).astype(jnp.float32)
    x = x.reshape(NUM_ENC, B * T, 1)                  # batch-major, time-minor rows

    q_all, loss_all, logits_all, _perp = fused_srvq3(
        x, params["enc"], params["rvq"], B, T)

    # concat per-encoder quantized codes along feature dim (pitch|duration|energy)
    quantized = jnp.transpose(q_all, (1, 0, 2)).reshape(B, NUM_ENC * NUM_VQ * E_DIM)
    commit_loss = jnp.sum(loss_all)
    indices_1 = logits_all[0, :, 0]                   # emotion-map lookup (RVQp)
    codebooks = [q_all[0], q_all[1], q_all[2]]
    return quantized, commit_loss, indices_1, codebooks


# --------------------------- deterministic params ------------------------------

def init_encoder_params(key):
    keys = jax.random.split(key, CONV_LAYERS * 3 + 4)
    p = {}
    gammas, betas = [], []
    in_ch = 1
    for i in range(CONV_LAYERS):
        out_ch = CONV_CHANS[i]
        w = 0.1 * jax.random.normal(keys[3 * i], (out_ch, in_ch, K), jnp.float32)
        # (C_out, C_in, K) -> rows ordered (tap j, in-channel c): row = j*cin + c
        p[f"conv_w{i}"] = jnp.transpose(w, (2, 1, 0)).reshape(
            K * in_ch, out_ch).astype(jnp.bfloat16)
        g = jnp.zeros((C_MAX,), jnp.float32).at[:out_ch].set(
            1.0 + 0.1 * jax.random.normal(keys[3 * i + 1], (out_ch,), jnp.float32))
        b = jnp.zeros((C_MAX,), jnp.float32).at[:out_ch].set(
            0.1 * jax.random.normal(keys[3 * i + 2], (out_ch,), jnp.float32))
        gammas.append(g)
        betas.append(b)
        in_ch = out_ch
    p["bn_gamma"] = jnp.stack(gammas)
    p["bn_beta"] = jnp.stack(betas)

    kb = CONV_LAYERS * 3
    H, C = GRU_UNITS, CONV_CHANS[-1]
    wih = 0.1 * jax.random.normal(keys[kb + 0], (3 * H, C), jnp.float32)  # torch layout
    whh = 0.1 * jax.random.normal(keys[kb + 1], (3 * H, H), jnp.float32)
    p["gru_wih_t"] = wih.T.astype(jnp.bfloat16)       # (C, 3H)
    p["gru_whh_t"] = whh.T.astype(jnp.bfloat16)       # (H, 3H)
    p["gru_bih"] = 0.1 * jax.random.normal(keys[kb + 2], (1, 3 * H), jnp.float32)
    p["gru_bhh"] = 0.1 * jax.random.normal(keys[kb + 3], (1, 3 * H), jnp.float32)
    return p


def init_rvq_params(key):
    k1, k2 = jax.random.split(key)
    codebooks = jax.random.normal(k1, (NUM_VQ, CODEBOOK_SIZE, E_DIM), jnp.float32)
    cb_sq = jnp.sum(codebooks * codebooks, axis=-1)[:, None, :]   # (NUM_VQ, 1, S)
    emap = jax.random.randint(k2, (CODEBOOK_SIZE,), 0, 7)
    return {"codebooks": codebooks, "cb_sq": cb_sq,
            "emotion_map_f": emap.astype(jnp.float32)[None, :]}


def init_params(key):
    ks = jax.random.split(key, 6)
    encs = [init_encoder_params(k) for k in ks[:3]]   # pitch, duration, energy
    rvqs = [init_rvq_params(k) for k in ks[3:]]
    enc = {k: jnp.stack([e[k] for e in encs]) for k in encs[0]}
    rvq = {k: jnp.stack([r[k] for r in rvqs]) for k in rvqs[0]}
    return {"enc": enc, "rvq": rvq}


if __name__ == "__main__":
    key = jax.random.PRNGKey(0)
    ks = jax.random.split(key, 5)
    B, SEQ = 2, 128
    speech = jax.random.normal(ks[0], (B, 80), jnp.float32)       # unused by forward
    p_targets = jax.random.normal(ks[1], (B, SEQ), jnp.float32)
    d_targets = jax.random.normal(ks[2], (B, SEQ), jnp.float32)
    e_targets = jax.random.normal(ks[3], (B, SEQ), jnp.float32)
    params = init_params(ks[4])

    out = srvq3_forward(speech, p_targets, d_targets, e_targets, params)
    out = jax.block_until_ready(out)

    quantized, commit_loss, indices_1, codebooks = out
    assert quantized.shape == (B, NUM_ENC * NUM_VQ * E_DIM)
    assert commit_loss.shape == ()
    assert indices_1.shape == (B,)
    assert len(codebooks) == 3 and codebooks[0].shape == (B, NUM_VQ * E_DIM)
    print("KERNEL_OK")
</pallas_src>

<mosaic_0001>
module attributes {stable_mosaic.version = 11 : i64} {
  func.func @_srvq3_kernel(%arg0: i32, %arg1: memref<1x256x1xf32, #tpu.memory_space<vmem>>, %arg2: memref<1x3x32xbf16, #tpu.memory_space<vmem>>, %arg3: memref<1x96x32xbf16, #tpu.memory_space<vmem>>, %arg4: memref<1x96x64xbf16, #tpu.memory_space<vmem>>, %arg5: memref<1x192x64xbf16, #tpu.memory_space<vmem>>, %arg6: memref<1x192x128xbf16, #tpu.memory_space<vmem>>, %arg7: memref<1x384x128xbf16, #tpu.memory_space<vmem>>, %arg8: memref<1x6x128xf32, #tpu.memory_space<vmem>>, %arg9: memref<1x6x128xf32, #tpu.memory_space<vmem>>, %arg10: memref<1x128x384xbf16, #tpu.memory_space<vmem>>, %arg11: memref<1x128x384xbf16, #tpu.memory_space<vmem>>, %arg12: memref<1x1x384xf32, #tpu.memory_space<vmem>>, %arg13: memref<1x1x384xf32, #tpu.memory_space<vmem>>, %arg14: memref<1x2x16x128xf32, #tpu.memory_space<vmem>>, %arg15: memref<1x2x1x16xf32, #tpu.memory_space<vmem>>, %arg16: memref<1x1x16xf32, #tpu.memory_space<vmem>>, %arg17: memref<1x2x256xf32, #tpu.memory_space<vmem>>, %arg18: memref<1x1x1xf32, #tpu.memory_space<vmem>>, %arg19: memref<1x2x1xi32, #tpu.memory_space<vmem>>, %arg20: memref<1x1x2xf32, #tpu.memory_space<vmem>>, %arg21: memref<128x128xf32, #tpu.memory_space<vmem>>, %arg22: memref<128x128xf32, #tpu.memory_space<vmem>>) attributes {dimension_semantics = [#tpu.dimension_semantics<parallel>], iteration_bounds = array<i64: 3>, scalar_prefetch = 0 : i64, scratch_operands = 2 : i64, tpu.core_type = #tpu.core_type<tc>, window_params = [{transform_indices = @transform_0, window_bounds = array<i64: 1, 256, 1>}, {transform_indices = @transform_1, window_bounds = array<i64: 1, 3, 32>}, {transform_indices = @transform_2, window_bounds = array<i64: 1, 96, 32>}, {transform_indices = @transform_3, window_bounds = array<i64: 1, 96, 64>}, {transform_indices = @transform_4, window_bounds = array<i64: 1, 192, 64>}, {transform_indices = @transform_5, window_bounds = array<i64: 1, 192, 128>}, {transform_indices = @transform_6, window_bounds = array<i64: 1, 384, 128>}, {transform_indices = @transform_7, window_bounds = array<i64: 1, 6, 128>}, {transform_indices = @transform_8, window_bounds = array<i64: 1, 6, 128>}, {transform_indices = @transform_9, window_bounds = array<i64: 1, 128, 384>}, {transform_indices = @transform_10, window_bounds = array<i64: 1, 128, 384>}, {transform_indices = @transform_11, window_bounds = array<i64: 1, 1, 384>}, {transform_indices = @transform_12, window_bounds = array<i64: 1, 1, 384>}, {transform_indices = @transform_13, window_bounds = array<i64: 1, 2, 16, 128>}, {transform_indices = @transform_14, window_bounds = array<i64: 1, 2, 1, 16>}, {transform_indices = @transform_15, window_bounds = array<i64: 1, 1, 16>}, {transform_indices = @transform_16, window_bounds = array<i64: 1, 2, 256>}, {transform_indices = @transform_17, window_bounds = array<i64: 1, 1, 1>}, {transform_indices = @transform_18, window_bounds = array<i64: 1, 2, 1>}, {transform_indices = @transform_19, window_bounds = array<i64: 1, 1, 2>}]} {
    %c0 = arith.constant 0 : index
    %c0_0 = arith.constant 0 : index
    %c0_1 = arith.constant 0 : index
    %0 = tpu.strided_load %arg1[%c0, %c0_0, %c0_1] {strides = array<i32: 1, 2, 1>} : memref<1x256x1xf32, #tpu.memory_space<vmem>>, vector<1x128x1xf32>
    %1 = vector.shape_cast %0 : vector<1x128x1xf32> to vector<128x1xf32>
    %c0_2 = arith.constant 0 : index
    %c1 = arith.constant 1 : index
    %c0_3 = arith.constant 0 : index
    %2 = tpu.strided_load %arg1[%c0_2, %c1, %c0_3] {strides = array<i32: 1, 2, 1>} : memref<1x256x1xf32, #tpu.memory_space<vmem>>, vector<1x128x1xf32>
    %3 = vector.shape_cast %2 : vector<1x128x1xf32> to vector<128x1xf32>
    %cst = arith.constant 0.000000e+00 : f32
    %4 = vector.broadcast %cst : f32 to vector<1x1xf32>
    %5 = vector.extract_strided_slice %3 {offsets = [0, 0], sizes = [127, 1], strides = [1, 1]} : vector<128x1xf32> to vector<127x1xf32>
    %6 = tpu.concatenate %4, %5 in 0 : vector<1x1xf32>, vector<127x1xf32> -> vector<128x1xf32>
    %7 = tpu.iota {dimensions = array<i32: 0>} : vector<128x1xi32>
    %c64_i32 = arith.constant 64 : i32
    %c0_i32 = arith.constant 0 : i32
    %8 = arith.cmpi eq, %c64_i32, %c0_i32 : i32
    %c1_i32 = arith.constant 1 : i32
    %9 = arith.select %8, %c1_i32, %c64_i32 : i32
    %10 = vector.broadcast %9 : i32 to vector<128x1xi32>
    %11 = arith.remsi %7, %10 : vector<128x1xi32>
    %c0_i32_4 = arith.constant 0 : i32
    %12 = vector.broadcast %c0_i32_4 : i32 to vector<128x1xi32>
    %13 = arith.cmpi ne, %11, %12 : vector<128x1xi32>
    %c0_i32_5 = arith.constant 0 : i32
    %14 = vector.broadcast %c0_i32_5 : i32 to vector<128x1xi32>
    %15 = arith.cmpi slt, %11, %14 : vector<128x1xi32>
    %c0_i32_6 = arith.constant 0 : i32
    %16 = arith.cmpi slt, %9, %c0_i32_6 : i32
    %17 = vector.broadcast %16 : i1 to vector<128x1xi1>
    %18 = vector.broadcast %17 : vector<128x1xi1> to vector<128x1xi1>
    %19 = arith.xori %15, %18 : vector<128x1xi1>
    %20 = arith.andi %19, %13 : vector<128x1xi1>
    %21 = vector.broadcast %9 : i32 to vector<128x1xi32>
    %22 = arith.addi %11, %21 : vector<128x1xi32>
    %23 = arith.select %20, %22, %11 : vector<128x1xi1>, vector<128x1xi32>
    %c0_i32_7 = arith.constant 0 : i32
    %24 = vector.broadcast %c0_i32_7 : i32 to vector<128x1xi32>
    %25 = arith.cmpi ne, %23, %24 : vector<128x1xi32>
    %26 = arith.extui %25 : vector<128x1xi1> to vector<128x1xi32>
    %27 = arith.sitofp %26 : vector<128x1xi32> to vector<128x1xf32>
    %28 = arith.mulf %6, %27 : vector<128x1xf32>
    %c0_8 = arith.constant 0 : index
    %c0_9 = arith.constant 0 : index
    %c0_10 = arith.constant 0 : index
    %29 = vector.load %arg2[%c0_8, %c0_9, %c0_10] : memref<1x3x32xbf16, #tpu.memory_space<vmem>>, vector<1x3x32xbf16>
    %30 = vector.shape_cast %29 : vector<1x3x32xbf16> to vector<3x32xbf16>
    %31 = arith.extf %30 : vector<3x32xbf16> to vector<3x32xf32>
    %32 = vector.extract_strided_slice %31 {offsets = [0, 0], sizes = [1, 32], strides = [1, 1]} : vector<3x32xf32> to vector<1x32xf32>
    %33 = vector.broadcast %28 : vector<128x1xf32> to vector<128x32xf32>
    %34 = vector.broadcast %32 : vector<1x32xf32> to vector<128x32xf32>
    %35 = arith.mulf %33, %34 : vector<128x32xf32>
    %36 = vector.extract_strided_slice %31 {offsets = [1, 0], sizes = [1, 32], strides = [1, 1]} : vector<3x32xf32> to vector<1x32xf32>
    %37 = vector.broadcast %1 : vector<128x1xf32> to vector<128x32xf32>
    %38 = vector.broadcast %36 : vector<1x32xf32> to vector<128x32xf32>
    %39 = arith.mulf %37, %38 : vector<128x32xf32>
    %40 = arith.addf %35, %39 : vector<128x32xf32>
    %41 = vector.extract_strided_slice %31 {offsets = [2, 0], sizes = [1, 32], strides = [1, 1]} : vector<3x32xf32> to vector<1x32xf32>
    %42 = vector.broadcast %3 : vector<128x1xf32> to vector<128x32xf32>
    %43 = vector.broadcast %41 : vector<1x32xf32> to vector<128x32xf32>
    %44 = arith.mulf %42, %43 : vector<128x32xf32>
    %45 = arith.addf %40, %44 : vector<128x32xf32>
    %cst_11 = arith.constant dense<0.000000e+00> : vector<32xf32>
    %46 = vector.multi_reduction <add>, %45, %cst_11 [0] : vector<128x32xf32> to vector<32xf32>
    %47 = vector.shape_cast %46 : vector<32xf32> to vector<1x32xf32>
    %cst_12 = arith.constant 7.812500e-03 : f32
    %48 = vector.broadcast %cst_12 : f32 to vector<1x32xf32>
    %49 = arith.mulf %47, %48 : vector<1x32xf32>
    %50 = arith.mulf %45, %45 : vector<128x32xf32>
    %cst_13 = arith.constant dense<0.000000e+00> : vector<32xf32>
    %51 = vector.multi_reduction <add>, %50, %cst_13 [0] : vector<128x32xf32> to vector<32xf32>
    %52 = vector.shape_cast %51 : vector<32xf32> to vector<1x32xf32>
    %cst_14 = arith.constant 7.812500e-03 : f32
    %53 = vector.broadcast %cst_14 : f32 to vector<1x32xf32>
    %54 = arith.mulf %52, %53 : vector<1x32xf32>
    %55 = arith.mulf %49, %49 : vector<1x32xf32>
    %56 = arith.subf %54, %55 : vector<1x32xf32>
    %cst_15 = arith.constant 0.000000e+00 : f32
    %57 = vector.broadcast %cst_15 : f32 to vector<1x32xf32>
    %58 = arith.maximumf %56, %57 : vector<1x32xf32>
    %c0_16 = arith.constant 0 : index
    %c0_17 = arith.constant 0 : index
    %c0_18 = arith.constant 0 : index
    %59 = vector.load %arg8[%c0_16, %c0_17, %c0_18] : memref<1x6x128xf32, #tpu.memory_space<vmem>>, vector<1x1x32xf32>
    %60 = vector.shape_cast %59 : vector<1x1x32xf32> to vector<1x32xf32>
    %c0_19 = arith.constant 0 : index
    %c0_20 = arith.constant 0 : index
    %c0_21 = arith.constant 0 : index
    %61 = vector.load %arg9[%c0_19, %c0_20, %c0_21] : memref<1x6x128xf32, #tpu.memory_space<vmem>>, vector<1x1x32xf32>
    %62 = vector.shape_cast %61 : vector<1x1x32xf32> to vector<1x32xf32>
    %cst_22 = arith.constant 9.99999974E-6 : f32
    %63 = vector.broadcast %cst_22 : f32 to vector<1x32xf32>
    %64 = arith.addf %58, %63 : vector<1x32xf32>
    %65 = math.rsqrt %64 : vector<1x32xf32>
    %66 = arith.mulf %65, %60 : vector<1x32xf32>
    %67 = vector.broadcast %49 : vector<1x32xf32> to vector<128x32xf32>
    %68 = arith.subf %45, %67 : vector<128x32xf32>
    %69 = vector.broadcast %66 : vector<1x32xf32> to vector<128x32xf32>
    %70 = arith.mulf %68, %69 : vector<128x32xf32>
    %71 = vector.broadcast %62 : vector<1x32xf32> to vector<128x32xf32>
    %72 = arith.addf %70, %71 : vector<128x32xf32>
    %cst_23 = arith.constant 0.000000e+00 : f32
    %73 = vector.broadcast %cst_23 : f32 to vector<128x32xf32>
    %74 = arith.maximumf %72, %73 : vector<128x32xf32>
    %c0_24 = arith.constant 0 : index
    %c0_25 = arith.constant 0 : index
    %75 = vector.load %arg21[%c0_24, %c0_25] : memref<128x128xf32, #tpu.memory_space<vmem>>, vector<128x32xf32>
    tpu.vector_store %arg21[%c0_24, %c0_25], %74 {strides = array<i32>} : memref<128x128xf32, #tpu.memory_space<vmem>>, vector<128x32xf32>,
    %c0_26 = arith.constant 0 : index
    %c0_27 = arith.constant 0 : index
    %76 = tpu.strided_load %arg21[%c0_26, %c0_27] {strides = array<i32: 2, 1>} : memref<128x128xf32, #tpu.memory_space<vmem>>, vector<64x32xf32>
    %c1_28 = arith.constant 1 : index
    %c0_29 = arith.constant 0 : index
    %77 = tpu.strided_load %arg21[%c1_28, %c0_29] {strides = array<i32: 2, 1>} : memref<128x128xf32, #tpu.memory_space<vmem>>, vector<64x32xf32>
    %cst_30 = arith.constant 0.000000e+00 : f32
    %78 = vector.broadcast %cst_30 : f32 to vector<1x32xf32>
    %79 = vector.extract_strided_slice %77 {offsets = [0, 0], sizes = [63, 32], strides = [1, 1]} : vector<64x32xf32> to vector<63x32xf32>
    %80 = tpu.concatenate %78, %79 in 0 : vector<1x32xf32>, vector<63x32xf32> -> vector<64x32xf32>
    %81 = tpu.iota {dimensions = array<i32: 0>} : vector<64x1xi32>
    %c32_i32 = arith.constant 32 : i32
    %c0_i32_31 = arith.constant 0 : i32
    %82 = arith.cmpi eq, %c32_i32, %c0_i32_31 : i32
    %c1_i32_32 = arith.constant 1 : i32
    %83 = arith.select %82, %c1_i32_32, %c32_i32 : i32
    %84 = vector.broadcast %83 : i32 to vector<64x1xi32>
    %85 = arith.remsi %81, %84 : vector<64x1xi32>
    %c0_i32_33 = arith.constant 0 : i32
    %86 = vector.broadcast %c0_i32_33 : i32 to vector<64x1xi32>
    %87 = arith.cmpi ne, %85, %86 : vector<64x1xi32>
    %c0_i32_34 = arith.constant 0 : i32
    %88 = vector.broadcast %c0_i32_34 : i32 to vector<64x1xi32>
    %89 = arith.cmpi slt, %85, %88 : vector<64x1xi32>
    %c0_i32_35 = arith.constant 0 : i32
    %90 = arith.cmpi slt, %83, %c0_i32_35 : i32
    %91 = vector.broadcast %90 : i1 to vector<64x1xi1>
    %92 = vector.broadcast %91 : vector<64x1xi1> to vector<64x1xi1>
    %93 = arith.xori %89, %92 : vector<64x1xi1>
    %94 = arith.andi %93, %87 : vector<64x1xi1>
    %95 = vector.broadcast %83 : i32 to vector<64x1xi32>
    %96 = arith.addi %85, %95 : vector<64x1xi32>
    %97 = arith.select %94, %96, %85 : vector<64x1xi1>, vector<64x1xi32>
    %c0_i32_36 = arith.constant 0 : i32
    %98 = vector.broadcast %c0_i32_36 : i32 to vector<64x1xi32>
    %99 = arith.cmpi ne, %97, %98 : vector<64x1xi32>
    %100 = arith.extui %99 : vector<64x1xi1> to vector<64x1xi32>
    %101 = arith.sitofp %100 : vector<64x1xi32> to vector<64x1xf32>
    %102 = vector.broadcast %101 : vector<64x1xf32> to vector<64x32xf32>
    %103 = arith.mulf %80, %102 : vector<64x32xf32>
    %c0_37 = arith.constant 0 : index
    %c0_38 = arith.constant 0 : index
    %c0_39 = arith.constant 0 : index
    %104 = vector.load %arg3[%c0_37, %c0_38, %c0_39] : memref<1x96x32xbf16, #tpu.memory_space<vmem>>, vector<1x96x32xbf16>
    %105 = vector.shape_cast %104 : vector<1x96x32xbf16> to vector<96x32xbf16>
    %106 = arith.truncf %103 : vector<64x32xf32> to vector<64x32xbf16>
    %107 = vector.extract_strided_slice %105 {offsets = [0, 0], sizes = [32, 32], strides = [1, 1]} : vector<96x32xbf16> to vector<32x32xbf16>
    %cst_40 = arith.constant dense<0.000000e+00> : vector<64x32xf32>
    %108 = tpu.matmul %106, %107, %cst_40 {dimension_numbers = #tpu.dot_dimension_numbers<[1], [0], [0], [1], [0, 0, 1, 1], [], []>} : vector<64x32xbf16>, vector<32x32xbf16>, vector<64x32xf32> -> vector<64x32xf32>
    %109 = arith.truncf %76 : vector<64x32xf32> to vector<64x32xbf16>
    %110 = vector.extract_strided_slice %105 {offsets = [32, 0], sizes = [32, 32], strides = [1, 1]} : vector<96x32xbf16> to vector<32x32xbf16>
    %cst_41 = arith.constant dense<0.000000e+00> : vector<64x32xf32>
    %111 = tpu.matmul %109, %110, %cst_41 {dimension_numbers = #tpu.dot_dimension_numbers<[1], [0], [0], [1], [0, 0, 1, 1], [], []>} : vector<64x32xbf16>, vector<32x32xbf16>, vector<64x32xf32> -> vector<64x32xf32>
    %112 = arith.addf %108, %111 : vector<64x32xf32>
    %113 = arith.truncf %77 : vector<64x32xf32> to vector<64x32xbf16>
    %114 = vector.extract_strided_slice %105 {offsets = [64, 0], sizes = [32, 32], strides = [1, 1]} : vector<96x32xbf16> to vector<32x32xbf16>
    %cst_42 = arith.constant dense<0.000000e+00> : vector<64x32xf32>
    %115 = tpu.matmul %113, %114, %cst_42 {dimension_numbers = #tpu.dot_dimension_numbers<[1], [0], [0], [1], [0, 0, 1, 1], [], []>} : vector<64x32xbf16>, vector<32x32xbf16>, vector<64x32xf32> -> vector<64x32xf32>
    %116 = arith.addf %112, %115 : vector<64x32xf32>
    %cst_43 = arith.constant dense<0.000000e+00> : vector<32xf32>
    %117 = vector.multi_reduction <add>, %116, %cst_43 [0] : vector<64x32xf32> to vector<32xf32>
    %118 = vector.shape_cast %117 : vector<32xf32> to vector<1x32xf32>
    %cst_44 = arith.constant 1.562500e-02 : f32
    %119 = vector.broadcast %cst_44 : f32 to vector<1x32xf32>
    %120 = arith.mulf %118, %119 : vector<1x32xf32>
    %121 = arith.mulf %116, %116 : vector<64x32xf32>
    %cst_45 = arith.constant dense<0.000000e+00> : vector<32xf32>
    %122 = vector.multi_reduction <add>, %121, %cst_45 [0] : vector<64x32xf32> to vector<32xf32>
    %123 = vector.shape_cast %122 : vector<32xf32> to vector<1x32xf32>
    %cst_46 = arith.constant 1.562500e-02 : f32
    %124 = vector.broadcast %cst_46 : f32 to vector<1x32xf32>
    %125 = arith.mulf %123, %124 : vector<1x32xf32>
    %126 = arith.mulf %120, %120 : vector<1x32xf32>
    %127 = arith.subf %125, %126 : vector<1x32xf32>
    %cst_47 = arith.constant 0.000000e+00 : f32
    %128 = vector.broadcast %cst_47 : f32 to vector<1x32xf32>
    %129 = arith.maximumf %127, %128 : vector<1x32xf32>
    %c0_48 = arith.constant 0 : index
    %c1_49 = arith.constant 1 : index
    %c0_50 = arith.constant 0 : index
    %130 = vector.load %arg8[%c0_48, %c1_49, %c0_50] : memref<1x6x128xf32, #tpu.memory_space<vmem>>, vector<1x1x32xf32>
    %131 = vector.shape_cast %130 : vector<1x1x32xf32> to vector<1x32xf32>
    %c0_51 = arith.constant 0 : index
    %c1_52 = arith.constant 1 : index
    %c0_53 = arith.constant 0 : index
    %132 = vector.load %arg9[%c0_51, %c1_52, %c0_53] : memref<1x6x128xf32, #tpu.memory_space<vmem>>, vector<1x1x32xf32>
    %133 = vector.shape_cast %132 : vector<1x1x32xf32> to vector<1x32xf32>
    %cst_54 = arith.constant 9.99999974E-6 : f32
    %134 = vector.broadcast %cst_54 : f32 to vector<1x32xf32>
    %135 = arith.addf %129, %134 : vector<1x32xf32>
    %136 = math.rsqrt %135 : vector<1x32xf32>
    %137 = arith.mulf %136, %131 : vector<1x32xf32>
    %138 = vector.broadcast %120 : vector<1x32xf32> to vector<64x32xf32>
    %139 = arith.subf %116, %138 : vector<64x32xf32>
    %140 = vector.broadcast %137 : vector<1x32xf32> to vector<64x32xf32>
    %141 = arith.mulf %139, %140 : vector<64x32xf32>
    %142 = vector.broadcast %133 : vector<1x32xf32> to vector<64x32xf32>
    %143 = arith.addf %141, %142 : vector<64x32xf32>
    %cst_55 = arith.constant 0.000000e+00 : f32
    %144 = vector.broadcast %cst_55 : f32 to vector<64x32xf32>
    %145 = arith.maximumf %143, %144 : vector<64x32xf32>
    %c0_56 = arith.constant 0 : index
    %c0_57 = arith.constant 0 : index
    %146 = vector.load %arg22[%c0_56, %c0_57] : memref<128x128xf32, #tpu.memory_space<vmem>>, vector<64x32xf32>
    tpu.vector_store %arg22[%c0_56, %c0_57], %145 {strides = array<i32>} : memref<128x128xf32, #tpu.memory_space<vmem>>, vector<64x32xf32>,
    %c0_58 = arith.constant 0 : index
    %c0_59 = arith.constant 0 : index
    %147 = tpu.strided_load %arg22[%c0_58, %c0_59] {strides = array<i32: 2, 1>} : memref<128x128xf32, #tpu.memory_space<vmem>>, vector<32x32xf32>
    %c1_60 = arith.constant 1 : index
    %c0_61 = arith.constant 0 : index
    %148 = tpu.strided_load %arg22[%c1_60, %c0_61] {strides = array<i32: 2, 1>} : memref<128x128xf32, #tpu.memory_space<vmem>>, vector<32x32xf32>
    %cst_62 = arith.constant 0.000000e+00 : f32
    %149 = vector.broadcast %cst_62 : f32 to vector<1x32xf32>
    %150 = vector.extract_strided_slice %148 {offsets = [0, 0], sizes = [31, 32], strides = [1, 1]} : vector<32x32xf32> to vector<31x32xf32>
    %151 = tpu.concatenate %149, %150 in 0 : vector<1x32xf32>, vector<31x32xf32> -> vector<32x32xf32>
    %152 = tpu.iota {dimensions = array<i32: 0>} : vector<32x1xi32>
    %c16_i32 = arith.constant 16 : i32
    %c0_i32_63 = arith.constant 0 : i32
    %153 = arith.cmpi eq, %c16_i32, %c0_i32_63 : i32
    %c1_i32_64 = arith.constant 1 : i32
    %154 = arith.select %153, %c1_i32_64, %c16_i32 : i32
    %155 = vector.broadcast %154 : i32 to vector<32x1xi32>
    %156 = arith.remsi %152, %155 : vector<32x1xi32>
    %c0_i32_65 = arith.constant 0 : i32
    %157 = vector.broadcast %c0_i32_65 : i32 to vector<32x1xi32>
    %158 = arith.cmpi ne, %156, %157 : vector<32x1xi32>
    %c0_i32_66 = arith.constant 0 : i32
    %159 = vector.broadcast %c0_i32_66 : i32 to vector<32x1xi32>
    %160 = arith.cmpi slt, %156, %159 : vector<32x1xi32>
    %c0_i32_67 = arith.constant 0 : i32
    %161 = arith.cmpi slt, %154, %c0_i32_67 : i32
    %162 = vector.broadcast %161 : i1 to vector<32x1xi1>
    %163 = vector.broadcast %162 : vector<32x1xi1> to vector<32x1xi1>
    %164 = arith.xori %160, %163 : vector<32x1xi1>
    %165 = arith.andi %164, %158 : vector<32x1xi1>
    %166 = vector.broadcast %154 : i32 to vector<32x1xi32>
    %167 = arith.addi %156, %166 : vector<32x1xi32>
    %168 = arith.select %165, %167, %156 : vector<32x1xi1>, vector<32x1xi32>
    %c0_i32_68 = arith.constant 0 : i32
    %169 = vector.broadcast %c0_i32_68 : i32 to vector<32x1xi32>
    %170 = arith.cmpi ne, %168, %169 : vector<32x1xi32>
    %171 = arith.extui %170 : vector<32x1xi1> to vector<32x1xi32>
    %172 = arith.sitofp %171 : vector<32x1xi32> to vector<32x1xf32>
    %173 = vector.broadcast %172 : vector<32x1xf32> to vector<32x32xf32>
    %174 = arith.mulf %151, %173 : vector<32x32xf32>
    %c0_69 = arith.constant 0 : index
    %c0_70 = arith.constant 0 : index
    %c0_71 = arith.constant 0 : index
    %175 = vector.load %arg4[%c0_69, %c0_70, %c0_71] : memref<1x96x64xbf16, #tpu.memory_space<vmem>>, vector<1x96x64xbf16>
    %176 = vector.shape_cast %175 : vector<1x96x64xbf16> to vector<96x64xbf16>
    %177 = arith.truncf %174 : vector<32x32xf32> to vector<32x32xbf16>
    %178 = vector.extract_strided_slice %176 {offsets = [0, 0], sizes = [32, 64], strides = [1, 1]} : vector<96x64xbf16> to vector<32x64xbf16>
    %cst_72 = arith.constant dense<0.000000e+00> : vector<32x64xf32>
    %179 = tpu.matmul %177, %178, %cst_72 {dimension_numbers = #tpu.dot_dimension_numbers<[1], [0], [0], [1], [0, 0, 1, 1], [], []>} : vector<32x32xbf16>, vector<32x64xbf16>, vector<32x64xf32> -> vector<32x64xf32>
    %180 = arith.truncf %147 : vector<32x32xf32> to vector<32x32xbf16>
    %181 = vector.extract_strided_slice %176 {offsets = [32, 0], sizes = [32, 64], strides = [1, 1]} : vector<96x64xbf16> to vector<32x64xbf16>
    %cst_73 = arith.constant dense<0.000000e+00> : vector<32x64xf32>
    %182 = tpu.matmul %180, %181, %cst_73 {dimension_numbers = #tpu.dot_dimension_numbers<[1], [0], [0], [1], [0, 0, 1, 1], [], []>} : vector<32x32xbf16>, vector<32x64xbf16>, vector<32x64xf32> -> vector<32x64xf32>
    %183 = arith.addf %179, %182 : vector<32x64xf32>
    %184 = arith.truncf %148 : vector<32x32xf32> to vector<32x32xbf16>
    %185 = vector.extract_strided_slice %176 {offsets = [64, 0], sizes = [32, 64], strides = [1, 1]} : vector<96x64xbf16> to vector<32x64xbf16>
    %cst_74 = arith.constant dense<0.000000e+00> : vector<32x64xf32>
    %186 = tpu.matmul %184, %185, %cst_74 {dimension_numbers = #tpu.dot_dimension_numbers<[1], [0], [0], [1], [0, 0, 1, 1], [], []>} : vector<32x32xbf16>, vector<32x64xbf16>, vector<32x64xf32> -> vector<32x64xf32>
    %187 = arith.addf %183, %186 : vector<32x64xf32>
    %cst_75 = arith.constant dense<0.000000e+00> : vector<64xf32>
    %188 = vector.multi_reduction <add>, %187, %cst_75 [0] : vector<32x64xf32> to vector<64xf32>
    %189 = vector.shape_cast %188 : vector<64xf32> to vector<1x64xf32>
    %cst_76 = arith.constant 3.125000e-02 : f32
    %190 = vector.broadcast %cst_76 : f32 to vector<1x64xf32>
    %191 = arith.mulf %189, %190 : vector<1x64xf32>
    %192 = arith.mulf %187, %187 : vector<32x64xf32>
    %cst_77 = arith.constant dense<0.000000e+00> : vector<64xf32>
    %193 = vector.multi_reduction <add>, %192, %cst_77 [0] : vector<32x64xf32> to vector<64xf32>
    %194 = vector.shape_cast %193 : vector<64xf32> to vector<1x64xf32>
    %cst_78 = arith.constant 3.125000e-02 : f32
    %195 = vector.broadcast %cst_78 : f32 to vector<1x64xf32>
    %196 = arith.mulf %194, %195 : vector<1x64xf32>
    %197 = arith.mulf %191, %191 : vector<1x64xf32>
    %198 = arith.subf %196, %197 : vector<1x64xf32>
    %cst_79 = arith.constant 0.000000e+00 : f32
    %199 = vector.broadcast %cst_79 : f32 to vector<1x64xf32>
    %200 = arith.maximumf %198, %199 : vector<1x64xf32>
    %c0_80 = arith.constant 0 : index
    %c2 = arith.constant 2 : index
    %c0_81 = arith.constant 0 : index
    %201 = vector.load %arg8[%c0_80, %c2, %c0_81] : memref<1x6x128xf32, #tpu.memory_space<vmem>>, vector<1x1x64xf32>
    %202 = vector.shape_cast %201 : vector<1x1x64xf32> to vector<1x64xf32>
    %c0_82 = arith.constant 0 : index
    %c2_83 = arith.constant 2 : index
    %c0_84 = arith.constant 0 : index
    %203 = vector.load %arg9[%c0_82, %c2_83, %c0_84] : memref<1x6x128xf32, #tpu.memory_space<vmem>>, vector<1x1x64xf32>
    %204 = vector.shape_cast %203 : vector<1x1x64xf32> to vector<1x64xf32>
    %cst_85 = arith.constant 9.99999974E-6 : f32
    %205 = vector.broadcast %cst_85 : f32 to vector<1x64xf32>
    %206 = arith.addf %200, %205 : vector<1x64xf32>
    %207 = math.rsqrt %206 : vector<1x64xf32>
    %208 = arith.mulf %207, %202 : vector<1x64xf32>
    %209 = vector.broadcast %191 : vector<1x64xf32> to vector<32x64xf32>
    %210 = arith.subf %187, %209 : vector<32x64xf32>
    %211 = vector.broadcast %208 : vector<1x64xf32> to vector<32x64xf32>
    %212 = arith.mulf %210, %211 : vector<32x64xf32>
    %213 = vector.broadcast %204 : vector<1x64xf32> to vector<32x64xf32>
    %214 = arith.addf %212, %213 : vector<32x64xf32>
    %cst_86 = arith.constant 0.000000e+00 : f32
    %215 = vector.broadcast %cst_86 : f32 to vector<32x64xf32>
    %216 = arith.maximumf %214, %215 : vector<32x64xf32>
    %c0_87 = arith.constant 0 : index
    %c0_88 = arith.constant 0 : index
    %217 = vector.load %arg21[%c0_87, %c0_88] : memref<128x128xf32, #tpu.memory_space<vmem>>, vector<32x64xf32>
    tpu.vector_store %arg21[%c0_87, %c0_88], %216 {strides = array<i32>} : memref<128x128xf32, #tpu.memory_space<vmem>>, vector<32x64xf32>,
    %c0_89 = arith.constant 0 : index
    %c0_90 = arith.constant 0 : index
    %218 = tpu.strided_load %arg21[%c0_89, %c0_90] {strides = array<i32: 2, 1>} : memref<128x128xf32, #tpu.memory_space<vmem>>, vector<16x64xf32>
    %c1_91 = arith.constant 1 : index
    %c0_92 = arith.constant 0 : index
    %219 = tpu.strided_load %arg21[%c1_91, %c0_92] {strides = array<i32: 2, 1>} : memref<128x128xf32, #tpu.memory_space<vmem>>, vector<16x64xf32>
    %cst_93 = arith.constant 0.000000e+00 : f32
    %220 = vector.broadcast %cst_93 : f32 to vector<1x64xf32>
    %221 = vector.extract_strided_slice %219 {offsets = [0, 0], sizes = [15, 64], strides = [1, 1]} : vector<16x64xf32> to vector<15x64xf32>
    %222 = tpu.concatenate %220, %221 in 0 : vector<1x64xf32>, vector<15x64xf32> -> vector<16x64xf32>
    %223 = tpu.iota {dimensions = array<i32: 0>} : vector<16x1xi32>
    %c8_i32 = arith.constant 8 : i32
    %c0_i32_94 = arith.constant 0 : i32
    %224 = arith.cmpi eq, %c8_i32, %c0_i32_94 : i32
    %c1_i32_95 = arith.constant 1 : i32
    %225 = arith.select %224, %c1_i32_95, %c8_i32 : i32
    %226 = vector.broadcast %225 : i32 to vector<16x1xi32>
    %227 = arith.remsi %223, %226 : vector<16x1xi32>
    %c0_i32_96 = arith.constant 0 : i32
    %228 = vector.broadcast %c0_i32_96 : i32 to vector<16x1xi32>
    %229 = arith.cmpi ne, %227, %228 : vector<16x1xi32>
    %c0_i32_97 = arith.constant 0 : i32
    %230 = vector.broadcast %c0_i32_97 : i32 to vector<16x1xi32>
    %231 = arith.cmpi slt, %227, %230 : vector<16x1xi32>
    %c0_i32_98 = arith.constant 0 : i32
    %232 = arith.cmpi slt, %225, %c0_i32_98 : i32
    %233 = vector.broadcast %232 : i1 to vector<16x1xi1>
    %234 = vector.broadcast %233 : vector<16x1xi1> to vector<16x1xi1>
    %235 = arith.xori %231, %234 : vector<16x1xi1>
    %236 = arith.andi %235, %229 : vector<16x1xi1>
    %237 = vector.broadcast %225 : i32 to vector<16x1xi32>
    %238 = arith.addi %227, %237 : vector<16x1xi32>
    %239 = arith.select %236, %238, %227 : vector<16x1xi1>, vector<16x1xi32>
    %c0_i32_99 = arith.constant 0 : i32
    %240 = vector.broadcast %c0_i32_99 : i32 to vector<16x1xi32>
    %241 = arith.cmpi ne, %239, %240 : vector<16x1xi32>
    %242 = arith.extui %241 : vector<16x1xi1> to vector<16x1xi32>
    %243 = arith.sitofp %242 : vector<16x1xi32> to vector<16x1xf32>
    %244 = vector.broadcast %243 : vector<16x1xf32> to vector<16x64xf32>
    %245 = arith.mulf %222, %244 : vector<16x64xf32>
    %c0_100 = arith.constant 0 : index
    %c0_101 = arith.constant 0 : index
    %c0_102 = arith.constant 0 : index
    %246 = vector.load %arg5[%c0_100, %c0_101, %c0_102] : memref<1x192x64xbf16, #tpu.memory_space<vmem>>, vector<1x192x64xbf16>
    %247 = vector.shape_cast %246 : vector<1x192x64xbf16> to vector<192x64xbf16>
    %248 = arith.truncf %245 : vector<16x64xf32> to vector<16x64xbf16>
    %249 = vector.extract_strided_slice %247 {offsets = [0, 0], sizes = [64, 64], strides = [1, 1]} : vector<192x64xbf16> to vector<64x64xbf16>
    %cst_103 = arith.constant dense<0.000000e+00> : vector<16x64xf32>
    %250 = tpu.matmul %248, %249, %cst_103 {dimension_numbers = #tpu.dot_dimension_numbers<[1], [0], [0], [1], [0, 0, 1, 1], [], []>} : vector<16x64xbf16>, vector<64x64xbf16>, vector<16x64xf32> -> vector<16x64xf32>
    %251 = arith.truncf %218 : vector<16x64xf32> to vector<16x64xbf16>
    %252 = vector.extract_strided_slice %247 {offsets = [64, 0], sizes = [64, 64], strides = [1, 1]} : vector<192x64xbf16> to vector<64x64xbf16>
    %cst_104 = arith.constant dense<0.000000e+00> : vector<16x64xf32>
    %253 = tpu.matmul %251, %252, %cst_104 {dimension_numbers = #tpu.dot_dimension_numbers<[1], [0], [0], [1], [0, 0, 1, 1], [], []>} : vector<16x64xbf16>, vector<64x64xbf16>, vector<16x64xf32> -> vector<16x64xf32>
    %254 = arith.addf %250, %253 : vector<16x64xf32>
    %255 = arith.truncf %219 : vector<16x64xf32> to vector<16x64xbf16>
    %256 = vector.extract_strided_slice %247 {offsets = [128, 0], sizes = [64, 64], strides = [1, 1]} : vector<192x64xbf16> to vector<64x64xbf16>
    %cst_105 = arith.constant dense<0.000000e+00> : vector<16x64xf32>
    %257 = tpu.matmul %255, %256, %cst_105 {dimension_numbers = #tpu.dot_dimension_numbers<[1], [0], [0], [1], [0, 0, 1, 1], [], []>} : vector<16x64xbf16>, vector<64x64xbf16>, vector<16x64xf32> -> vector<16x64xf32>
    %258 = arith.addf %254, %257 : vector<16x64xf32>
    %cst_106 = arith.constant dense<0.000000e+00> : vector<64xf32>
    %259 = vector.multi_reduction <add>, %258, %cst_106 [0] : vector<16x64xf32> to vector<64xf32>
    %260 = vector.shape_cast %259 : vector<64xf32> to vector<1x64xf32>
    %cst_107 = arith.constant 6.250000e-02 : f32
    %261 = vector.broadcast %cst_107 : f32 to vector<1x64xf32>
    %262 = arith.mulf %260, %261 : vector<1x64xf32>
    %263 = arith.mulf %258, %258 : vector<16x64xf32>
    %cst_108 = arith.constant dense<0.000000e+00> : vector<64xf32>
    %264 = vector.multi_reduction <add>, %263, %cst_108 [0] : vector<16x64xf32> to vector<64xf32>
    %265 = vector.shape_cast %264 : vector<64xf32> to vector<1x64xf32>
    %cst_109 = arith.constant 6.250000e-02 : f32
    %266 = vector.broadcast %cst_109 : f32 to vector<1x64xf32>
    %267 = arith.mulf %265, %266 : vector<1x64xf32>
    %268 = arith.mulf %262, %262 : vector<1x64xf32>
    %269 = arith.subf %267, %268 : vector<1x64xf32>
    %cst_110 = arith.constant 0.000000e+00 : f32
    %270 = vector.broadcast %cst_110 : f32 to vector<1x64xf32>
    %271 = arith.maximumf %269, %270 : vector<1x64xf32>
    %c0_111 = arith.constant 0 : index
    %c3 = arith.constant 3 : index
    %c0_112 = arith.constant 0 : index
    %272 = vector.load %arg8[%c0_111, %c3, %c0_112] : memref<1x6x128xf32, #tpu.memory_space<vmem>>, vector<1x1x64xf32>
    %273 = vector.shape_cast %272 : vector<1x1x64xf32> to vector<1x64xf32>
    %c0_113 = arith.constant 0 : index
    %c3_114 = arith.constant 3 : index
    %c0_115 = arith.constant 0 : index
    %274 = vector.load %arg9[%c0_113, %c3_114, %c0_115] : memref<1x6x128xf32, #tpu.memory_space<vmem>>, vector<1x1x64xf32>
    %275 = vector.shape_cast %274 : vector<1x1x64xf32> to vector<1x64xf32>
    %cst_116 = arith.constant 9.99999974E-6 : f32
    %276 = vector.broadcast %cst_116 : f32 to vector<1x64xf32>
    %277 = arith.addf %271, %276 : vector<1x64xf32>
    %278 = math.rsqrt %277 : vector<1x64xf32>
    %279 = arith.mulf %278, %273 : vector<1x64xf32>
    %280 = vector.broadcast %262 : vector<1x64xf32> to vector<16x64xf32>
    %281 = arith.subf %258, %280 : vector<16x64xf32>
    %282 = vector.broadcast %279 : vector<1x64xf32> to vector<16x64xf32>
    %283 = arith.mulf %281, %282 : vector<16x64xf32>
    %284 = vector.broadcast %275 : vector<1x64xf32> to vector<16x64xf32>
    %285 = arith.addf %283, %284 : vector<16x64xf32>
    %cst_117 = arith.constant 0.000000e+00 : f32
    %286 = vector.broadcast %cst_117 : f32 to vector<16x64xf32>
    %287 = arith.maximumf %285, %286 : vector<16x64xf32>
    %c0_118 = arith.constant 0 : index
    %c0_119 = arith.constant 0 : index
    %288 = vector.load %arg22[%c0_118, %c0_119] : memref<128x128xf32, #tpu.memory_space<vmem>>, vector<16x64xf32>
    tpu.vector_store %arg22[%c0_118, %c0_119], %287 {strides = array<i32>} : memref<128x128xf32, #tpu.memory_space<vmem>>, vector<16x64xf32>,
    %c0_120 = arith.constant 0 : index
    %c0_121 = arith.constant 0 : index
    %289 = tpu.strided_load %arg22[%c0_120, %c0_121] {strides = array<i32: 2, 1>} : memref<128x128xf32, #tpu.memory_space<vmem>>, vector<8x64xf32>
    %c1_122 = arith.constant 1 : index
    %c0_123 = arith.constant 0 : index
    %290 = tpu.strided_load %arg22[%c1_122, %c0_123] {strides = array<i32: 2, 1>} : memref<128x128xf32, #tpu.memory_space<vmem>>, vector<8x64xf32>
    %cst_124 = arith.constant 0.000000e+00 : f32
    %291 = vector.broadcast %cst_124 : f32 to vector<1x64xf32>
    %292 = vector.extract_strided_slice %290 {offsets = [0, 0], sizes = [7, 64], strides = [1, 1]} : vector<8x64xf32> to vector<7x64xf32>
    %293 = tpu.concatenate %291, %292 in 0 : vector<1x64xf32>, vector<7x64xf32> -> vector<8x64xf32>
    %294 = tpu.iota {dimensions = array<i32: 0>} : vector<8x1xi32>
    %c4_i32 = arith.constant 4 : i32
    %c0_i32_125 = arith.constant 0 : i32
    %295 = arith.cmpi eq, %c4_i32, %c0_i32_125 : i32
    %c1_i32_126 = arith.constant 1 : i32
    %296 = arith.select %295, %c1_i32_126, %c4_i32 : i32
    %297 = vector.broadcast %296 : i32 to vector<8x1xi32>
    %298 = arith.remsi %294, %297 : vector<8x1xi32>
    %c0_i32_127 = arith.constant 0 : i32
    %299 = vector.broadcast %c0_i32_127 : i32 to vector<8x1xi32>
    %300 = arith.cmpi ne, %298, %299 : vector<8x1xi32>
    %c0_i32_128 = arith.constant 0 : i32
    %301 = vector.broadcast %c0_i32_128 : i32 to vector<8x1xi32>
    %302 = arith.cmpi slt, %298, %301 : vector<8x1xi32>
    %c0_i32_129 = arith.constant 0 : i32
    %303 = arith.cmpi slt, %296, %c0_i32_129 : i32
    %304 = vector.broadcast %303 : i1 to vector<8x1xi1>
    %305 = vector.broadcast %304 : vector<8x1xi1> to vector<8x1xi1>
    %306 = arith.xori %302, %305 : vector<8x1xi1>
    %307 = arith.andi %306, %300 : vector<8x1xi1>
    %308 = vector.broadcast %296 : i32 to vector<8x1xi32>
    %309 = arith.addi %298, %308 : vector<8x1xi32>
    %310 = arith.select %307, %309, %298 : vector<8x1xi1>, vector<8x1xi32>
    %c0_i32_130 = arith.constant 0 : i32
    %311 = vector.broadcast %c0_i32_130 : i32 to vector<8x1xi32>
    %312 = arith.cmpi ne, %310, %311 : vector<8x1xi32>
    %313 = arith.extui %312 : vector<8x1xi1> to vector<8x1xi32>
    %314 = arith.sitofp %313 : vector<8x1xi32> to vector<8x1xf32>
    %315 = vector.broadcast %314 : vector<8x1xf32> to vector<8x64xf32>
    %316 = arith.mulf %293, %315 : vector<8x64xf32>
    %c0_131 = arith.constant 0 : index
    %c0_132 = arith.constant 0 : index
    %c0_133 = arith.constant 0 : index
    %317 = vector.load %arg6[%c0_131, %c0_132, %c0_133] : memref<1x192x128xbf16, #tpu.memory_space<vmem>>, vector<1x192x128xbf16>
    %318 = vector.shape_cast %317 : vector<1x192x128xbf16> to vector<192x128xbf16>
    %319 = arith.truncf %316 : vector<8x64xf32> to vector<8x64xbf16>
    %320 = vector.extract_strided_slice %318 {offsets = [0, 0], sizes = [64, 128], strides = [1, 1]} : vector<192x128xbf16> to vector<64x128xbf16>
    %cst_134 = arith.constant dense<0.000000e+00> : vector<8x128xf32>
    %321 = tpu.matmul %319, %320, %cst_134 {dimension_numbers = #tpu.dot_dimension_numbers<[1], [0], [0], [1], [0, 0, 1, 1], [], []>} : vector<8x64xbf16>, vector<64x128xbf16>, vector<8x128xf32> -> vector<8x128xf32>
    %322 = arith.truncf %289 : vector<8x64xf32> to vector<8x64xbf16>
    %323 = vector.extract_strided_slice %318 {offsets = [64, 0], sizes = [64, 128], strides = [1, 1]} : vector<192x128xbf16> to vector<64x128xbf16>
    %cst_135 = arith.constant dense<0.000000e+00> : vector<8x128xf32>
    %324 = tpu.matmul %322, %323, %cst_135 {dimension_numbers = #tpu.dot_dimension_numbers<[1], [0], [0], [1], [0, 0, 1, 1], [], []>} : vector<8x64xbf16>, vector<64x128xbf16>, vector<8x128xf32> -> vector<8x128xf32>
    %325 = arith.addf %321, %324 : vector<8x128xf32>
    %326 = arith.truncf %290 : vector<8x64xf32> to vector<8x64xbf16>
    %327 = vector.extract_strided_slice %318 {offsets = [128, 0], sizes = [64, 128], strides = [1, 1]} : vector<192x128xbf16> to vector<64x128xbf16>
    %cst_136 = arith.constant dense<0.000000e+00> : vector<8x128xf32>
    %328 = tpu.matmul %326, %327, %cst_136 {dimension_numbers = #tpu.dot_dimension_numbers<[1], [0], [0], [1], [0, 0, 1, 1], [], []>} : vector<8x64xbf16>, vector<64x128xbf16>, vector<8x128xf32> -> vector<8x128xf32>
    %329 = arith.addf %325, %328 : vector<8x128xf32>
    %cst_137 = arith.constant dense<0.000000e+00> : vector<128xf32>
    %330 = vector.multi_reduction <add>, %329, %cst_137 [0] : vector<8x128xf32> to vector<128xf32>
    %331 = vector.shape_cast %330 : vector<128xf32> to vector<1x128xf32>
    %cst_138 = arith.constant 1.250000e-01 : f32
    %332 = vector.broadcast %cst_138 : f32 to vector<1x128xf32>
    %333 = arith.mulf %331, %332 : vector<1x128xf32>
    %334 = arith.mulf %329, %329 : vector<8x128xf32>
    %cst_139 = arith.constant dense<0.000000e+00> : vector<128xf32>
    %335 = vector.multi_reduction <add>, %334, %cst_139 [0] : vector<8x128xf32> to vector<128xf32>
    %336 = vector.shape_cast %335 : vector<128xf32> to vector<1x128xf32>
    %cst_140 = arith.constant 1.250000e-01 : f32
    %337 = vector.broadcast %cst_140 : f32 to vector<1x128xf32>
    %338 = arith.mulf %336, %337 : vector<1x128xf32>
    %339 = arith.mulf %333, %333 : vector<1x128xf32>
    %340 = arith.subf %338, %339 : vector<1x128xf32>
    %cst_141 = arith.constant 0.000000e+00 : f32
    %341 = vector.broadcast %cst_141 : f32 to vector<1x128xf32>
    %342 = arith.maximumf %340, %341 : vector<1x128xf32>
    %c0_142 = arith.constant 0 : index
    %c4 = arith.constant 4 : index
    %c0_143 = arith.constant 0 : index
    %343 = vector.load %arg8[%c0_142, %c4, %c0_143] : memref<1x6x128xf32, #tpu.memory_space<vmem>>, vector<1x1x128xf32>
    %344 = vector.shape_cast %343 : vector<1x1x128xf32> to vector<1x128xf32>
    %c0_144 = arith.constant 0 : index
    %c4_145 = arith.constant 4 : index
    %c0_146 = arith.constant 0 : index
    %345 = vector.load %arg9[%c0_144, %c4_145, %c0_146] : memref<1x6x128xf32, #tpu.memory_space<vmem>>, vector<1x1x128xf32>
    %346 = vector.shape_cast %345 : vector<1x1x128xf32> to vector<1x128xf32>
    %cst_147 = arith.constant 9.99999974E-6 : f32
    %347 = vector.broadcast %cst_147 : f32 to vector<1x128xf32>
    %348 = arith.addf %342, %347 : vector<1x128xf32>
    %349 = math.rsqrt %348 : vector<1x128xf32>
    %350 = arith.mulf %349, %344 : vector<1x128xf32>
    %351 = vector.broadcast %333 : vector<1x128xf32> to vector<8x128xf32>
    %352 = arith.subf %329, %351 : vector<8x128xf32>
    %353 = vector.broadcast %350 : vector<1x128xf32> to vector<8x128xf32>
    %354 = arith.mulf %352, %353 : vector<8x128xf32>
    %355 = vector.broadcast %346 : vector<1x128xf32> to vector<8x128xf32>
    %356 = arith.addf %354, %355 : vector<8x128xf32>
    %cst_148 = arith.constant 0.000000e+00 : f32
    %357 = vector.broadcast %cst_148 : f32 to vector<8x128xf32>
    %358 = arith.maximumf %356, %357 : vector<8x128xf32>
    %c0_149 = arith.constant 0 : index
    %c0_150 = arith.constant 0 : index
    %359 = vector.load %arg21[%c0_149, %c0_150] : memref<128x128xf32, #tpu.memory_space<vmem>>, vector<8x128xf32>
    tpu.vector_store %arg21[%c0_149, %c0_150], %358 {strides = array<i32>} : memref<128x128xf32, #tpu.memory_space<vmem>>, vector<8x128xf32>,
    %c0_151 = arith.constant 0 : index
    %c0_152 = arith.constant 0 : index
    %360 = tpu.strided_load %arg21[%c0_151, %c0_152] {strides = array<i32: 2, 1>} : memref<128x128xf32, #tpu.memory_space<vmem>>, vector<4x128xf32>
    %c1_153 = arith.constant 1 : index
    %c0_154 = arith.constant 0 : index
    %361 = tpu.strided_load %arg21[%c1_153, %c0_154] {strides = array<i32: 2, 1>} : memref<128x128xf32, #tpu.memory_space<vmem>>, vector<4x128xf32>
    %cst_155 = arith.constant 0.000000e+00 : f32
    %362 = vector.broadcast %cst_155 : f32 to vector<1x128xf32>
    %363 = vector.extract_strided_slice %361 {offsets = [0, 0], sizes = [3, 128], strides = [1, 1]} : vector<4x128xf32> to vector<3x128xf32>
    %364 = tpu.concatenate %362, %363 in 0 : vector<1x128xf32>, vector<3x128xf32> -> vector<4x128xf32>
    %365 = tpu.iota {dimensions = array<i32: 0>} : vector<4x1xi32>
    %c2_i32 = arith.constant 2 : i32
    %c0_i32_156 = arith.constant 0 : i32
    %366 = arith.cmpi eq, %c2_i32, %c0_i32_156 : i32
    %c1_i32_157 = arith.constant 1 : i32
    %367 = arith.select %366, %c1_i32_157, %c2_i32 : i32
    %368 = vector.broadcast %367 : i32 to vector<4x1xi32>
    %369 = arith.remsi %365, %368 : vector<4x1xi32>
    %c0_i32_158 = arith.constant 0 : i32
    %370 = vector.broadcast %c0_i32_158 : i32 to vector<4x1xi32>
    %371 = arith.cmpi ne, %369, %370 : vector<4x1xi32>
    %c0_i32_159 = arith.constant 0 : i32
    %372 = vector.broadcast %c0_i32_159 : i32 to vector<4x1xi32>
    %373 = arith.cmpi slt, %369, %372 : vector<4x1xi32>
    %c0_i32_160 = arith.constant 0 : i32
    %374 = arith.cmpi slt, %367, %c0_i32_160 : i32
    %375 = vector.broadcast %374 : i1 to vector<4x1xi1>
    %376 = vector.broadcast %375 : vector<4x1xi1> to vector<4x1xi1>
    %377 = arith.xori %373, %376 : vector<4x1xi1>
    %378 = arith.andi %377, %371 : vector<4x1xi1>
    %379 = vector.broadcast %367 : i32 to vector<4x1xi32>
    %380 = arith.addi %369, %379 : vector<4x1xi32>
    %381 = arith.select %378, %380, %369 : vector<4x1xi1>, vector<4x1xi32>
    %c0_i32_161 = arith.constant 0 : i32
    %382 = vector.broadcast %c0_i32_161 : i32 to vector<4x1xi32>
    %383 = arith.cmpi ne, %381, %382 : vector<4x1xi32>
    %384 = arith.extui %383 : vector<4x1xi1> to vector<4x1xi32>
    %385 = arith.sitofp %384 : vector<4x1xi32> to vector<4x1xf32>
    %386 = vector.broadcast %385 : vector<4x1xf32> to vector<4x128xf32>
    %387 = arith.mulf %364, %386 : vector<4x128xf32>
    %c0_162 = arith.constant 0 : index
    %c0_163 = arith.constant 0 : index
    %c0_164 = arith.constant 0 : index
    %388 = vector.load %arg7[%c0_162, %c0_163, %c0_164] : memref<1x384x128xbf16, #tpu.memory_space<vmem>>, vector<1x384x128xbf16>
    %389 = vector.shape_cast %388 : vector<1x384x128xbf16> to vector<384x128xbf16>
    %390 = arith.truncf %387 : vector<4x128xf32> to vector<4x128xbf16>
    %391 = vector.extract_strided_slice %389 {offsets = [0, 0], sizes = [128, 128], strides = [1, 1]} : vector<384x128xbf16> to vector<128x128xbf16>
    %cst_165 = arith.constant dense<0.000000e+00> : vector<4x128xf32>
    %392 = tpu.matmul %390, %391, %cst_165 {dimension_numbers = #tpu.dot_dimension_numbers<[1], [0], [0], [1], [0, 0, 1, 1], [], []>} : vector<4x128xbf16>, vector<128x128xbf16>, vector<4x128xf32> -> vector<4x128xf32>
    %393 = arith.truncf %360 : vector<4x128xf32> to vector<4x128xbf16>
    %394 = vector.extract_strided_slice %389 {offsets = [128, 0], sizes = [128, 128], strides = [1, 1]} : vector<384x128xbf16> to vector<128x128xbf16>
    %cst_166 = arith.constant dense<0.000000e+00> : vector<4x128xf32>
    %395 = tpu.matmul %393, %394, %cst_166 {dimension_numbers = #tpu.dot_dimension_numbers<[1], [0], [0], [1], [0, 0, 1, 1], [], []>} : vector<4x128xbf16>, vector<128x128xbf16>, vector<4x128xf32> -> vector<4x128xf32>
    %396 = arith.addf %392, %395 : vector<4x128xf32>
    %397 = arith.truncf %361 : vector<4x128xf32> to vector<4x128xbf16>
    %398 = vector.extract_strided_slice %389 {offsets = [256, 0], sizes = [128, 128], strides = [1, 1]} : vector<384x128xbf16> to vector<128x128xbf16>
    %cst_167 = arith.constant dense<0.000000e+00> : vector<4x128xf32>
    %399 = tpu.matmul %397, %398, %cst_167 {dimension_numbers = #tpu.dot_dimension_numbers<[1], [0], [0], [1], [0, 0, 1, 1], [], []>} : vector<4x128xbf16>, vector<128x128xbf16>, vector<4x128xf32> -> vector<4x128xf32>
    %400 = arith.addf %396, %399 : vector<4x128xf32>
    %cst_168 = arith.constant dense<0.000000e+00> : vector<128xf32>
    %401 = vector.multi_reduction <add>, %400, %cst_168 [0] : vector<4x128xf32> to vector<128xf32>
    %402 = vector.shape_cast %401 : vector<128xf32> to vector<1x128xf32>
    %cst_169 = arith.constant 2.500000e-01 : f32
    %403 = vector.broadcast %cst_169 : f32 to vector<1x128xf32>
    %404 = arith.mulf %402, %403 : vector<1x128xf32>
    %405 = arith.mulf %400, %400 : vector<4x128xf32>
    %cst_170 = arith.constant dense<0.000000e+00> : vector<128xf32>
    %406 = vector.multi_reduction <add>, %405, %cst_170 [0] : vector<4x128xf32> to vector<128xf32>
    %407 = vector.shape_cast %406 : vector<128xf32> to vector<1x128xf32>
    %cst_171 = arith.constant 2.500000e-01 : f32
    %408 = vector.broadcast %cst_171 : f32 to vector<1x128xf32>
    %409 = arith.mulf %407, %408 : vector<1x128xf32>
    %410 = arith.mulf %404, %404 : vector<1x128xf32>
    %411 = arith.subf %409, %410 : vector<1x128xf32>
    %cst_172 = arith.constant 0.000000e+00 : f32
    %412 = vector.broadcast %cst_172 : f32 to vector<1x128xf32>
    %413 = arith.maximumf %411, %412 : vector<1x128xf32>
    %c0_173 = arith.constant 0 : index
    %c5 = arith.constant 5 : index
    %c0_174 = arith.constant 0 : index
    %414 = vector.load %arg8[%c0_173, %c5, %c0_174] : memref<1x6x128xf32, #tpu.memory_space<vmem>>, vector<1x1x128xf32>
    %415 = vector.shape_cast %414 : vector<1x1x128xf32> to vector<1x128xf32>
    %c0_175 = arith.constant 0 : index
    %c5_176 = arith.constant 5 : index
    %c0_177 = arith.constant 0 : index
    %416 = vector.load %arg9[%c0_175, %c5_176, %c0_177] : memref<1x6x128xf32, #tpu.memory_space<vmem>>, vector<1x1x128xf32>
    %417 = vector.shape_cast %416 : vector<1x1x128xf32> to vector<1x128xf32>
    %cst_178 = arith.constant 9.99999974E-6 : f32
    %418 = vector.broadcast %cst_178 : f32 to vector<1x128xf32>
    %419 = arith.addf %413, %418 : vector<1x128xf32>
    %420 = math.rsqrt %419 : vector<1x128xf32>
    %421 = arith.mulf %420, %415 : vector<1x128xf32>
    %422 = vector.broadcast %404 : vector<1x128xf32> to vector<4x128xf32>
    %423 = arith.subf %400, %422 : vector<4x128xf32>
    %424 = vector.broadcast %421 : vector<1x128xf32> to vector<4x128xf32>
    %425 = arith.mulf %423, %424 : vector<4x128xf32>
    %426 = vector.broadcast %417 : vector<1x128xf32> to vector<4x128xf32>
    %427 = arith.addf %425, %426 : vector<4x128xf32>
    %cst_179 = arith.constant 0.000000e+00 : f32
    %428 = vector.broadcast %cst_179 : f32 to vector<4x128xf32>
    %429 = arith.maximumf %427, %428 : vector<4x128xf32>
    %c0_180 = arith.constant 0 : index
    %c0_181 = arith.constant 0 : index
    %430 = vector.load %arg22[%c0_180, %c0_181] : memref<128x128xf32, #tpu.memory_space<vmem>>, vector<4x128xf32>
    tpu.vector_store %arg22[%c0_180, %c0_181], %429 {strides = array<i32>} : memref<128x128xf32, #tpu.memory_space<vmem>>, vector<4x128xf32>,
    %c0_182 = arith.constant 0 : index
    %c0_183 = arith.constant 0 : index
    %c0_184 = arith.constant 0 : index
    %431 = vector.load %arg10[%c0_182, %c0_183, %c0_184] : memref<1x128x384xbf16, #tpu.memory_space<vmem>>, vector<1x128x384xbf16>
    %432 = vector.shape_cast %431 : vector<1x128x384xbf16> to vector<128x384xbf16>
    %c0_185 = arith.constant 0 : index
    %c0_186 = arith.constant 0 : index
    %c0_187 = arith.constant 0 : index
    %433 = vector.load %arg11[%c0_185, %c0_186, %c0_187] : memref<1x128x384xbf16, #tpu.memory_space<vmem>>, vector<1x128x384xbf16>
    %434 = vector.shape_cast %433 : vector<1x128x384xbf16> to vector<128x384xbf16>
    %c0_188 = arith.constant 0 : index
    %c0_189 = arith.constant 0 : index
    %c0_190 = arith.constant 0 : index
    %435 = vector.load %arg12[%c0_188, %c0_189, %c0_190] : memref<1x1x384xf32, #tpu.memory_space<vmem>>, vector<1x1x384xf32>
    %436 = vector.shape_cast %435 : vector<1x1x384xf32> to vector<1x384xf32>
    %c0_191 = arith.constant 0 : index
    %c0_192 = arith.constant 0 : index
    %c0_193 = arith.constant 0 : index
    %437 = vector.load %arg13[%c0_191, %c0_192, %c0_193] : memref<1x1x384xf32, #tpu.memory_space<vmem>>, vector<1x1x384xf32>
    %438 = vector.shape_cast %437 : vector<1x1x384xf32> to vector<1x384xf32>
    %cst_194 = arith.constant 0.000000e+00 : f32
    %439 = vector.broadcast %cst_194 : f32 to vector<2x128xf32>
    %c0_195 = arith.constant 0 : index
    %c0_196 = arith.constant 0 : index
    %440 = tpu.strided_load %arg22[%c0_195, %c0_196] {strides = array<i32: 2, 1>} : memref<128x128xf32, #tpu.memory_space<vmem>>, vector<2x128xf32>
    %441 = arith.truncf %440 : vector<2x128xf32> to vector<2x128xbf16>
    %cst_197 = arith.constant dense<0.000000e+00> : vector<2x384xf32>
    %442 = tpu.matmul %441, %432, %cst_197 {dimension_numbers = #tpu.dot_dimension_numbers<[1], [0], [0], [1], [0, 0, 1, 1], [], []>} : vector<2x128xbf16>, vector<128x384xbf16>, vector<2x384xf32> -> vector<2x384xf32>
    %443 = vector.broadcast %436 : vector<1x384xf32> to vector<2x384xf32>
    %444 = arith.addf %442, %443 : vector<2x384xf32>
    %445 = arith.truncf %439 : vector<2x128xf32> to vector<2x128xbf16>
    %cst_198 = arith.constant dense<0.000000e+00> : vector<2x384xf32>
    %446 = tpu.matmul %445, %434, %cst_198 {dimension_numbers = #tpu.dot_dimension_numbers<[1], [0], [0], [1], [0, 0, 1, 1], [], []>} : vector<2x128xbf16>, vector<128x384xbf16>, vector<2x384xf32> -> vector<2x384xf32>
    %447 = vector.broadcast %438 : vector<1x384xf32> to vector<2x384xf32>
    %448 = arith.addf %446, %447 : vector<2x384xf32>
    %449 = vector.extract_strided_slice %444 {offsets = [0, 0], sizes = [2, 128], strides = [1, 1]} : vector<2x384xf32> to vector<2x128xf32>
    %450 = vector.extract_strided_slice %448 {offsets = [0, 0], sizes = [2, 128], strides = [1, 1]} : vector<2x384xf32> to vector<2x128xf32>
    %451 = arith.addf %449, %450 : vector<2x128xf32>
    %452 = arith.negf %451 : vector<2x128xf32>
    %453 = math.exp %452 : vector<2x128xf32>
    %cst_199 = arith.constant 1.000000e+00 : f32
    %454 = vector.broadcast %cst_199 : f32 to vector<2x128xf32>
    %455 = arith.addf %454, %453 : vector<2x128xf32>
    %456 = arith.divf %454, %455 : vector<2x128xf32>
    %457 = vector.extract_strided_slice %444 {offsets = [0, 128], sizes = [2, 128], strides = [1, 1]} : vector<2x384xf32> to vector<2x128xf32>
    %458 = vector.extract_strided_slice %448 {offsets = [0, 128], sizes = [2, 128], strides = [1, 1]} : vector<2x384xf32> to vector<2x128xf32>
    %459 = arith.addf %457, %458 : vector<2x128xf32>
    %460 = arith.negf %459 : vector<2x128xf32>
    %461 = math.exp %460 : vector<2x128xf32>
    %cst_200 = arith.constant 1.000000e+00 : f32
    %462 = vector.broadcast %cst_200 : f32 to vector<2x128xf32>
    %463 = arith.addf %462, %461 : vector<2x128xf32>
    %464 = arith.divf %462, %463 : vector<2x128xf32>
    %465 = vector.extract_strided_slice %444 {offsets = [0, 256], sizes = [2, 128], strides = [1, 1]} : vector<2x384xf32> to vector<2x128xf32>
    %466 = vector.extract_strided_slice %448 {offsets = [0, 256], sizes = [2, 128], strides = [1, 1]} : vector<2x384xf32> to vector<2x128xf32>
    %467 = arith.mulf %456, %466 : vector<2x128xf32>
    %468 = arith.addf %465, %467 : vector<2x128xf32>
    %469 = math.tanh %468 : vector<2x128xf32>
    %cst_201 = arith.constant 1.000000e+00 : f32
    %470 = vector.broadcast %cst_201 : f32 to vector<2x128xf32>
    %471 = arith.subf %470, %464 : vector<2x128xf32>
    %472 = arith.mulf %471, %469 : vector<2x128xf32>
    %473 = arith.mulf %464, %439 : vector<2x128xf32>
    %474 = arith.addf %472, %473 : vector<2x128xf32>
    %c1_202 = arith.constant 1 : index
    %c0_203 = arith.constant 0 : index
    %475 = tpu.strided_load %arg22[%c1_202, %c0_203] {strides = array<i32: 2, 1>} : memref<128x128xf32, #tpu.memory_space<vmem>>, vector<2x128xf32>
    %476 = arith.truncf %475 : vector<2x128xf32> to vector<2x128xbf16>
    %cst_204 = arith.constant dense<0.000000e+00> : vector<2x384xf32>
    %477 = tpu.matmul %476, %432, %cst_204 {dimension_numbers = #tpu.dot_dimension_numbers<[1], [0], [0], [1], [0, 0, 1, 1], [], []>} : vector<2x128xbf16>, vector<128x384xbf16>, vector<2x384xf32> -> vector<2x384xf32>
    %478 = vector.broadcast %436 : vector<1x384xf32> to vector<2x384xf32>
    %479 = arith.addf %477, %478 : vector<2x384xf32>
    %480 = arith.truncf %474 : vector<2x128xf32> to vector<2x128xbf16>
    %cst_205 = arith.constant dense<0.000000e+00> : vector<2x384xf32>
    %481 = tpu.matmul %480, %434, %cst_205 {dimension_numbers = #tpu.dot_dimension_numbers<[1], [0], [0], [1], [0, 0, 1, 1], [], []>} : vector<2x128xbf16>, vector<128x384xbf16>, vector<2x384xf32> -> vector<2x384xf32>
    %482 = vector.broadcast %438 : vector<1x384xf32> to vector<2x384xf32>
    %483 = arith.addf %481, %482 : vector<2x384xf32>
    %484 = vector.extract_strided_slice %479 {offsets = [0, 0], sizes = [2, 128], strides = [1, 1]} : vector<2x384xf32> to vector<2x128xf32>
    %485 = vector.extract_strided_slice %483 {offsets = [0, 0], sizes = [2, 128], strides = [1, 1]} : vector<2x384xf32> to vector<2x128xf32>
    %486 = arith.addf %484, %485 : vector<2x128xf32>
    %487 = arith.negf %486 : vector<2x128xf32>
    %488 = math.exp %487 : vector<2x128xf32>
    %cst_206 = arith.constant 1.000000e+00 : f32
    %489 = vector.broadcast %cst_206 : f32 to vector<2x128xf32>
    %490 = arith.addf %489, %488 : vector<2x128xf32>
    %491 = arith.divf %489, %490 : vector<2x128xf32>
    %492 = vector.extract_strided_slice %479 {offsets = [0, 128], sizes = [2, 128], strides = [1, 1]} : vector<2x384xf32> to vector<2x128xf32>
    %493 = vector.extract_strided_slice %483 {offsets = [0, 128], sizes = [2, 128], strides = [1, 1]} : vector<2x384xf32> to vector<2x128xf32>
    %494 = arith.addf %492, %493 : vector<2x128xf32>
    %495 = arith.negf %494 : vector<2x128xf32>
    %496 = math.exp %495 : vector<2x128xf32>
    %cst_207 = arith.constant 1.000000e+00 : f32
    %497 = vector.broadcast %cst_207 : f32 to vector<2x128xf32>
    %498 = arith.addf %497, %496 : vector<2x128xf32>
    %499 = arith.divf %497, %498 : vector<2x128xf32>
    %500 = vector.extract_strided_slice %479 {offsets = [0, 256], sizes = [2, 128], strides = [1, 1]} : vector<2x384xf32> to vector<2x128xf32>
    %501 = vector.extract_strided_slice %483 {offsets = [0, 256], sizes = [2, 128], strides = [1, 1]} : vector<2x384xf32> to vector<2x128xf32>
    %502 = arith.mulf %491, %501 : vector<2x128xf32>
    %503 = arith.addf %500, %502 : vector<2x128xf32>
    %504 = math.tanh %503 : vector<2x128xf32>
    %cst_208 = arith.constant 1.000000e+00 : f32
    %505 = vector.broadcast %cst_208 : f32 to vector<2x128xf32>
    %506 = arith.subf %505, %499 : vector<2x128xf32>
    %507 = arith.mulf %506, %504 : vector<2x128xf32>
    %508 = arith.mulf %499, %474 : vector<2x128xf32>
    %509 = arith.addf %507, %508 : vector<2x128xf32>
    %cst_209 = arith.constant 0.000000e+00 : f32
    %510 = vector.broadcast %cst_209 : f32 to vector<1x1xf32>
    %511 = tpu.iota {dimensions = array<i32: 1>} : vector<2x16xi32>
    %c0_210 = arith.constant 0 : index
    %c0_211 = arith.constant 0 : index
    %c0_212 = arith.constant 0 : index
    %512 = vector.load %arg16[%c0_210, %c0_211, %c0_212] : memref<1x1x16xf32, #tpu.memory_space<vmem>>, vector<1x1x16xf32>
    %513 = vector.shape_cast %512 : vector<1x1x16xf32> to vector<1x16xf32>
    %c0_213 = arith.constant 0 : index
    %c0_214 = arith.constant 0 : index
    %c0_215 = arith.constant 0 : index
    %c0_216 = arith.constant 0 : index
    %514 = vector.load %arg14[%c0_213, %c0_214, %c0_215, %c0_216] : memref<1x2x16x128xf32, #tpu.memory_space<vmem>>, vector<1x1x16x128xf32>
    %515 = vector.shape_cast %514 : vector<1x1x16x128xf32> to vector<16x128xf32>
    %cst_217 = arith.constant dense<0.000000e+00> : vector<2x16xf32>
    %516 = tpu.matmul %509, %515, %cst_217 {dimension_numbers = #tpu.dot_dimension_numbers<[1], [1], [0], [0], [0, 0, 1, 0], [], []>} : vector<2x128xf32>, vector<16x128xf32>, vector<2x16xf32> -> vector<2x16xf32>
    %517 = arith.mulf %509, %509 : vector<2x128xf32>
    %cst_218 = arith.constant dense<0.000000e+00> : vector<2xf32>
    %518 = vector.multi_reduction <add>, %517, %cst_218 [1] : vector<2x128xf32> to vector<2xf32>
    %519 = vector.shape_cast %518 : vector<2xf32> to vector<2x1xf32>
    %cst_219 = arith.constant 2.000000e+00 : f32
    %520 = vector.broadcast %cst_219 : f32 to vector<2x16xf32>
    %521 = arith.mulf %520, %516 : vector<2x16xf32>
    %522 = vector.broadcast %519 : vector<2x1xf32> to vector<2x16xf32>
    %523 = arith.subf %522, %521 : vector<2x16xf32>
    %c0_220 = arith.constant 0 : index
    %c0_221 = arith.constant 0 : index
    %c0_222 = arith.constant 0 : index
    %c0_223 = arith.constant 0 : index
    %524 = vector.load %arg15[%c0_220, %c0_221, %c0_222, %c0_223] : memref<1x2x1x16xf32, #tpu.memory_space<vmem>>, vector<1x1x1x16xf32>
    %525 = vector.shape_cast %524 : vector<1x1x1x16xf32> to vector<1x16xf32>
    %526 = vector.broadcast %525 : vector<1x16xf32> to vector<2x16xf32>
    %527 = arith.addf %523, %526 : vector<2x16xf32>
    %cst_224 = arith.constant dense<0x7F800000> : vector<2xf32>
    %528 = vector.multi_reduction <minimumf>, %527, %cst_224 [1] : vector<2x16xf32> to vector<2xf32>
    %529 = vector.shape_cast %528 : vector<2xf32> to vector<2x1xf32>
    %530 = vector.broadcast %529 : vector<2x1xf32> to vector<2x16xf32>
    %531 = arith.cmpf ole, %527, %530 : vector<2x16xf32>
    %c16_i32_225 = arith.constant 16 : i32
    %532 = vector.broadcast %c16_i32_225 : i32 to vector<2x16xi32>
    %533 = arith.select %531, %511, %532 : vector<2x16xi1>, vector<2x16xi32>
    %cst_226 = arith.constant dense<2147483647> : vector<2xi32>
    %534 = vector.multi_reduction <minsi>, %533, %cst_226 [1] : vector<2x16xi32> to vector<2xi32>
    %535 = vector.shape_cast %534 : vector<2xi32> to vector<2x1xi32>
    %536 = vector.broadcast %535 : vector<2x1xi32> to vector<2x16xi32>
    %537 = arith.cmpi eq, %511, %536 : vector<2x16xi32>
    %538 = arith.extui %537 : vector<2x16xi1> to vector<2x16xi32>
    %539 = arith.sitofp %538 : vector<2x16xi32> to vector<2x16xf32>
    %cst_227 = arith.constant dense<0.000000e+00> : vector<2x128xf32>
    %540 = tpu.matmul %539, %515, %cst_227 {dimension_numbers = #tpu.dot_dimension_numbers<[1], [0], [0], [1], [0, 0, 1, 1], [], []>} : vector<2x16xf32>, vector<16x128xf32>, vector<2x128xf32> -> vector<2x128xf32>
    %541 = arith.subf %509, %540 : vector<2x128xf32>
    %542 = arith.mulf %541, %541 : vector<2x128xf32>
    %cst_228 = arith.constant dense<0.000000e+00> : vector<2xf32>
    %543 = vector.multi_reduction <add>, %542, %cst_228 [1] : vector<2x128xf32> to vector<2xf32>
    %544 = vector.shape_cast %543 : vector<2xf32> to vector<2x1xf32>
    %cst_229 = arith.constant dense<0.000000e+00> : vector<1xf32>
    %545 = vector.multi_reduction <add>, %544, %cst_229 [0] : vector<2x1xf32> to vector<1xf32>
    %546 = vector.shape_cast %545 : vector<1xf32> to vector<1x1xf32>
    %cst_230 = arith.constant 1.200000e+00 : f32
    %547 = vector.broadcast %cst_230 : f32 to vector<1x1xf32>
    %548 = arith.mulf %547, %546 : vector<1x1xf32>
    %cst_231 = arith.constant 2.560000e+02 : f32
    %549 = vector.broadcast %cst_231 : f32 to vector<1x1xf32>
    %550 = arith.divf %548, %549 : vector<1x1xf32>
    %551 = arith.addf %510, %550 : vector<1x1xf32>
    %cst_232 = arith.constant dense<0.000000e+00> : vector<16xf32>
    %552 = vector.multi_reduction <add>, %539, %cst_232 [0] : vector<2x16xf32> to vector<16xf32>
    %553 = vector.shape_cast %552 : vector<16xf32> to vector<1x16xf32>
    %cst_233 = arith.constant 2.000000e+00 : f32
    %554 = vector.broadcast %cst_233 : f32 to vector<1x16xf32>
    %555 = arith.divf %553, %554 : vector<1x16xf32>
    %cst_234 = arith.constant 1.000000e-10 : f32
    %556 = vector.broadcast %cst_234 : f32 to vector<1x16xf32>
    %557 = arith.addf %555, %556 : vector<1x16xf32>
    %558 = math.log %557 : vector<1x16xf32>
    %559 = arith.mulf %555, %558 : vector<1x16xf32>
    %cst_235 = arith.constant dense<0.000000e+00> : vector<1xf32>
    %560 = vector.multi_reduction <add>, %559, %cst_235 [1] : vector<1x16xf32> to vector<1xf32>
    %561 = vector.shape_cast %560 : vector<1xf32> to vector<1x1xf32>
    %cst_236 = arith.constant 0.000000e+00 : f32
    %562 = vector.broadcast %cst_236 : f32 to vector<1x1xf32>
    %563 = arith.subf %562, %561 : vector<1x1xf32>
    %564 = math.exp %563 : vector<1x1xf32>
    %c0_237 = arith.constant 0 : index
    %c0_238 = arith.constant 0 : index
    %c0_239 = arith.constant 0 : index
    %565 = vector.load %arg20[%c0_237, %c0_238, %c0_239] : memref<1x1x2xf32, #tpu.memory_space<vmem>>, vector<1x1x1xf32>
    %566 = vector.shape_cast %565 : vector<1x1x1xf32> to vector<1x1xf32>
    %567 = vector.shape_cast %564 : vector<1x1xf32> to vector<1x1x1xf32>
    tpu.vector_store %arg20[%c0_237, %c0_238, %c0_239], %567 {strides = array<i32>} : memref<1x1x2xf32, #tpu.memory_space<vmem>>, vector<1x1x1xf32>,
    %c0_240 = arith.constant 0 : index
    %c0_241 = arith.constant 0 : index
    %c0_242 = arith.constant 0 : index
    %568 = vector.load %arg17[%c0_240, %c0_241, %c0_242] : memref<1x2x256xf32, #tpu.memory_space<vmem>>, vector<1x2x128xf32>
    %569 = vector.shape_cast %568 : vector<1x2x128xf32> to vector<2x128xf32>
    %570 = vector.shape_cast %540 : vector<2x128xf32> to vector<1x2x128xf32>
    tpu.vector_store %arg17[%c0_240, %c0_241, %c0_242], %570 {strides = array<i32>} : memref<1x2x256xf32, #tpu.memory_space<vmem>>, vector<1x2x128xf32>,
    %571 = vector.broadcast %513 : vector<1x16xf32> to vector<2x16xf32>
    %572 = arith.mulf %539, %571 : vector<2x16xf32>
    %cst_243 = arith.constant dense<0.000000e+00> : vector<2xf32>
    %573 = vector.multi_reduction <add>, %572, %cst_243 [1] : vector<2x16xf32> to vector<2xf32>
    %574 = vector.shape_cast %573 : vector<2xf32> to vector<2x1xf32>
    %575 = arith.fptosi %574 : vector<2x1xf32> to vector<2x1xi32>
    %c0_244 = arith.constant 0 : index
    %c0_245 = arith.constant 0 : index
    %c0_246 = arith.constant 0 : index
    %576 = vector.load %arg19[%c0_244, %c0_245, %c0_246] : memref<1x2x1xi32, #tpu.memory_space<vmem>>, vector<1x2x1xi32>
    %577 = vector.shape_cast %576 : vector<1x2x1xi32> to vector<2x1xi32>
    %578 = vector.shape_cast %575 : vector<2x1xi32> to vector<1x2x1xi32>
    tpu.vector_store %arg19[%c0_244, %c0_245, %c0_246], %578 {strides = array<i32>} : memref<1x2x1xi32, #tpu.memory_space<vmem>>, vector<1x2x1xi32>,
    %c0_247 = arith.constant 0 : index
    %c1_248 = arith.constant 1 : index
    %c0_249 = arith.constant 0 : index
    %c0_250 = arith.constant 0 : index
    %579 = vector.load %arg14[%c0_247, %c1_248, %c0_249, %c0_250] : memref<1x2x16x128xf32, #tpu.memory_space<vmem>>, vector<1x1x16x128xf32>
    %580 = vector.shape_cast %579 : vector<1x1x16x128xf32> to vector<16x128xf32>
    %cst_251 = arith.constant dense<0.000000e+00> : vector<2x16xf32>
    %581 = tpu.matmul %541, %580, %cst_251 {dimension_numbers = #tpu.dot_dimension_numbers<[1], [1], [0], [0], [0, 0, 1, 0], [], []>} : vector<2x128xf32>, vector<16x128xf32>, vector<2x16xf32> -> vector<2x16xf32>
    %582 = arith.mulf %541, %541 : vector<2x128xf32>
    %cst_252 = arith.constant dense<0.000000e+00> : vector<2xf32>
    %583 = vector.multi_reduction <add>, %582, %cst_252 [1] : vector<2x128xf32> to vector<2xf32>
    %584 = vector.shape_cast %583 : vector<2xf32> to vector<2x1xf32>
    %cst_253 = arith.constant 2.000000e+00 : f32
    %585 = vector.broadcast %cst_253 : f32 to vector<2x16xf32>
    %586 = arith.mulf %585, %581 : vector<2x16xf32>
    %587 = vector.broadcast %584 : vector<2x1xf32> to vector<2x16xf32>
    %588 = arith.subf %587, %586 : vector<2x16xf32>
    %c0_254 = arith.constant 0 : index
    %c1_255 = arith.constant 1 : index
    %c0_256 = arith.constant 0 : index
    %c0_257 = arith.constant 0 : index
    %589 = vector.load %arg15[%c0_254, %c1_255, %c0_256, %c0_257] : memref<1x2x1x16xf32, #tpu.memory_space<vmem>>, vector<1x1x1x16xf32>
    %590 = vector.shape_cast %589 : vector<1x1x1x16xf32> to vector<1x16xf32>
    %591 = vector.broadcast %590 : vector<1x16xf32> to vector<2x16xf32>
    %592 = arith.addf %588, %591 : vector<2x16xf32>
    %cst_258 = arith.constant dense<0x7F800000> : vector<2xf32>
    %593 = vector.multi_reduction <minimumf>, %592, %cst_258 [1] : vector<2x16xf32> to vector<2xf32>
    %594 = vector.shape_cast %593 : vector<2xf32> to vector<2x1xf32>
    %595 = vector.broadcast %594 : vector<2x1xf32> to vector<2x16xf32>
    %596 = arith.cmpf ole, %592, %595 : vector<2x16xf32>
    %c16_i32_259 = arith.constant 16 : i32
    %597 = vector.broadcast %c16_i32_259 : i32 to vector<2x16xi32>
    %598 = arith.select %596, %511, %597 : vector<2x16xi1>, vector<2x16xi32>
    %cst_260 = arith.constant dense<2147483647> : vector<2xi32>
    %599 = vector.multi_reduction <minsi>, %598, %cst_260 [1] : vector<2x16xi32> to vector<2xi32>
    %600 = vector.shape_cast %599 : vector<2xi32> to vector<2x1xi32>
    %601 = vector.broadcast %600 : vector<2x1xi32> to vector<2x16xi32>
    %602 = arith.cmpi eq, %511, %601 : vector<2x16xi32>
    %603 = arith.extui %602 : vector<2x16xi1> to vector<2x16xi32>
    %604 = arith.sitofp %603 : vector<2x16xi32> to vector<2x16xf32>
    %cst_261 = arith.constant dense<0.000000e+00> : vector<2x128xf32>
    %605 = tpu.matmul %604, %580, %cst_261 {dimension_numbers = #tpu.dot_dimension_numbers<[1], [0], [0], [1], [0, 0, 1, 1], [], []>} : vector<2x16xf32>, vector<16x128xf32>, vector<2x128xf32> -> vector<2x128xf32>
    %606 = arith.subf %541, %605 : vector<2x128xf32>
    %607 = arith.mulf %606, %606 : vector<2x128xf32>
    %cst_262 = arith.constant dense<0.000000e+00> : vector<2xf32>
    %608 = vector.multi_reduction <add>, %607, %cst_262 [1] : vector<2x128xf32> to vector<2xf32>
    %609 = vector.shape_cast %608 : vector<2xf32> to vector<2x1xf32>
    %cst_263 = arith.constant dense<0.000000e+00> : vector<1xf32>
    %610 = vector.multi_reduction <add>, %609, %cst_263 [0] : vector<2x1xf32> to vector<1xf32>
    %611 = vector.shape_cast %610 : vector<1xf32> to vector<1x1xf32>
    %cst_264 = arith.constant 1.200000e+00 : f32
    %612 = vector.broadcast %cst_264 : f32 to vector<1x1xf32>
    %613 = arith.mulf %612, %611 : vector<1x1xf32>
    %cst_265 = arith.constant 2.560000e+02 : f32
    %614 = vector.broadcast %cst_265 : f32 to vector<1x1xf32>
    %615 = arith.divf %613, %614 : vector<1x1xf32>
    %616 = arith.addf %551, %615 : vector<1x1xf32>
    %cst_266 = arith.constant dense<0.000000e+00> : vector<16xf32>
    %617 = vector.multi_reduction <add>, %604, %cst_266 [0] : vector<2x16xf32> to vector<16xf32>
    %618 = vector.shape_cast %617 : vector<16xf32> to vector<1x16xf32>
    %cst_267 = arith.constant 2.000000e+00 : f32
    %619 = vector.broadcast %cst_267 : f32 to vector<1x16xf32>
    %620 = arith.divf %618, %619 : vector<1x16xf32>
    %cst_268 = arith.constant 1.000000e-10 : f32
    %621 = vector.broadcast %cst_268 : f32 to vector<1x16xf32>
    %622 = arith.addf %620, %621 : vector<1x16xf32>
    %623 = math.log %622 : vector<1x16xf32>
    %624 = arith.mulf %620, %623 : vector<1x16xf32>
    %cst_269 = arith.constant dense<0.000000e+00> : vector<1xf32>
    %625 = vector.multi_reduction <add>, %624, %cst_269 [1] : vector<1x16xf32> to vector<1xf32>
    %626 = vector.shape_cast %625 : vector<1xf32> to vector<1x1xf32>
    %cst_270 = arith.constant 0.000000e+00 : f32
    %627 = vector.broadcast %cst_270 : f32 to vector<1x1xf32>
    %628 = arith.subf %627, %626 : vector<1x1xf32>
    %629 = math.exp %628 : vector<1x1xf32>
    %c0_271 = arith.constant 0 : index
    %c0_272 = arith.constant 0 : index
    %c1_273 = arith.constant 1 : index
    %630 = vector.load %arg20[%c0_271, %c0_272, %c1_273] : memref<1x1x2xf32, #tpu.memory_space<vmem>>, vector<1x1x1xf32>
    %631 = vector.shape_cast %630 : vector<1x1x1xf32> to vector<1x1xf32>
    %632 = vector.shape_cast %629 : vector<1x1xf32> to vector<1x1x1xf32>
    tpu.vector_store %arg20[%c0_271, %c0_272, %c1_273], %632 {strides = array<i32>} : memref<1x1x2xf32, #tpu.memory_space<vmem>>, vector<1x1x1xf32>,
    %c0_274 = arith.constant 0 : index
    %c0_275 = arith.constant 0 : index
    %c128 = arith.constant 128 : index
    %633 = vector.load %arg17[%c0_274, %c0_275, %c128] : memref<1x2x256xf32, #tpu.memory_space<vmem>>, vector<1x2x128xf32>
    %634 = vector.shape_cast %633 : vector<1x2x128xf32> to vector<2x128xf32>
    %635 = vector.shape_cast %605 : vector<2x128xf32> to vector<1x2x128xf32>
    tpu.vector_store %arg17[%c0_274, %c0_275, %c128], %635 {strides = array<i32>} : memref<1x2x256xf32, #tpu.memory_space<vmem>>, vector<1x2x128xf32>,
    %c0_276 = arith.constant 0 : index
    %c0_277 = arith.constant 0 : index
    %c0_278 = arith.constant 0 : index
    %636 = vector.load %arg18[%c0_276, %c0_277, %c0_278] : memref<1x1x1xf32, #tpu.memory_space<vmem>>, vector<1x1x1xf32>
    %637 = vector.shape_cast %636 : vector<1x1x1xf32> to vector<1x1xf32>
    %638 = vector.shape_cast %616 : vector<1x1xf32> to vector<1x1x1xf32>
    tpu.vector_store %arg18[%c0_276, %c0_277, %c0_278], %638 {strides = array<i32>} : memref<1x1x1xf32, #tpu.memory_space<vmem>>, vector<1x1x1xf32>,
    return
  }
  func.func @transform_0(%arg0: i32) -> (i32, i32, i32) {
    %c0_i32 = arith.constant 0 : i32
    %c0_i32_0 = arith.constant 0 : i32
    %c0_i32_1 = arith.constant 0 : i32
    return %arg0, %c0_i32, %c0_i32_0 : i32, i32, i32
  }
  func.func @transform_1(%arg0: i32) -> (i32, i32, i32) {
    %c0_i32 = arith.constant 0 : i32
    %c0_i32_0 = arith.constant 0 : i32
    %c0_i32_1 = arith.constant 0 : i32
    return %arg0, %c0_i32, %c0_i32_0 : i32, i32, i32
  }
  func.func @transform_2(%arg0: i32) -> (i32, i32, i32) {
    %c0_i32 = arith.constant 0 : i32
    %c0_i32_0 = arith.constant 0 : i32
    %c0_i32_1 = arith.constant 0 : i32
    return %arg0, %c0_i32, %c0_i32_0 : i32, i32, i32
  }
  func.func @transform_3(%arg0: i32) -> (i32, i32, i32) {
    %c0_i32 = arith.constant 0 : i32
    %c0_i32_0 = arith.constant 0 : i32
    %c0_i32_1 = arith.constant 0 : i32
    return %arg0, %c0_i32, %c0_i32_0 : i32, i32, i32
  }
  func.func @transform_4(%arg0: i32) -> (i32, i32, i32) {
    %c0_i32 = arith.constant 0 : i32
    %c0_i32_0 = arith.constant 0 : i32
    %c0_i32_1 = arith.constant 0 : i32
    return %arg0, %c0_i32, %c0_i32_0 : i32, i32, i32
  }
  func.func @transform_5(%arg0: i32) -> (i32, i32, i32) {
    %c0_i32 = arith.constant 0 : i32
    %c0_i32_0 = arith.constant 0 : i32
    %c0_i32_1 = arith.constant 0 : i32
    return %arg0, %c0_i32, %c0_i32_0 : i32, i32, i32
  }
  func.func @transform_6(%arg0: i32) -> (i32, i32, i32) {
    %c0_i32 = arith.constant 0 : i32
    %c0_i32_0 = arith.constant 0 : i32
    %c0_i32_1 = arith.constant 0 : i32
    return %arg0, %c0_i32, %c0_i32_0 : i32, i32, i32
  }
  func.func @transform_7(%arg0: i32) -> (i32, i32, i32) {
    %c0_i32 = arith.constant 0 : i32
    %c0_i32_0 = arith.constant 0 : i32
    %c0_i32_1 = arith.constant 0 : i32
    return %arg0, %c0_i32, %c0_i32_0 : i32, i32, i32
  }
  func.func @transform_8(%arg0: i32) -> (i32, i32, i32) {
    %c0_i32 = arith.constant 0 : i32
    %c0_i32_0 = arith.constant 0 : i32
    %c0_i32_1 = arith.constant 0 : i32
    return %arg0, %c0_i32, %c0_i32_0 : i32, i32, i32
  }
  func.func @transform_9(%arg0: i32) -> (i32, i32, i32) {
    %c0_i32 = arith.constant 0 : i32
    %c0_i32_0 = arith.constant 0 : i32
    %c0_i32_1 = arith.constant 0 : i32
    return %arg0, %c0_i32, %c0_i32_0 : i32, i32, i32
  }
  func.func @transform_10(%arg0: i32) -> (i32, i32, i32) {
    %c0_i32 = arith.constant 0 : i32
    %c0_i32_0 = arith.constant 0 : i32
    %c0_i32_1 = arith.constant 0 : i32
    return %arg0, %c0_i32, %c0_i32_0 : i32, i32, i32
  }
  func.func @transform_11(%arg0: i32) -> (i32, i32, i32) {
    %c0_i32 = arith.constant 0 : i32
    %c0_i32_0 = arith.constant 0 : i32
    %c0_i32_1 = arith.constant 0 : i32
    return %arg0, %c0_i32, %c0_i32_0 : i32, i32, i32
  }
  func.func @transform_12(%arg0: i32) -> (i32, i32, i32) {
    %c0_i32 = arith.constant 0 : i32
    %c0_i32_0 = arith.constant 0 : i32
    %c0_i32_1 = arith.constant 0 : i32
    return %arg0, %c0_i32, %c0_i32_0 : i32, i32, i32
  }
  func.func @transform_13(%arg0: i32) -> (i32, i32, i32, i32) {
    %c0_i32 = arith.constant 0 : i32
    %c0_i32_0 = arith.constant 0 : i32
    %c0_i32_1 = arith.constant 0 : i32
    %c0_i32_2 = arith.constant 0 : i32
    return %arg0, %c0_i32, %c0_i32_0, %c0_i32_1 : i32, i32, i32, i32
  }
  func.func @transform_14(%arg0: i32) -> (i32, i32, i32, i32) {
    %c0_i32 = arith.constant 0 : i32
    %c0_i32_0 = arith.constant 0 : i32
    %c0_i32_1 = arith.constant 0 : i32
    %c0_i32_2 = arith.constant 0 : i32
    return %arg0, %c0_i32, %c0_i32_0, %c0_i32_1 : i32, i32, i32, i32
  }
  func.func @transform_15(%arg0: i32) -> (i32, i32, i32) {
    %c0_i32 = arith.constant 0 : i32
    %c0_i32_0 = arith.constant 0 : i32
    %c0_i32_1 = arith.constant 0 : i32
    return %arg0, %c0_i32, %c0_i32_0 : i32, i32, i32
  }
  func.func @transform_16(%arg0: i32) -> (i32, i32, i32) {
    %c0_i32 = arith.constant 0 : i32
    %c0_i32_0 = arith.constant 0 : i32
    %c0_i32_1 = arith.constant 0 : i32
    return %arg0, %c0_i32, %c0_i32_0 : i32, i32, i32
  }
  func.func @transform_17(%arg0: i32) -> (i32, i32, i32) {
    %c0_i32 = arith.constant 0 : i32
    %c0_i32_0 = arith.constant 0 : i32
    %c0_i32_1 = arith.constant 0 : i32
    return %arg0, %c0_i32, %c0_i32_0 : i32, i32, i32
  }
  func.func @transform_18(%arg0: i32) -> (i32, i32, i32) {
    %c0_i32 = arith.constant 0 : i32
    %c0_i32_0 = arith.constant 0 : i32
    %c0_i32_1 = arith.constant 0 : i32
    return %arg0, %c0_i32, %c0_i32_0 : i32, i32, i32
  }
  func.func @transform_19(%arg0: i32) -> (i32, i32, i32) {
    %c0_i32 = arith.constant 0 : i32
    %c0_i32_0 = arith.constant 0 : i32
    %c0_i32_1 = arith.constant 0 : i32
    return %arg0, %c0_i32, %c0_i32_0 : i32, i32, i32
  }
}

</mosaic_0001>

<bundles_post_ra>
// kernel: srvq3_forward.1
= control target key start
LH: loop header
LB: loop body
LE: loop exit
PB: predicated region body
PF: predicated region fallthrough
CT: control target
= control target key end

     0   :  { %s8072_s0 = inlined_call_operand.vmem [shape: f32[3,256,1], index: 0, kind: input, shape index: {}]   ;;  %s8073_s1 = inlined_call_operand.vmem [shape: bf16[3,3,32], index: 1, kind: input, shape index: {}]   ;;  %s8074_s2 = inlined_call_operand.vmem [shape: bf16[3,96,32], index: 2, kind: input, shape index: {}]   ;;  %s8075_s3 = inlined_call_operand.vmem [shape: bf16[3,96,64], index: 3, kind: input, shape index: {}]   ;;  %s8076_s4 = inlined_call_operand.vmem [shape: bf16[3,192,64], index: 4, kind: input, shape index: {}]   ;;  %s8077_s5 = inlined_call_operand.hbm [shape: bf16[3,192,128], index: 5, kind: input, shape index: {}]   ;;  %s8078_s6 = inlined_call_operand.vmem [shape: bf16[3,384,128], index: 6, kind: input, shape index: {}]   ;;  %s8079_s7 = inlined_call_operand.hbm [shape: f32[3,6,128], index: 7, kind: input, shape index: {}]   ;;  %s8080_s8 = inlined_call_operand.hbm [shape: f32[3,6,128], index: 8, kind: input, shape index: {}]   ;;  %s8081_s9 = inlined_call_operand.vmem [shape: bf16[3,128,384], index: 9, kind: input, shape index: {}]   ;;  %s8082_s10 = inlined_call_operand.vmem [shape: bf16[3,128,384], index: 10, kind: input, shape index: {}]   ;;  %s8083_s11 = inlined_call_operand.vmem [shape: f32[3,1,384], index: 11, kind: input, shape index: {}]   ;;  %s8084_s12 = inlined_call_operand.hbm [shape: f32[3,1,384], index: 12, kind: input, shape index: {}]   ;;  %s8085_s13 = inlined_call_operand.hbm [shape: f32[3,2,16,128], index: 13, kind: input, shape index: {}]   ;;  %s8086_s14 = inlined_call_operand.vmem [shape: f32[3,2,1,16], index: 14, kind: input, shape index: {}]   ;;  %s8087_s15 = inlined_call_operand.vmem [shape: f32[3,1,16], index: 15, kind: input, shape index: {}]   ;;  %s8088_s16 = inlined_call_operand.vmem [shape: f32[3,2,256], index: 16, kind: output, shape index: {0}]   ;;  %s8089_s17 = inlined_call_operand.vmem [shape: f32[3,1,1], index: 17, kind: output, shape index: {1}]   ;;  %s8090_s18 = inlined_call_operand.vmem [shape: s32[3,2,1], index: 18, kind: output, shape index: {2}]   ;;  %s8091_s19 = inlined_call_operand.hbm [shape: f32[3,1,2], index: 19, kind: output, shape index: {3}]  }
   0x1   :  { %8108 = sst [smem:[#allocation24_spill]] %s8072_s0 }
   0x2   :  { %8109 = sst [smem:[#allocation25_spill]] %s8073_s1 }
   0x3   :  { %8110 = sst [smem:[#allocation26_spill]] %s8074_s2 }
   0x4   :  { %8111 = sst [smem:[#allocation27_spill]] %s8075_s3 }
   0x5   :  { %8112 = sst [smem:[#allocation28_spill]] %s8077_s5 }
   0x6   :  { %8113 = sst [smem:[#allocation29_spill]] %s8079_s7 }
   0x7   :  { %8114 = sst [smem:[#allocation30_spill]] %s8081_s9 }
   0x8   :  { %8115 = sst [smem:[#allocation31_spill]] %s8083_s11 }
   0x9   :  { %8116 = sst [smem:[#allocation32_spill]] %s8084_s12 }
   0xa   :  { %8117 = sst [smem:[#allocation33_spill]] %s8086_s14 }
   0xb   :  { %8118 = sst [smem:[#allocation34_spill]] %s8087_s15 }
   0xc   :  { %8119 = sst [smem:[#allocation35_spill]] %s8088_s16 }
   0xd   :  { %8120 = sst [smem:[#allocation36_spill]] %s8089_s17 }
   0xe   :  { %8121 = sst [smem:[#allocation37_spill]] %s8090_s18 }
   0xf   :  { %8122 = sst [smem:[#allocation38_spill]] %s8091_s19 }
  0x10   :  { %25 = vsyncpa [#allocation5], 0 }
  0x11   :  { %27 = vsyncpa [#allocation5 + $0x1], 0 }
  0x12   :  { %28 = vsyncpa [#allocation8], 0 }
  0x13   :  { %30 = vsyncpa [#allocation8 + $0x1], 0 }
  0x14   :  { %31 = vsyncpa [#allocation11], 0 }
  0x15   :  { %33 = vsyncpa [#allocation11 + $0x1], 0 }
  0x16   :  { %34 = vsyncpa [#allocation6], 0 }
  0x17   :  { %36 = vsyncpa [#allocation6 + $0x1], 0  ;;  %s6781_s0 = smov 0   ;;  %s6783_s30 = smov 0  }
  0x18   :  { %s6785_s20 = smov 0   ;;  %s6787_s21 = smov 0  }
  0x19 LB: > { %8123 = sst [smem:[#allocation18_spill]] %s6653_s0  ;;  %s6802_s1 = sadd.s32 4294967295, %s6665_s21   ;;  %s6665_s21 = sphi %s6787_s21, %s8163_s21   ;;  %s6661_s20 = sphi %s6785_s20, %s8165_s20   ;;  %s6657_s30 = sphi %s6783_s30, %s8167_s30   ;;  %s6653_s0 = sphi %s6781_s0, %s8166_s0  }
  0x1a   : > { %8124 = sst [smem:[#allocation19_spill]] %s6661_s20  ;;  %s5450_s22 = sadd.s32 4294967294, %s6665_s21  }
  0x1b   : > { %s6806_s2 = sadd.s32 1, %s6665_s21   ;;  %s179_s23 = sadd.s32 1, %s6661_s20 }
  0x1c   : > { %8125 = sst [smem:[#allocation20_spill]] %s6806_s2  ;;  %s176_s24 = ssub.s32 %s6665_s21, %s6806_s2 }
  0x1d   : > { %p186_p0 = scmp.ne.s32.totalorder %s6661_s20, %s6657_s30  ;;  %p177_p1 = scmp.eq.s32.totalorder %s176_s24, 0 }
  0x1e   : > { %p187_p2 = scmp.eq.s32.totalorder %s6665_s21, 0  ;;  %p192_p3 = scmp.ne.s32.totalorder %s6657_s30, %s6653_s0 }
  0x1f   : > { %p193_p4 = scmp.eq.s32.totalorder %s6802_s1, 0  ;;  %p554_p7 = scmp.eq.s32.totalorder %s6802_s1, 2 }
  0x20   : > { %s6818_s25 = scalar_select %p177_p1, %s6661_s20, %s179_s23  }
  0x21   : > { %p188_p5 = por %p187_p2, %p186_p0  ;;  %p6820_p6 = por %p193_p4, %p192_p3 }
  0x22   : > { %8126 = sst [smem:[#allocation21_spill]] %s6818_s25  ;;  %p560_p8 = scmp.eq.s32.totalorder %s5450_s22, 2 }
  0x23   : > { %s8127_s3 = scalar_select %p6820_p6, 1, 0 }
  0x24   : > { %p6233_p9 = scmp.lt.s32.totalorder %s6665_s21, 3  ;;  %p6826_p10 = por %p554_p7, %p186_p0 }
  0x25   : > { %p6830_p11 = por %p560_p8, %p192_p3  ;;  %s6835_s28 = sand.u32 1, %s6661_s20  }
  0x26   : > { %s8128_s26 = scalar_select %p6826_p10, 1, 0 }
  0x27   : > { %s8130_s27 = scalar_select %p6830_p11, 1, 0 }
  0x28   : > { %8129 = sst [smem:[#allocation22_spill]] %s8128_s26  ;;  %p6837_p12 = pnand %p6233_p9, %p188_p5 }
  0x29   : > { %8131 = sst [smem:[#allocation23_spill]] %s8130_s27  ;;  %s8102_s23 = sand.u32 1, %s6665_s21  }
  0x2a   : > { %s8132_s29 = scalar_select %p6837_p12, 1, 0 }
  0x2b   : > { %s8100_s22 = sshll.u32 %s6835_s28, 3  ;;  %s8101_s24 = sshll.u32 %s6665_s21, 7 }
  0x2c   : > { %s8133_s7 = sld [smem:[#allocation29_spill]]  ;;  %s652_s20 = scalar_lea.vmem [#allocation7], %s8100_s22 }
  0x2d   : > { %s659_s27 = sshll.u32 %s652_s20, 4  ;;  %s6857_s19 = scalar_lea.sflag [#allocation8], %s8102_s23  ;;  %s6853_s27 = int_to_ptr.vmem [resolvable:$true] %s659_s27 }
  0x2e   : > { %p6863_p0 = pneg %p6837_p12 }
  0x32   : > { %s6849_s0 = scalar_lea.hbm %s8133_s7, %s8101_s24  ;;  %s6446_s20 = scalar_lea.hbm %s8133_s7, 384 }
  0x33   : > { %s6441_s17 = scalar_lea.hbm %s6849_s0, 128  ;;  %p6447_p3 = scmp.lt.u32.totalorder %s6849_s0, %s8133_s7 }
  0x34   : > { %p6442_p13 = scmp.ne.s32.totalorder %s6849_s0, %s6441_s17  ;;  %p6448_p4 = scmp.lt.u32.totalorder %s6446_s20, %s6441_s17 }
  0x35   : > { %p6450_p7 = scmp.lt.u32.totalorder %s6441_s17, %s6849_s0 }
  0x36   : > { %p6444_p1 = pnand %p6863_p0, %p6442_p13  ;;  %p6449_p5 = por %p6448_p4, %p6447_p3 }
  0x38   : > { %p6445_p2 = pneg %p6444_p1  ;;  %p6451_p8 = por %p6450_p7, %p6449_p5 }
  0x3a   : > { %p6452_p9 = pnand %p6451_p8, %p6445_p2 }
  0x3c   : > { %6455 = shalt.err (!%p6452_p9)
}
  0x3d   : > { %s6456_s23 = scalar_lea.vmem %s6853_s27, 128  ;;  %s6667_s2 = smov [#allocation7]  }
  0x3e   : > { %p6457_p13 = scmp.ne.s32.totalorder %s6853_s27, %s6456_s23  ;;  %s6461_s25 = sshll.u32 %s6667_s2, 4  ;;  %s6462_s25 = int_to_ptr.vmem [resolvable:$false] %s6461_s25 }
  0x3f   : > { %s6463_s22 = scalar_lea.vmem %s6462_s25, 256  ;;  %p6464_p10 = scmp.lt.s32.totalorder %s6853_s27, %s6462_s25 }
  0x40   : > { %p6459_p1 = pnand %p6457_p13, %p6863_p0  ;;  %p6465_p6 = scmp.lt.s32.totalorder %s6463_s22, %s6456_s23 }
  0x42   : > { %p6460_p11 = pneg %p6459_p1  ;;  %p6466_p3 = por %p6465_p6, %p6464_p10 }
  0x44   : > { %p6467_p4 = pnand %p6466_p3, %p6460_p11 }
  0x46   : > { %6470 = shalt.err (!%p6467_p4)
}
  0x47   : > { %6219 = dma.hbm_to_vmem [thread:$0]  (!%p6837_p12), %s6849_s0, 128, %s6853_s27, %s6857_s19  }
  0x48   : > { %s8135_s17 = sshll.u32 %s6665_s21, 7  ;;  %p5462_p6 = scmp.ge.s32.totalorder %s6665_s21, 1 }
  0x49   : > { %s6892_s20 = scalar_lea.hbm %s8080_s8, %s8135_s17  ;;  %p758_p10 = scmp.lt.s32.totalorder %s6665_s21, 4 }
  0x4a   : > { %s6191_s2 = smul.u32 3, %s6835_s28  ;;  %s8137_s12 = sld [smem:[#allocation32_spill]] }
  0x4b   : > { %p6897_p11 = pnand %p5462_p6, %p758_p10  ;;  %s6192_s22 = smul.u32 48, %s6665_s21 }
  0x4c   : > { %s711_s0 = scalar_lea.vmem [#allocation10], %s6191_s2  ;;  %s8138_s17 = sand.u32 1, %s6665_s21  }
  0x4d   : > { %s8136_s25 = scalar_select %p6897_p11, 1, 0 }
  0x4e   : > { %s719_s27 = sshll.u32 %s711_s0, 4  ;;  %s6910_s24 = scalar_lea.sflag [#allocation11], %s8138_s17  ;;  %s720_s27 = int_to_ptr.vmem [resolvable:$true] %s719_s27 }
  0x50   : > { %s6906_s16 = scalar_lea.hbm %s8137_s12, %s6192_s22  ;;  %s6476_s15 = scalar_lea.hbm %s8137_s12, 144 }
  0x51   : > { %s6471_s23 = scalar_lea.hbm %s6906_s16, 48  ;;  %p6477_p8 = scmp.lt.u32.totalorder %s6906_s16, %s8137_s12 }
  0x52   : > { %p6472_p2 = scmp.ne.s32.totalorder %s6906_s16, %s6471_s23  ;;  %p6478_p9 = scmp.lt.u32.totalorder %s6476_s15, %s6471_s23 }
  0x53   : > { %p6480_p1 = scmp.lt.u32.totalorder %s6471_s23, %s6906_s16 }
  0x54   : > { %p6474_p5 = pnand %p6472_p2, %p6863_p0  ;;  %p6479_p13 = por %p6478_p9, %p6477_p8 }
  0x56   : > { %p6475_p7 = pneg %p6474_p5  ;;  %p6481_p3 = por %p6480_p1, %p6479_p13 }
  0x58   : > { %p6482_p4 = pnand %p6481_p3, %p6475_p7 }
  0x5a   : > { %6485 = shalt.err (!%p6482_p4)
}
  0x5b   : > { %s6486_s2 = scalar_lea.vmem %s720_s27, 48  ;;  %s6668_s0 = smov [#allocation10]  }
  0x5c   : > { %p6487_p6 = scmp.ne.s32.totalorder %s720_s27, %s6486_s2  ;;  %s6491_s17 = sshll.u32 %s6668_s0, 4  ;;  %s6492_s17 = int_to_ptr.vmem [resolvable:$false] %s6491_s17 }
  0x5d   : > { %s6493_s7 = scalar_lea.vmem %s6492_s17, 96  ;;  %p6494_p5 = scmp.lt.s32.totalorder %s720_s27, %s6492_s17 }
  0x5e   : > { %p6489_p10 = pnand %p6487_p6, %p6863_p0  ;;  %p6495_p11 = scmp.lt.s32.totalorder %s6493_s7, %s6486_s2 }
  0x60   : > { %p6490_p2 = pneg %p6489_p10  ;;  %p6496_p12 = por %p6495_p11, %p6494_p5 }
  0x62   : > { %p6497_p8 = pnand %p6496_p12, %p6490_p2 }
  0x64   : > { %6500 = shalt.err (!%p6497_p8)
}
  0x65   : > { %p8139_p9 = scmp.ne.s32.totalorder %s8132_s29, 0  ;;  %s6190_s14 = smul.u32 1536, %s6665_s21 }
  0x66   : > { %s8140_s23 = smul.u32 96, %s6835_s28  ;;  %s8141_s5 = sld [smem:[#allocation28_spill]] }
  0x67   : > { %6225 = dma.hbm_to_vmem [thread:$0]  (!%p8139_p9), %s6906_s16, 48, %s720_s27, %s6910_s24  }
  0x68   : > { %s623_s15 = scalar_lea.vmem [#allocation4], %s8140_s23  ;;  %s620_s17 = scalar_lea.sflag [#allocation5], %s6835_s28 }
  0x69   : > { %s630_s18 = sshll.u32 %s623_s15, 4  ;;  %s6933_s18 = int_to_ptr.vmem [resolvable:$true] %s630_s18 }
  0x6c   : > { %s6938_s0 = scalar_lea.hbm %s8141_s5, %s6190_s14  ;;  %s6506_s23 = scalar_lea.hbm %s8141_s5, 4608 }
  0x6d   : > { %s6501_s7 = scalar_lea.hbm %s6938_s0, 1536  ;;  %p6507_p13 = scmp.lt.u32.totalorder %s6938_s0, %s8141_s5 }
  0x6e   : > { %p6502_p12 = scmp.ne.s32.totalorder %s6938_s0, %s6501_s7  ;;  %p6508_p1 = scmp.lt.u32.totalorder %s6506_s23, %s6501_s7 }
  0x6f   : > { %p6510_p4 = scmp.lt.u32.totalorder %s6501_s7, %s6938_s0 }
  0x70   : > { %p6504_p11 = pnand %p6502_p12, %p6863_p0  ;;  %p6509_p3 = por %p6508_p1, %p6507_p13 }
  0x72   : > { %p6505_p7 = pneg %p6504_p11  ;;  %p6511_p6 = por %p6510_p4, %p6509_p3 }
  0x74   : > { %p6512_p10 = pnand %p6511_p6, %p6505_p7 }
  0x76   : > { %6515 = shalt.err (!%p6512_p10)
}
  0x77   : > { %s6516_s14 = scalar_lea.vmem %s6933_s18, 1536  ;;  %s6669_s22 = smov [#allocation4]  }
  0x78   : > { %p6517_p2 = scmp.ne.s32.totalorder %s6933_s18, %s6516_s14  ;;  %s6521_s2 = sshll.u32 %s6669_s22, 4  ;;  %s6522_s2 = int_to_ptr.vmem [resolvable:$false] %s6521_s2 }
  0x79   : > { %s6523_s12 = scalar_lea.vmem %s6522_s2, 3072  ;;  %p6524_p12 = scmp.lt.s32.totalorder %s6933_s18, %s6522_s2 }
  0x7a   : > { %p6519_p5 = pnand %p6517_p2, %p6863_p0  ;;  %p6525_p11 = scmp.lt.s32.totalorder %s6523_s12, %s6516_s14 }
  0x7c   : > { %p6520_p8 = pneg %p6519_p5  ;;  %p6526_p13 = por %p6525_p11, %p6524_p12 }
  0x7e   : > { %p6527_p1 = pnand %p6526_p13, %p6520_p8 }
  0x80   : > { %6530 = shalt.err (!%p6527_p1)
}
  0x81   : > { %s6670_s7 = smov 64   ;;  %s6671_s16 = smov 4  }
  0x82   : > { %6216 = dma.hbm_to_vmem [thread:$0]  (!%p8139_p9), %s6938_s0, 1536, %s6933_s18, %s620_s17, %s6670_s7, %s6670_s7, %s6671_s16  }
  0x83   : > { %s8142_s27 = sshll.u32 %s6835_s28, 3  ;;  %s5459_s14 = sshll.u32 %s6835_s28, 5 }
  0x84   : > { %s670_s23 = scalar_lea.vmem [#allocation9], %s8142_s27  ;;  %s6531_s22 = scalar_lea.hbm %s6892_s20, 128 }
  0x85   : > { %s677_s15 = sshll.u32 %s670_s23, 4  ;;  %p6532_p7 = scmp.ne.s32.totalorder %s6892_s20, %s6531_s22  ;;  %s678_s15 = int_to_ptr.vmem [resolvable:$true] %s677_s15 }
  0x86   : > { %s6536_s5 = scalar_lea.hbm %s8080_s8, 384  ;;  %p6537_p6 = scmp.lt.u32.totalorder %s6892_s20, %s8080_s8 }
  0x87   : > { %p6534_p3 = pnand %p6532_p7, %p6863_p0  ;;  %p6538_p10 = scmp.lt.u32.totalorder %s6536_s5, %s6531_s22 }
  0x88   : > { %p6540_p5 = scmp.lt.u32.totalorder %s6531_s22, %s6892_s20 }
  0x89   : > { %p6535_p4 = pneg %p6534_p3  ;;  %p6539_p2 = por %p6538_p10, %p6537_p6 }
  0x8b   : > { %p6541_p8 = por %p6540_p5, %p6539_p2 }
  0x8d   : > { %p6542_p12 = pnand %p6541_p8, %p6535_p4 }
  0x8f   : > { %6545 = shalt.err (!%p6542_p12)
}
  0x90   : > { %s6546_s18 = scalar_lea.vmem %s678_s15, 128  ;;  %s6672_s0 = smov [#allocation9]  }
  0x91   : > { %p6547_p11 = scmp.ne.s32.totalorder %s678_s15, %s6546_s18  ;;  %s6551_s17 = sshll.u32 %s6672_s0, 4  ;;  %s6552_s17 = int_to_ptr.vmem [resolvable:$false] %s6551_s17 }
  0x92   : > { %s6553_s7 = scalar_lea.vmem %s6552_s17, 256  ;;  %p6554_p7 = scmp.lt.s32.totalorder %s678_s15, %s6552_s17 }
  0x93   : > { %p6549_p13 = pnand %p6547_p11, %p6863_p0  ;;  %p6555_p3 = scmp.lt.s32.totalorder %s6553_s7, %s6546_s18 }
  0x95   : > { %p6550_p1 = pneg %p6549_p13  ;;  %p6556_p9 = por %p6555_p3, %p6554_p7 }
  0x97   : > { %p6557_p6 = pnand %p6556_p9, %p6550_p1 }
  0x99   : > { %6560 = shalt.err (!%p6557_p6)
}
  0x9a   : > { %p8143_p10 = scmp.ne.s32.totalorder %s8132_s29, 0  ;;  %s5675_s5 = sshll.u32 %s6665_s21, 9 }
  0x9b   : > { %s730_s9 = scalar_lea.vmem [#allocation12], %s5459_s14  ;;  %s6991_s23 = scalar_lea.hbm %s8085_s13, %s5675_s5 }
  0x9c   : > { %6222 = dma.hbm_to_vmem [thread:$0]  (!%p8143_p10), %s6892_s20, 128, %s678_s15, %s6857_s19  }
  0x9d   : > { %s737_s11 = sshll.u32 %s730_s9, 4  ;;  %s6561_s22 = scalar_lea.hbm %s6991_s23, 512  ;;  %s6993_s11 = int_to_ptr.vmem [resolvable:$true] %s737_s11 }
  0x9e   : > { %p6562_p9 = scmp.ne.s32.totalorder %s6991_s23, %s6561_s22  ;;  %s6566_s20 = scalar_lea.hbm %s8085_s13, 1536 }
  0x9f   : > { %p6567_p5 = scmp.lt.u32.totalorder %s6991_s23, %s8085_s13  ;;  %p6568_p8 = scmp.lt.u32.totalorder %s6566_s20, %s6561_s22 }
  0xa0   : > { %p6564_p4 = pnand %p6562_p9, %p6863_p0  ;;  %p6570_p11 = scmp.lt.u32.totalorder %s6561_s22, %s6991_s23 }
  0xa1   : > { %p6569_p12 = por %p6568_p8, %p6567_p5 }
  0xa2   : > { %p6565_p2 = pneg %p6564_p4 }
  0xa3   : > { %p6571_p13 = por %p6570_p11, %p6569_p12 }
  0xa5   : > { %p6572_p1 = pnand %p6571_p13, %p6565_p2 }
  0xa7   : > { %6575 = shalt.err (!%p6572_p1)
}
  0xa8   : > { %s6576_s2 = scalar_lea.vmem %s6993_s11, 512  ;;  %s6673_s12 = smov [#allocation12]  }
  0xa9   : > { %p6577_p7 = scmp.ne.s32.totalorder %s6993_s11, %s6576_s2  ;;  %s6581_s18 = sshll.u32 %s6673_s12, 4  ;;  %s6582_s18 = int_to_ptr.vmem [resolvable:$false] %s6581_s18 }
  0xaa   : > { %s6583_s0 = scalar_lea.vmem %s6582_s18, 1024  ;;  %p6584_p9 = scmp.lt.s32.totalorder %s6993_s11, %s6582_s18 }
  0xab   : > { %p6579_p3 = pnand %p6577_p7, %p6863_p0  ;;  %p6585_p4 = scmp.lt.s32.totalorder %s6583_s0, %s6576_s2 }
  0xad   : > { %p6580_p6 = pneg %p6579_p3  ;;  %p6586_p5 = por %p6585_p4, %p6584_p9 }
  0xaf   : > { %p6587_p8 = pnand %p6586_p5, %p6580_p6 }
  0xb1   : > { %6590 = shalt.err (!%p6587_p8)
}
  0xb2   : > { %s6674_s17 = smov 128   ;;  %s6675_s7 = smov 8  }
  0xb3   : > { %6228 = dma.hbm_to_vmem [thread:$0]  (!%p8143_p10), %s6991_s23, 512, %s6993_s11, %s6910_s24, %s6674_s17, %s6674_s17, %s6675_s7  }
  0xb4   : > { %p8144_p0 = scmp.ne.s32.totalorder %s8136_s25, 0 }
  0xb5   : > { %s7020_s26 = sand.u32 (!%p8144_p0), 1, %s6657_s30   ;;  %p8145_p2 = scmp.ne.s32.totalorder (!%p8144_p0), %s8127_s3, 0 }
  0xb6   : > { %762 = sbr.rel (%p8144_p0) target bundleno = 4553 (0x11c9), region = 84  ;;  %s765_s9 = scalar_lea.sflag (!%p8144_p0), [#allocation5], %s7020_s26 }
  0xb7   : > { %s6193_s5 = smul.u32 (!%p8144_p0), 96, %s7020_s26 }
  0xb9   : > { %s7024_s16 = scalar_lea.vmem (!%p8144_p0), [#allocation4], %s6193_s5 }
  0xbd   : > { %6636 = dma.done.wait (%p8145_p2), %s765_s9, 1536  }
  0xbe   : > { %6638 = vsyncadd (%p8145_p2), %s765_s9, 4294965760  ;;  %s773_s29 = sand.u32 1, %s6802_s1   ;;  %s5463_s25 = sshll.u32 %s7020_s26, 3 }
  0xbf   : > { %s774_s24 = scalar_lea.sflag [#allocation8], %s773_s29  ;;  %s7032_s11 = scalar_lea.vmem [#allocation7], %s5463_s25 }
  0xc0   : > { %6640 = dma.done.wait (%p8145_p2), %s774_s24, 256  }
  0xc1   : > { %6642 = vsyncadd (%p8145_p2), %s774_s24, 4294967040  ;;  %s6194_s27 = smul.u32 3, %s7020_s26  ;;  %s7039_s23 = scalar_lea.vmem [#allocation9], %s5463_s25 }
  0xc2   : > { %s792_s22 = scalar_lea.sflag [#allocation11], %s773_s29 }
  0xc3   : > { %s7041_s19 = scalar_lea.vmem [#allocation10], %s6194_s27 }
  0xc4   : > { %6644 = dma.done.wait (%p8145_p2), %s792_s22, 560  }
  0xc5   : > { %6646 = vsyncadd (%p8145_p2), %s792_s22, 4294966736  ;;  %p940_p10 = scmp.lt.s32.totalorder %s6802_s1, 2  ;;  %v6676_v0 = vmov 0   ;;  %v1131_v1 = vlaneseq  ;;  %s8146_s2 = sld [smem:[#allocation24_spill]]  ;;  %vm1082_vm0 = vcmask 1040384   ;;  %v6677_v18 = vmov 0.0  }
  0xc6   : > { %6275 = vset.pattern.permute.xlu1 %v6676_v0  ;;  %6276 = vset.pattern.permute.xlu0 %v6676_v0  ;;  %s8147_s29 = sld [smem:[#allocation26_spill]]  ;;  %vm1722_vm3 = vcmask 261120   ;;  %vm6678_vm8 = vmmov 0   ;;  %vm2827_vm9 = vcmask 523264   ;;  %s8150_s22 = sld [smem:[#allocation30_spill]]  ;;  %vm3847_vm14 = vcmask 1043456  }
  0xc7   : > { %s7051_s28 = scalar_select %p940_p10, %s6802_s1, 2  ;;  %v7060_v2 = vshrl.u32 %v1131_v1, 7  ;;  %vm4687_vm15 = vcmask 1041408  }
  0xc9   : > { %s5676_s20 = sshll.u32 %s7051_s28, 8  ;;  %v1152_v11 = vand.u32 63, %v7060_v2  ;;  %v1140_v13 = vadd.s32 64, %v7060_v2  ;;  %s7081_s3 = smul.u32 192, %s7051_s28 }
  0xca   : > { %s6195_s7 = smul.u32 48, %s7051_s28  ;;  %s7134_s24 = sshll.u32 %s7051_s28, 1 }
  0xcb   : > { %s7057_s12 = scalar_lea.vmem %s8146_s2, %s5676_s20  ;;  %vm1340_vm1 = vcmp.ne.s32.totalorder %v1152_v11, 0  ;;  %v1208_v16 = vand.u32 63, %v1140_v13  ;;  %s7091_s17 = scalar_lea.vmem %s8078_s6, %s7081_s3 }
  0xcc   : > { %v1003_v3 = vld [vmem:[%s7057_s12] ss:$2 sm:$0xff]  ;;  %v5494_v4 = vld [vmem:[%s7057_s12 + $0x1] ss:$2 sm:$0xff]  ;;  %v5495_v5 = vld [vmem:[%s7057_s12 + $0x11] ss:$2 sm:$0xff]  ;;  %s7129_s25 = scalar_lea.vmem %s8147_s29, %s6195_s7 }
  0xcd   : > { %1508 = vperm.xlu1 %6275, %v1003_v3   ;;  %v1083_v6 = vrot.slane %v5494_v4, 7  ;;  %v1084_v7 = vrot.slane %v5495_v5, 7  ;;  %v5496_v8 = vld [vmem:[%s7057_s12 + $0x21] ss:$2 sm:$0xff]  ;;  %v5479_v9 = vld [vmem:[%s7057_s12 + $0x10] ss:$2 sm:$0xff] }
  0xce   : > { %v1086_v10 = vrot.slane %v5496_v8, 7  ;;  %v5480_v15 = vld [vmem:[%s7057_s12 + $0x20] ss:$2 sm:$0xff]  ;;  %v5510_v19 = vsel %vm1340_vm1, 1.0, %v6677_v18  ;;  %v5497_v20 = vld [vmem:[%s7057_s12 + $0x31] ss:$2 sm:$0xff] }
  0xcf   : > { %v1085_v12 = vsel %vm1082_vm0, %v1083_v6, %v1084_v7  ;;  %v1130_v17 = vsel %vm1082_vm0, 0.0, %v1083_v6  ;;  %v5498_v21 = vld [vmem:[%s7057_s12 + $0x41] ss:$2 sm:$0xff]  ;;  %v5499_v22 = vld [vmem:[%s7057_s12 + $0x51] ss:$2 sm:$0xff]  ;;  %vm1348_vm2 = vcmp.ne.s32.totalorder %v1208_v16, 0 }
  0xd0   : > { %1413 = vperm.xlu0 %6276, %v1085_v12   ;;  %v1087_v14 = vsel %vm1082_vm0, %v1084_v7, %v1086_v10  ;;  %v1388_v23 = vmul.f32 %v5510_v19, %v1130_v17  ;;  %v5500_v24 = vld [vmem:[%s7057_s12 + $0x61] ss:$2 sm:$0xff]  ;;  %v5501_v25 = vld [vmem:[%s7057_s12 + $0x71] ss:$2 sm:$0xff]  ;;  %v1088_v27 = vrot.slane %v5497_v20, 7  ;;  %v1090_v29 = vrot.slane %v5498_v21, 7 }
  0xd1   : > { %1513 = vperm.xlu1 %6275, %v5479_v9   ;;  %v5502_v26 = vld [vmem:[%s7057_s12 + $0x81] ss:$2 sm:$0xff]  ;;  %v5481_v28 = vld [vmem:[%s7057_s12 + $0x30] ss:$2 sm:$0xff]  ;;  %v1092_v30 = vrot.slane %v5499_v22, 7  ;;  %v1094_v31 = vrot.slane %v5500_v24, 7 }
  0xd2   : > { %v1096_v32 = vrot.slane %v5501_v25, 7  ;;  %v1098_v33 = vrot.slane %v5502_v26, 7  ;;  %v5511_v34 = vsel %vm1348_vm2, 1.0, %v6677_v18  ;;  %v1089_v35 = vsel %vm1082_vm0, %v1086_v10, %v1088_v27  ;;  %v5482_v37 = vld [vmem:[%s7057_s12 + $0x40] ss:$2 sm:$0xff]  ;;  %s8148_s20 = sld [smem:[#allocation25_spill]] }
  0xd3   : > { %v1091_v36 = vsel %vm1082_vm0, %v1088_v27, %v1090_v29  ;;  %v5483_v38 = vld [vmem:[%s7057_s12 + $0x50] ss:$2 sm:$0xff]  ;;  %v1093_v39 = vsel %vm1082_vm0, %v1090_v29, %v1092_v30  ;;  %v1095_v40 = vsel %vm1082_vm0, %v1092_v30, %v1094_v31  ;;  %v5484_v41 = vld [vmem:[%s7057_s12 + $0x60] ss:$2 sm:$0xff]  ;;  %v5503_v46 = vld [vmem:[%s7057_s12 + $0x91] ss:$2 sm:$0xff] }
  0xd4   : > { %1418 = vperm.xlu0 %6276, %v1087_v14   ;;  %v5485_v42 = vld [vmem:[%s7057_s12 + $0x70] ss:$2 sm:$0xff]  ;;  %v1099_v43 = vsel %vm1082_vm0, %v1096_v32, %v1098_v33  ;;  %v1097_v44 = vsel %vm1082_vm0, %v1094_v31, %v1096_v32  ;;  %v5504_v47 = vld [vmem:[%s7057_s12 + $0xa1] ss:$2 sm:$0xff]  ;;  %v5486_v48 = vld [vmem:[%s7057_s12 + $0x80] ss:$2 sm:$0xff] }
  0xd5   : > { %1518 = vperm.xlu1 %6275, %v5480_v15   ;;  %v1396_v45 = vmul.f32 %v5511_v34, %v1099_v43  ;;  %v1100_v49 = vrot.slane %v5503_v46, 7  ;;  %v5487_v50 = vld [vmem:[%s7057_s12 + $0x90] ss:$2 sm:$0xff]  ;;  %v1102_v51 = vrot.slane %v5504_v47, 7  ;;  %v5505_v54 = vld [vmem:[%s7057_s12 + $0xb1] ss:$2 sm:$0xff] }
  0xd6   : > { %v5506_v55 = vld [vmem:[%s7057_s12 + $0xc1] ss:$2 sm:$0xff]  ;;  %v5488_v56 = vld [vmem:[%s7057_s12 + $0xa0] ss:$2 sm:$0xff]  ;;  %v1104_v57 = vrot.slane %v5505_v54, 7  ;;  %v6278_v27 = vld [vmem:[%s7129_s25 + $0x18] sm:$0xff]  }
  0xd7   : > { %v1101_v52 = vsel %vm1082_vm0, %v1098_v33, %v1100_v49  ;;  %v1103_v53 = vsel %vm1082_vm0, %v1100_v49, %v1102_v51  ;;  %v5489_v58 = vld [vmem:[%s7057_s12 + $0xb0] ss:$2 sm:$0xff]  ;;  %v1106_v59 = vrot.slane %v5506_v55, 7  ;;  %v5507_v62 = vld [vmem:[%s7057_s12 + $0xd1] ss:$2 sm:$0xff]  ;;  %v7137_v33 = vld [vmem:[%s7129_s25] sm:$0xff]  }
  0xd8   : > { %1623 = vperm.xlu0 %6276, %v5494_v4   ;;  %v1105_v60 = vsel %vm1082_vm0, %v1102_v51, %v1104_v57  ;;  %v5508_v63 = vld [vmem:[%s7057_s12 + $0xe1] ss:$2 sm:$0xff]  ;;  %v5490_v3 = vld [vmem:[%s7057_s12 + $0xc0] ss:$2 sm:$0xff]  ;;  %v1108_v4 = vrot.slane %v5507_v62, 7  ;;  %s948_s15 = scalar_lea.vmem %s8148_s20, %s7134_s24  ;;  %s6196_s0 = smul.u32 96, %s7051_s28 }
  0xd9   : > { %1627 = vperm.xlu1 %6275, %v5495_v5   ;;  %v1107_v61 = vsel %vm1082_vm0, %v1104_v57, %v1106_v59  ;;  %v5491_v5 = vld [vmem:[%s7057_s12 + $0xd0] ss:$2 sm:$0xff]  ;;  %v1110_v6 = vrot.slane %v5508_v63, 7  ;;  %v5509_v9 = vld [vmem:[%s7057_s12 + $0xf1] ss:$2 sm:$0xff]  ;;  %s7729_s20 = scalar_lea.vmem %s8150_s22, %s7081_s3  ;;  %s5677_s5 = sshll.u32 %s7051_s28, 2 }
  0xda   : > { %v1109_v7 = vsel %vm1082_vm0, %v1106_v59, %v1108_v4  ;;  %v5492_v10 = vld [vmem:[%s7057_s12 + $0xe0] ss:$2 sm:$0xff]  ;;  %v1112_v11 = vrot.slane %v5509_v9, 7  ;;  %v5493_v12 = vld [vmem:[%s7057_s12 + $0xf0] ss:$2 sm:$0xff]  ;;  %s8149_s12 = sld [smem:[#allocation27_spill]]  ;;  %s7518_s9 = scalar_lea.vmem %s8076_s4, %s6196_s0 }
  0xdb   : > { %s8152_s0 = sld [smem:[#allocation33_spill]]  ;;  %s8153_s29 = sld [smem:[#allocation35_spill]] }
  0xdc   : > { %1408 = vperm.xlu0 %6276, %v1388_v23   ;;  %v1113_v13 = vsel %vm1082_vm0, %v1110_v6, %v1112_v11  ;;  %s8154_s22 = sld [smem:[#allocation34_spill]] }
  0xdd   : > { %1523 = vperm.xlu1 %6275, %v5481_v28  }
  0xe0   : > { %1423 = vperm.xlu0 %6276, %v1089_v35   ;;  %s7430_s18 = scalar_lea.vmem %s8149_s12, %s6195_s7 }
  0xe1   : > { %1428 = vperm.xlu1 %6275, %v1091_v36   ;;  %s7952_s7 = scalar_lea.vmem %s8152_s0, %s7134_s24  ;;  %s8157_s0 = sld [smem:[#allocation36_spill]] }
  0xe4   : > { %1631 = vperm.xlu0 %6276, %v5496_v8   ;;  %v1111_v8 = vsel %vm1082_vm0, %v1108_v4, %v1110_v6 }
  0xe5   : > { %1635 = vperm.xlu1 %6275, %v5497_v20  }
  0xe8   : > { %1528 = vperm.xlu0 %6276, %v5482_v37   ;;  %v1404_v37 = vld [vmem:[%s948_s15] sm:$0x3]  ;;  %s8151_s15 = sld [smem:[#allocation31_spill]] }
  0xe9   : > { %1533 = vperm.xlu1 %6275, %v5483_v38  }
  0xec   : > { %1433 = vperm.xlu0 %6276, %v1093_v39   ;;  %v1405_v39 = vunpack.c.l.bf16 %v1404_v37 }
  0xed   : > { %1438 = vperm.xlu1 %6275, %v1095_v40   ;;  %v7147_v40 = vsub.s32 1, %v7060_v2 }
  0xf0   : > { %1639 = vperm.xlu0 %6276, %v5498_v21  }
  0xf1   : > { %1643 = vperm.xlu1 %6275, %v5499_v22  }
  0xf4   : > { %1538 = vperm.xlu0 %6276, %v5484_v41   ;;  %v7150_v41 = vsub.s32 0, %v7060_v2 }
  0xf5   : > { %1543 = vperm.xlu1 %6275, %v5485_v42  }
  0xf8   : > { %1443 = vperm.xlu0 %6276, %v1097_v44   ;;  %v7157_v44 = vrot.slane %v1405_v39, %v7147_v40 }
  0xf9   : > { %1448 = vperm.xlu1 %6275, %v1396_v45   ;;  %v7160_v45 = vrot.slane %v1405_v39, %v7150_v41 }
  0xfc   : > { %1647 = vperm.xlu0 %6276, %v5500_v24  }
  0xfd   : > { %1651 = vperm.xlu1 %6275, %v5501_v25  }
 0x100   : > { %1548 = vperm.xlu0 %6276, %v5486_v48  }
 0x101   : > { %1553 = vperm.xlu1 %6275, %v5487_v50  }
 0x104   : > { %1453 = vperm.xlu0 %6276, %v1101_v52  }
 0x105   : > { %1458 = vperm.xlu1 %6275, %v1103_v53  }
 0x108   : > { %1655 = vperm.xlu0 %6276, %v5502_v26   ;;  %v6277_v26 = vld [vmem:[%s7129_s25 + $0x10] sm:$0xff]  }
 0x109   : > { %1659 = vperm.xlu1 %6275, %v5503_v46   ;;  %5813 = vmatprep.subr.bf16.mxu0 %v6277_v26  ;;  %v7163_v46 = vsub.s32 2, %v7060_v2 }
 0x10a   : > { %5814 = vmatpush3.bf16.msra.mxu0 %v6277_v26 }
 0x10b   : > { %5815 = vmatprep.subr.bf16.mxu0 %v6278_v27  ;;  %v7170_v51 = vrot.slane %v1405_v39, %v7163_v46 }
 0x10c   : > { %1558 = vperm.xlu0 %6276, %v5488_v56  }
 0x10d   : > { %1563 = vperm.xlu1 %6275, %v5489_v58  }
 0x10e   : > { %5816 = vmatpush3.bf16.msra.mxu0 %v6278_v27 }
 0x10f   : > { %5825 = vmatprep.subr.bf16.mxu0 %v7137_v33 }
 0x110   : > { %1463 = vperm.xlu0 %6276, %v1105_v60  }
 0x111   : > { %1468 = vperm.xlu1 %6275, %v1107_v61  }
 0x114   : > { %1663 = vperm.xlu0 %6276, %v5504_v47  }
 0x115   : > { %1667 = vperm.xlu1 %6275, %v5505_v54  }
 0x118   : > { %1568 = vperm.xlu0 %6276, %v5490_v3  }
 0x119   : > { %1573 = vperm.xlu1 %6275, %v5491_v5  }
 0x11c   : > { %1473 = vperm.xlu0 %6276, %v1109_v7  }
 0x11d   : > { %1478 = vperm.xlu1 %6275, %v1111_v8  }
 0x120   : > { %1671 = vperm.xlu0 %6276, %v5506_v55  }
 0x121   : > { %1675 = vperm.xlu1 %6275, %v5507_v62  }
 0x124   : > { %1578 = vperm.xlu0 %6276, %v5492_v10  }
 0x125   : > { %1583 = vperm.xlu1 %6275, %v5493_v12  }
 0x128   : > { %1483 = vperm.xlu0 %6276, %v1113_v13  }
 0x129   : > { %1683 = vperm.xlu1 %6275, %v5509_v9  }
 0x12c   : > { %1679 = vperm.xlu0 %6276, %v5508_v63  }
 0x14c   : > { %v1509_v14 = vpop.permute.xlu1 %1508 }
 0x14d   : > { %v1590_v50 = vmul.f32 %v7157_v44, %v1509_v14 }
 0x14f   : > { %v1414_v15 = vpop.permute.xlu0 %1413 }
 0x150   : > { %v1514_v16 = vpop.permute.xlu1 %1513  ;;  %v1491_v53 = vmul.f32 %v7160_v45, %v1414_v15 }
 0x151   : > { %v1591_v54 = vmul.f32 %v7157_v44, %v1514_v16 }
 0x153   : > { %v1419_v17 = vpop.permute.xlu0 %1418  ;;  %v1607_v3 = vadd.f32 %v1591_v54, %v1491_v53 }
 0x154   : > { %v1519_v19 = vpop.permute.xlu1 %1518  ;;  %v1492_v55 = vmul.f32 %v7160_v45, %v1419_v17 }
 0x155   : > { %v1592_v56 = vmul.f32 %v7157_v44, %v1519_v19 }
 0x157   : > { %v1624_v20 = vpop.permute.xlu0 %1623  ;;  %v1608_v4 = vadd.f32 %v1592_v56, %v1492_v55 }
 0x158   : > { %v1628_v21 = vpop.permute.xlu1 %1627  ;;  %v1690_v59 = vmul.f32 %v7170_v51, %v1624_v20 }
 0x159   : > { %v1691_v60 = vmul.f32 %v7170_v51, %v1628_v21 }
 0x15b   : > { %v1409_v22 = vpop.permute.xlu0 %1408  ;;  %v7188_v9 = vadd.f32 %v1691_v60, %v1607_v3 }
 0x15c   : > { %v1524_v23 = vpop.permute.xlu1 %1523  ;;  %v1490_v48 = vmul.f32 %v7160_v45, %v1409_v22 }
 0x15d   : > { %v1593_v6 = vmul.f32 %v7157_v44, %v1524_v23  ;;  %v1762_v21 = vmul.f32 %v7188_v9, %v7188_v9 }
 0x15e   : > { %v1606_v57 = vadd.f32 %v1590_v50, %v1490_v48 }
 0x15f   : > { %v1424_v24 = vpop.permute.xlu0 %1423  ;;  %v1778_v53 = vsel %vm1722_vm3, %v1762_v21, 0.0 }
 0x160   : > { %v1429_v25 = vpop.permute.xlu1 %1428  ;;  %v1493_v63 = vmul.f32 %v7160_v45, %v1424_v24  ;;  %v7184_v5 = vadd.f32 %v1690_v59, %v1606_v57 }
 0x161   : > { %v1494_v15 = vmul.f32 %v7160_v45, %v1429_v25  ;;  %v1724_v25 = vsel %vm1722_vm3, %v7188_v9, 0.0 }
 0x162   : > { %v1609_v13 = vadd.f32 %v1593_v6, %v1493_v63  ;;  %v1761_v14 = vmul.f32 %v7184_v5, %v7184_v5  ;;  %v1723_v22 = vsel %vm1722_vm3, %v7184_v5, 0.0 }
 0x163   : > { %v1632_v28 = vpop.permute.xlu0 %1631  ;;  %v1725_v37 = vadd.f32 %v1724_v25, %v1723_v22 }
 0x164   : > { %v1636_v29 = vpop.permute.xlu1 %1635  ;;  %v1692_v61 = vmul.f32 %v7170_v51, %v1632_v28 }
 0x165   : > { %v1693_v7 = vmul.f32 %v7170_v51, %v1636_v29  ;;  %v1777_v29 = vsel %vm1722_vm3, %v1761_v14, 0.0 }
 0x166   : > { %v7190_v10 = vadd.f32 %v1692_v61, %v1608_v4  ;;  %v1779_v57 = vadd.f32 %v1778_v53, %v1777_v29 }
 0x167   : > { %v1529_v30 = vpop.permute.xlu0 %1528  ;;  %v7199_v17 = vadd.f32 %v1693_v7, %v1609_v13 }
 0x168   : > { %v1534_v31 = vpop.permute.xlu1 %1533  ;;  %v1594_v11 = vmul.f32 %v7157_v44, %v1529_v30  ;;  %v1763_v23 = vmul.f32 %v7190_v10, %v7190_v10  ;;  %v1726_v30 = vsel %vm1722_vm3, %v7190_v10, 0.0 }
 0x169   : > { %v1595_v27 = vmul.f32 %v7157_v44, %v1534_v31  ;;  %v1764_v39 = vmul.f32 %v7199_v17, %v7199_v17  ;;  %v1727_v56 = vadd.f32 %v1726_v30, %v1725_v37 }
 0x16a   : > { %v1610_v24 = vadd.f32 %v1594_v11, %v1494_v15  ;;  %v1780_v31 = vsel %vm1722_vm3, %v1763_v23, 0.0 }
 0x16b   : > { %v1434_v32 = vpop.permute.xlu0 %1433  ;;  %v1781_v3 = vadd.f32 %v1780_v31, %v1779_v57 }
 0x16c   : > { %v7139_v34 = vpop.permute.xlu1 %1438  ;;  %v1495_v19 = vmul.f32 %v7160_v45, %v1434_v32 }
 0x16e   : > { %v1611_v48 = vadd.f32 %v1595_v27, %v1495_v19 }
 0x16f   : > { %v1640_v35 = vpop.permute.xlu0 %1639 }
 0x170   : > { %v1644_v36 = vpop.permute.xlu1 %1643  ;;  %v1694_v16 = vmul.f32 %v7170_v51, %v1640_v35 }
 0x171   : > { %v1695_v28 = vmul.f32 %v7170_v51, %v1644_v36  ;;  %v1496_v36 = vmul.f32 %v7160_v45, %v7139_v34  ;;  %v1782_v34 = vsel %vm1722_vm3, %v1764_v39, 0.0 }
 0x172   : > { %v7215_v32 = vadd.f32 %v1694_v16, %v1610_v24  ;;  %v1783_v22 = vadd.f32 %v1782_v34, %v1781_v3 }
 0x173   : > { %v1539_v38 = vpop.permute.xlu0 %1538  ;;  %v7225_v59 = vadd.f32 %v1695_v28, %v1611_v48 }
 0x174   : > { %v7152_v42 = vpop.permute.xlu1 %1543  ;;  %v1596_v35 = vmul.f32 %v7157_v44, %v1539_v38  ;;  %v1728_v38 = vsel %vm1722_vm3, %v7199_v17, 0.0  ;;  %v1765_v60 = vmul.f32 %v7215_v32, %v7215_v32 }
 0x175   : > { %v1597_v6 = vmul.f32 %v7157_v44, %v7152_v42  ;;  %v1729_v15 = vadd.f32 %v1728_v38, %v1727_v56 }
 0x176   : > { %v1612_v61 = vadd.f32 %v1596_v35, %v1496_v36  ;;  %v1784_v16 = vsel %vm1722_vm3, %v1765_v60, 0.0 }
 0x177   : > { %v7154_v43 = vpop.permute.xlu0 %1443  ;;  %v1785_v30 = vadd.f32 %v1784_v16, %v1783_v22 }
 0x178   : > { %v7165_v47 = vpop.permute.xlu1 %1448  ;;  %v1497_v63 = vmul.f32 %v7160_v45, %v7154_v43  ;;  %v1766_v43 = vmul.f32 %v7225_v59, %v7225_v59 }
 0x179   : > { %v1498_v21 = vmul.f32 %v7160_v45, %v7165_v47 }
 0x17a   : > { %v1613_v19 = vadd.f32 %v1597_v6, %v1497_v63  ;;  %v1786_v35 = vsel %vm1722_vm3, %v1766_v43, 0.0 }
 0x17b   : > { %v1648_v49 = vpop.permute.xlu0 %1647  ;;  %v1787_v57 = vadd.f32 %v1786_v35, %v1785_v30 }
 0x17c   : > { %v7172_v52 = vpop.permute.xlu1 %1651  ;;  %v1696_v54 = vmul.f32 %v7170_v51, %v1648_v49  ;;  %v1730_v49 = vsel %vm1722_vm3, %v7215_v32, 0.0 }
 0x17d   : > { %v1697_v11 = vmul.f32 %v7170_v51, %v7172_v52  ;;  %v1731_v23 = vadd.f32 %v1730_v49, %v1729_v15 }
 0x17e   : > { %v7238_v7 = vadd.f32 %v1696_v54, %v1612_v61 }
 0x17f   : > { %v1549_v58 = vpop.permute.xlu0 %1548  ;;  %v7254_v27 = vadd.f32 %v1697_v11, %v1613_v19 }
 0x180   : > { %v7181_v62 = vpop.permute.xlu1 %1553  ;;  %v1598_v13 = vmul.f32 %v7157_v44, %v1549_v58  ;;  %v1732_v58 = vsel %vm1722_vm3, %v7225_v59, 0.0  ;;  %v1767_v25 = vmul.f32 %v7238_v7, %v7238_v7 }
 0x181   : > { %v1599_v47 = vmul.f32 %v7157_v44, %v7181_v62  ;;  %v1733_v48 = vadd.f32 %v1732_v58, %v1731_v23  ;;  %v1768_v54 = vmul.f32 %v7254_v27, %v7254_v27  ;;  %v1736_v61 = vsel %vm1722_vm3, %v7254_v27, 0.0 }
 0x182   : > { %v1614_v28 = vadd.f32 %v1598_v13, %v1498_v21  ;;  %v1788_v36 = vsel %vm1722_vm3, %v1767_v25, 0.0 }
 0x183   : > { %v1454_v8 = vpop.permute.xlu0 %1453  ;;  %v1789_v34 = vadd.f32 %v1788_v36, %v1787_v57  ;;  %v1790_v11 = vsel %vm1722_vm3, %v1768_v54, 0.0 }
 0x184   : > { %v7193_v12 = vpop.permute.xlu1 %1458  ;;  %v1499_v24 = vmul.f32 %v7160_v45, %v1454_v8  ;;  %v1734_v8 = vsel %vm1722_vm3, %v7238_v7, 0.0 }
 0x185   : > { %v1500_v62 = vmul.f32 %v7160_v45, %v7193_v12  ;;  %v1735_v38 = vadd.f32 %v1734_v8, %v1733_v48  ;;  %v1791_v22 = vadd.f32 %v1790_v11, %v1789_v34 }
 0x186   : > { %v1615_v53 = vadd.f32 %v1599_v47, %v1499_v24 }
 0x187   : > { %v1656_v20 = vpop.permute.xlu0 %1655  ;;  %v1737_v16 = vadd.f32 %v1736_v61, %v1735_v38 }
 0x188   : > { %v1660_v26 = vpop.permute.xlu1 %1659  ;;  %v1698_v42 = vmul.f32 %v7170_v51, %v1656_v20 }
 0x189   : > { %v1699_v20 = vmul.f32 %v7170_v51, %v1660_v26 }
 0x18a   : > { %v7262_v37 = vadd.f32 %v1698_v42, %v1614_v28 }
 0x18b   : > { %v1559_v50 = vpop.permute.xlu0 %1558  ;;  %v7271_v60 = vadd.f32 %v1699_v20, %v1615_v53 }
 0x18c   : > { %v1564_v55 = vpop.permute.xlu1 %1563  ;;  %v1600_v39 = vmul.f32 %v7157_v44, %v1559_v50  ;;  %v1769_v63 = vmul.f32 %v7262_v37, %v7262_v37  ;;  %v1738_v13 = vsel %vm1722_vm3, %v7262_v37, 0.0 }
 0x18d   : > { %v1601_v49 = vmul.f32 %v7157_v44, %v1564_v55  ;;  %v1770_v19 = vmul.f32 %v7271_v60, %v7271_v60  ;;  %v1739_v23 = vadd.f32 %v1738_v13, %v1737_v16  ;;  %v1740_v24 = vsel %vm1722_vm3, %v7271_v60, 0.0 }
 0x18e   : > { %v1616_v3 = vadd.f32 %v1600_v39, %v1500_v62  ;;  %v1792_v55 = vsel %vm1722_vm3, %v1769_v63, 0.0 }
 0x18f   : > { %v1464_v4 = vpop.permute.xlu0 %1463  ;;  %v1793_v20 = vadd.f32 %v1792_v55, %v1791_v22  ;;  %v1741_v53 = vadd.f32 %v1740_v24, %v1739_v23 }
 0x190   : > { %v1469_v14 = vpop.permute.xlu1 %1468  ;;  %v1501_v50 = vmul.f32 %v7160_v45, %v1464_v4 }
 0x191   : > { %v1502_v42 = vmul.f32 %v7160_v45, %v1469_v14  ;;  %v1794_v14 = vsel %vm1722_vm3, %v1770_v19, 0.0 }
 0x192   : > { %v1617_v21 = vadd.f32 %v1601_v49, %v1501_v50  ;;  %v1795_v57 = vadd.f32 %v1794_v14, %v1793_v20 }
 0x193   : > { %v1664_v52 = vpop.permute.xlu0 %1663 }
 0x194   : > { %v1668_v29 = vpop.permute.xlu1 %1667  ;;  %v1700_v26 = vmul.f32 %v7170_v51, %v1664_v52 }
 0x195   : > { %v1701_v12 = vmul.f32 %v7170_v51, %v1668_v29 }
 0x196   : > { %v7283_v15 = vadd.f32 %v1700_v26, %v1616_v3 }
 0x197   : > { %v1569_v31 = vpop.permute.xlu0 %1568  ;;  %v7292_v52 = vadd.f32 %v1701_v12, %v1617_v21 }
 0x198   : > { %v1574_v56 = vpop.permute.xlu1 %1573  ;;  %v1602_v4 = vmul.f32 %v7157_v44, %v1569_v31  ;;  %v1771_v25 = vmul.f32 %v7283_v15, %v7283_v15  ;;  %v1742_v35 = vsel %vm1722_vm3, %v7283_v15, 0.0 }
 0x199   : > { %v1603_v8 = vmul.f32 %v7157_v44, %v1574_v56  ;;  %v1772_v31 = vmul.f32 %v7292_v52, %v7292_v52  ;;  %v1743_v38 = vadd.f32 %v1742_v35, %v1741_v53  ;;  %v1744_v50 = vsel %vm1722_vm3, %v7292_v52, 0.0 }
 0x19a   : > { %v1618_v28 = vadd.f32 %v1602_v4, %v1502_v42  ;;  %v1796_v54 = vsel %vm1722_vm3, %v1771_v25, 0.0 }
 0x19b   : > { %v1474_v6 = vpop.permute.xlu0 %1473  ;;  %v1797_v63 = vadd.f32 %v1796_v54, %v1795_v57  ;;  %v1798_v3 = vsel %vm1722_vm3, %v1772_v31, 0.0  ;;  %v1745_v4 = vadd.f32 %v1744_v50, %v1743_v38 }
 0x19c   : > { %v1479_v43 = vpop.permute.xlu1 %1478  ;;  %v1503_v29 = vmul.f32 %v7160_v45, %v1474_v6 }
 0x19d   : > { %v1504_v19 = vmul.f32 %v7160_v45, %v1479_v43  ;;  %v1799_v22 = vadd.f32 %v1798_v3, %v1797_v63 }
 0x19e   : > { %v1619_v62 = vadd.f32 %v1603_v8, %v1503_v29 }
 0x19f   : > { %v1672_v58 = vpop.permute.xlu0 %1671 }
 0x1a0   : > { %v1702_v30 = vmul.f32 %v7170_v51, %v1672_v58  ;;  %v1676_v47 = vpop.permute.xlu1 %1675 }
 0x1a1   : > { %v1703_v48 = vmul.f32 %v7170_v51, %v1676_v47 }
 0x1a2   : > { %v7302_v39 = vadd.f32 %v1702_v30, %v1618_v28 }
 0x1a3   : > { %v1579_v36 = vpop.permute.xlu0 %1578  ;;  %v7312_v61 = vadd.f32 %v1703_v48, %v1619_v62 }
 0x1a4   : > { %v1584_v26 = vpop.permute.xlu1 %1583  ;;  %v1773_v56 = vmul.f32 %v7302_v39, %v7302_v39  ;;  %v1746_v49 = vsel %vm1722_vm3, %v7302_v39, 0.0  ;;  %v1604_v12 = vmul.f32 %v7157_v44, %v1579_v36 }
 0x1a5   : > { %v1605_v6 = vmul.f32 %v7157_v44, %v1584_v26  ;;  %v1774_v55 = vmul.f32 %v7312_v61, %v7312_v61  ;;  %v1747_v23 = vadd.f32 %v1746_v49, %v1745_v4  ;;  %v1748_v44 = vsel %vm1722_vm3, %v7312_v61, 0.0 }
 0x1a6   : > { %v1800_v21 = vsel %vm1722_vm3, %v1773_v56, 0.0  ;;  %v1620_v58 = vadd.f32 %v1604_v12, %v1504_v19 }
 0x1a7   : > { %v1484_v34 = vpop.permute.xlu0 %1483  ;;  %v1801_v29 = vadd.f32 %v1800_v21, %v1799_v22  ;;  %v1749_v30 = vadd.f32 %v1748_v44, %v1747_v23 }
 0x1a8   : > { %v1505_v11 = vmul.f32 %v7160_v45, %v1484_v34  ;;  %v1684_v13 = vpop.permute.xlu1 %1683  ;;  %v1802_v45 = vsel %vm1722_vm3, %v1774_v55, 0.0  ;;  %v1818_v55 = vld [vmem:[%s7032_s11] sm:$0x1] }
 0x1a9   : > { %v1705_v16 = vmul.f32 %v7170_v51, %v1684_v13  ;;  %v1803_v35 = vadd.f32 %v1802_v45, %v1801_v29 }
 0x1aa   : > { %v1621_v42 = vadd.f32 %v1605_v6, %v1505_v11 }
 0x1ab   : > { %v1680_v24 = vpop.permute.xlu0 %1679 }
 0x1ac   : > { %v7327_v25 = vadd.f32 %v1705_v16, %v1621_v42  ;;  %v1704_v28 = vmul.f32 %v7170_v51, %v1680_v24 }
 0x1ae   : > { %v1720_v43 = vadd.f32 %v1704_v28, %v1620_v58  ;;  %v1776_v47 = vmul.f32 %v7327_v25, %v7327_v25  ;;  %v1752_v48 = vsel %vm1722_vm3, %v7327_v25, 0.0 }
 0x1b0   : > { %v1750_v20 = vsel %vm1722_vm3, %v1720_v43, 0.0  ;;  %v1775_v14 = vmul.f32 %v1720_v43, %v1720_v43  ;;  %v1806_v36 = vsel %vm1722_vm3, %v1776_v47, 0.0 }
 0x1b1   : > { %v1751_v8 = vadd.f32 %v1750_v20, %v1749_v30  ;;  %v5512_v30 = vld [vmem:[%s7039_s23] ss:$0 sm:$0xff] }
 0x1b2   : > { %v1804_v53 = vsel %vm1722_vm3, %v1775_v14, 0.0 }
 0x1b3   : > { %v1753_v31 = vadd.f32 %v1752_v48, %v1751_v8  ;;  %v1805_v51 = vadd.f32 %v1804_v53, %v1803_v35 }
 0x1b5   : > { %v1754_v54 = vrot.slane %v1753_v31, 4  ;;  %v1807_v62 = vadd.f32 %v1806_v36, %v1805_v51 }
 0x1b7   : > { %v1755_v26 = vadd.f32 %v1754_v54, %v1753_v31  ;;  %v1808_v57 = vrot.slane %v1807_v62, 4 }
 0x1b9   : > { %v1756_v38 = vrot.slane %v1755_v26, 2  ;;  %v1809_v50 = vadd.f32 %v1808_v57, %v1807_v62 }
 0x1bb   : > { %v1757_v56 = vadd.f32 %v1756_v38, %v1755_v26  ;;  %v1810_v63 = vrot.slane %v1809_v50, 2 }
 0x1bd   : > { %v1758_v3 = vrot.slane %v1757_v56, 1  ;;  %v1811_v34 = vadd.f32 %v1810_v63, %v1809_v50 }
 0x1bf   : > { %v1759_v49 = vadd.f32 %v1758_v3, %v1757_v56  ;;  %v1812_v12 = vrot.slane %v1811_v34, 1 }
 0x1c1   : > { %v7338_v6 = vmul.f32 0.0078125, %v1759_v49  ;;  %v1813_v11 = vadd.f32 %v1812_v12, %v1811_v34 }
 0x1c3   : > { %v1814_v13 = vmul.f32 0.0078125, %v1813_v11  ;;  %v1815_v4 = vmul.f32 %v7338_v6, %v7338_v6  ;;  %v1837_v22 = vsub.f32 %v1720_v43, %v7338_v6  ;;  %v1823_v23 = vsub.f32 %v7184_v5, %v7338_v6 }
 0x1c4   : > { %v1824_v44 = vsub.f32 %v7188_v9, %v7338_v6  ;;  %v1825_v58 = vsub.f32 %v7190_v10, %v7338_v6  ;;  %v1826_v28 = vsub.f32 %v7199_v17, %v7338_v6  ;;  %v1827_v29 = vsub.f32 %v7215_v32, %v7338_v6 }
 0x1c5   : > { %v1816_v16 = vsub.f32 %v1814_v13, %v1815_v4  ;;  %v1828_v45 = vsub.f32 %v7225_v59, %v7338_v6  ;;  %v1829_v43 = vsub.f32 %v7238_v7, %v7338_v6  ;;  %v1830_v5 = vsub.f32 %v7254_v27, %v7338_v6 }
 0x1c6   : > { %v1831_v10 = vsub.f32 %v7262_v37, %v7338_v6  ;;  %v1832_v17 = vsub.f32 %v7271_v60, %v7338_v6  ;;  %v1833_v32 = vsub.f32 %v7283_v15, %v7338_v6  ;;  %v1834_v59 = vsub.f32 %v7292_v52, %v7338_v6 }
 0x1c7   : > { %v1817_v19 = vmax.f32 %v1816_v16, 0.0  ;;  %v1835_v7 = vsub.f32 %v7302_v39, %v7338_v6  ;;  %v1836_v27 = vsub.f32 %v7312_v61, %v7338_v6  ;;  %v1838_v47 = vsub.f32 %v7327_v25, %v7338_v6 }
 0x1c9   : > { %v1820_v21 = vadd.f32 1e-05, %v1817_v19 }
 0x1cb   : > { %6401 = vrsqrt.f32 %v1820_v21 }
 0x1d5   : > { %v6402_v42 = vpop.eup %6401 }
 0x1d6   : > { %v1822_v24 = vmul.f32 %v6402_v42, %v1818_v55 }
 0x1d8   : > { %v1842_v9 = vrot.slane %v1822_v24, %v7150_v41 }
 0x1da   : > { %v1857_v37 = vmul.f32 %v1842_v9, %v1837_v22  ;;  %v1843_v20 = vmul.f32 %v1842_v9, %v1823_v23  ;;  %v1844_v14 = vmul.f32 %v1842_v9, %v1824_v44  ;;  %v1845_v60 = vmul.f32 %v1842_v9, %v1825_v58 }
 0x1db   : > { %v1846_v35 = vmul.f32 %v1842_v9, %v1826_v28  ;;  %v1847_v8 = vmul.f32 %v1842_v9, %v1827_v29  ;;  %v1848_v15 = vmul.f32 %v1842_v9, %v1828_v45  ;;  %v1849_v48 = vmul.f32 %v1842_v9, %v1829_v43 }
 0x1dc   : > { %v1877_v53 = vadd.f32 %v5512_v30, %v1857_v37  ;;  %v1863_v31 = vadd.f32 %v5512_v30, %v1843_v20  ;;  %v1864_v52 = vadd.f32 %v5512_v30, %v1844_v14  ;;  %v1865_v51 = vadd.f32 %v5512_v30, %v1845_v60  ;;  %v6280_v14 = vld [vmem:[%s7129_s25 + $0x8] sm:$0xff]  }
 0x1dd   : > { %v1866_v36 = vadd.f32 %v5512_v30, %v1846_v35  ;;  %v1850_v39 = vmul.f32 %v1842_v9, %v1830_v5  ;;  %v1867_v54 = vadd.f32 %v5512_v30, %v1847_v8  ;;  %v1868_v62 = vadd.f32 %v5512_v30, %v1848_v15 }
 0x1de   : > { %v1893_v61 = vmax.f32 %v1877_v53, 0.0  ;;  %v1879_v26 = vmax.f32 %v1863_v31, 0.0  ;;  %v1880_v57 = vmax.f32 %v1864_v52, 0.0  ;;  %v1881_v25 = vmax.f32 %v1865_v51, 0.0 }
 0x1df   : > { %v1882_v38 = vmax.f32 %v1866_v36, 0.0  ;;  %v1869_v50 = vadd.f32 %v5512_v30, %v1849_v48  ;;  %v1870_v56 = vadd.f32 %v5512_v30, %v1850_v39  ;;  %v1883_v63 = vmax.f32 %v1867_v54, 0.0  ;;  %v6281_v39 = vld [vmem:[%s7129_s25 + $0x20] sm:$0xff]  }
 0x1e0   : > { %1909 = vst.msk [vmem:[#allocation2 + $0x70] sm:$0xff] %vm1722_vm3, %v1893_v61  ;;  %1895 = vst.msk [vmem:[#allocation2] sm:$0xff] %vm1722_vm3, %v1879_v26  ;;  %v1884_v3 = vmax.f32 %v1868_v62, 0.0  ;;  %v1851_v34 = vmul.f32 %v1842_v9, %v1831_v10  ;;  %v1852_v49 = vmul.f32 %v1842_v9, %v1832_v17  ;;  %v1853_v12 = vmul.f32 %v1842_v9, %v1833_v32 }
 0x1e1   : > { %1896 = vst.msk [vmem:[#allocation2 + $0x8] sm:$0xff] %vm1722_vm3, %v1880_v57  ;;  %1897 = vst.msk [vmem:[#allocation2 + $0x10] sm:$0xff] %vm1722_vm3, %v1881_v25  ;;  %v1885_v6 = vmax.f32 %v1869_v50, 0.0  ;;  %v1886_v11 = vmax.f32 %v1870_v56, 0.0  ;;  %v1854_v13 = vmul.f32 %v1842_v9, %v1834_v59  ;;  %v1855_v4 = vmul.f32 %v1842_v9, %v1835_v7 }
 0x1e2   : > { %1898 = vst.msk [vmem:[#allocation2 + $0x18] sm:$0xff] %vm1722_vm3, %v1882_v38  ;;  %1899 = vst.msk [vmem:[#allocation2 + $0x20] sm:$0xff] %vm1722_vm3, %v1883_v63  ;;  %v1871_v16 = vadd.f32 %v5512_v30, %v1851_v34  ;;  %v1872_v19 = vadd.f32 %v5512_v30, %v1852_v49  ;;  %v1873_v21 = vadd.f32 %v5512_v30, %v1853_v12  ;;  %v1978_v10 = vand.u32 31, %v7060_v2 }
 0x1e3   : > { %1900 = vst.msk [vmem:[#allocation2 + $0x28] sm:$0xff] %vm1722_vm3, %v1884_v3  ;;  %v1856_v55 = vmul.f32 %v1842_v9, %v1836_v27  ;;  %1901 = vst.msk [vmem:[#allocation2 + $0x30] sm:$0xff] %vm1722_vm3, %v1885_v6  ;;  %v1874_v42 = vadd.f32 %v5512_v30, %v1854_v13  ;;  %v1858_v22 = vmul.f32 %v1842_v9, %v1838_v47  ;;  %v1136_v47 = vadd.s32 32, %v7060_v2 }
 0x1e4   : > { %1902 = vst.msk [vmem:[#allocation2 + $0x38] sm:$0xff] %vm1722_vm3, %v1886_v11  ;;  %v1875_v23 = vadd.f32 %v5512_v30, %v1855_v4  ;;  %v1887_v24 = vmax.f32 %v1871_v16, 0.0  ;;  %v1888_v44 = vmax.f32 %v1872_v19, 0.0  ;;  %v1889_v58 = vmax.f32 %v1873_v21, 0.0  ;;  %v6282_v21 = vld [vmem:[%s7129_s25 + $0x28] sm:$0xff]   ;;  %s7641_s25 = scalar_lea.vmem %s8082_s10, %s7081_s3  ;;  %s8155_s3 = sld [smem:[#allocation37_spill]] }
 0x1e5   : > { %v1876_v28 = vadd.f32 %v5512_v30, %v1856_v55  ;;  %v1890_v29 = vmax.f32 %v1874_v42, 0.0  ;;  %v1878_v45 = vadd.f32 %v5512_v30, %v1858_v22  ;;  %vm2070_vm4 = vcmp.ne.s32.totalorder %v1978_v10, 0  ;;  %v7435_v10 = vld [vmem:[%s7430_s18] sm:$0xff]  }
 0x1e6   : > { %v1891_v43 = vmax.f32 %v1875_v23, 0.0  ;;  %1903 = vst.msk [vmem:[#allocation2 + $0x40] sm:$0xff] %vm1722_vm3, %v1887_v24  ;;  %1904 = vst.msk [vmem:[#allocation2 + $0x48] sm:$0xff] %vm1722_vm3, %v1888_v44  ;;  %v5513_v15 = vsel %vm2070_vm4, 1.0, %v6677_v18  ;;  %v2006_v48 = vand.u32 31, %v1136_v47 }
 0x1e7   : > { %1905 = vst.msk [vmem:[#allocation2 + $0x50] sm:$0xff] %vm1722_vm3, %v1889_v58  ;;  %v1892_v5 = vmax.f32 %v1876_v28, 0.0  ;;  %1906 = vst.msk [vmem:[#allocation2 + $0x58] sm:$0xff] %vm1722_vm3, %v1890_v29  ;;  %v1894_v9 = vmax.f32 %v1878_v45, 0.0 }
 0x1e8   : > { %v1911_v17 = vld [vmem:[#allocation2] ss:$2 sm:$0xff]  ;;  %1907 = vst.msk [vmem:[#allocation2 + $0x60] sm:$0xff] %vm1722_vm3, %v1891_v43  ;;  %v7391_v32 = vld [vmem:[#allocation2 + $0x1] ss:$2 sm:$0xff]  ;;  %vm2074_vm5 = vcmp.ne.s32.totalorder %v2006_v48, 0 }
 0x1e9   : > { %v1913_v30 = vld [vmem:[#allocation2 + $0x10] ss:$2 sm:$0xff]  ;;  %1908 = vst.msk [vmem:[#allocation2 + $0x68] sm:$0xff] %vm1722_vm3, %v1892_v5  ;;  %1910 = vst.msk [vmem:[#allocation2 + $0x78] sm:$0xff] %vm1722_vm3, %v1894_v9  ;;  %v1950_v27 = vrot.slane %v7391_v32, 7  ;;  %v5514_v34 = vsel %vm2074_vm5, 1.0, %v6677_v18 }
 0x1ea   : > { %v2118_v59 = vpack.c.bf16 %v1913_v30, %v1911_v17  ;;  %v1915_v7 = vld [vmem:[#allocation2 + $0x20] ss:$2 sm:$0xff]  ;;  %v1929_v60 = vld [vmem:[#allocation2 + $0x11] ss:$2 sm:$0xff]  ;;  %v1931_v26 = vld [vmem:[#allocation2 + $0x21] ss:$2 sm:$0xff] }
 0x1eb   : > { %v1917_v37 = vld [vmem:[#allocation2 + $0x30] ss:$2 sm:$0xff]  ;;  %v1973_v8 = vsel %vm1082_vm0, 0.0, %v1950_v27  ;;  %v1933_v31 = vld [vmem:[#allocation2 + $0x31] ss:$2 sm:$0xff]  ;;  %v1951_v36 = vrot.slane %v1929_v60, 7  ;;  %v2300_v58 = vpack.c.bf16 %v1929_v60, %v7391_v32 }
 0x1ec   : > { %5817 = vmatprep.mubr.msk.bf16.mxu0 %vm1722_vm3, %v2118_v59  ;;  %v2119_v20 = vpack.c.bf16 %v1917_v37, %v1915_v7  ;;  %v2094_v61 = vmul.f32 %v5513_v15, %v1973_v8  ;;  %v1955_v57 = vrot.slane %v1933_v31, 7  ;;  %v1953_v50 = vrot.slane %v1931_v26, 7  ;;  %v6283_v43 = vld [vmem:[%s7430_s18 + $0x10] sm:$0xff]   ;;  %v6284_v5 = vld [vmem:[%s7430_s18 + $0x18] sm:$0xff]  }
 0x1ed   : > { %v1919_v35 = vld [vmem:[#allocation2 + $0x40] ss:$2 sm:$0xff]  ;;  %v1935_v52 = vld [vmem:[#allocation2 + $0x41] ss:$2 sm:$0xff]  ;;  %v2301_v28 = vpack.c.bf16 %v1933_v31, %v1931_v26  ;;  %5849 = vmatprep.subr.bf16.mxu1 %v6283_v43 }
 0x1ee   : > { %5818 = vmatmul.mubr.msk.bf16.vlgmr.msra.gmra.mrb[0].mxu0 %vm1722_vm3, %v2119_v20  ;;  %v1921_v53 = vld [vmem:[#allocation2 + $0x50] ss:$2 sm:$0xff]  ;;  %v1957_v25 = vrot.slane %v1935_v52, 7  ;;  %v1937_v63 = vld [vmem:[#allocation2 + $0x51] ss:$2 sm:$0xff]  ;;  %v1954_v12 = vsel %vm1082_vm0, %v1951_v36, %v1953_v50  ;;  %v1956_v6 = vsel %vm1082_vm0, %v1953_v50, %v1955_v57  ;;  %5850 = vmatpush3.bf16.msra.mxu1 %v6283_v43 }
 0x1ef   : > { %5826 = vmatpush3.bf16.msra.mxu0 %v7137_v33  ;;  %v2120_v51 = vpack.c.bf16 %v1921_v53, %v1919_v35  ;;  %v1952_v33 = vsel %vm1082_vm0, %v1950_v27, %v1951_v36  ;;  %v1959_v49 = vrot.slane %v1937_v63, 7  ;;  %v2115_v16 = vpack.c.bf16 %v1956_v6, %v1954_v12  ;;  %5851 = vmatprep.subr.bf16.mxu1 %v6284_v5 }
 0x1f0   : > { %5827 = vmatprep.subr.bf16.mxu0 %v6280_v14  ;;  %v1923_v54 = vld [vmem:[#allocation2 + $0x60] ss:$2 sm:$0xff]  ;;  %v1925_v62 = vld [vmem:[#allocation2 + $0x70] ss:$2 sm:$0xff]  ;;  %v2114_v56 = vpack.c.bf16 %v1952_v33, %v2094_v61  ;;  %v1958_v3 = vsel %vm1082_vm0, %v1955_v57, %v1957_v25  ;;  %v1939_v13 = vld [vmem:[#allocation2 + $0x61] ss:$2 sm:$0xff]  ;;  %v2302_v29 = vpack.c.bf16 %v1937_v63, %v1935_v52 }
 0x1f1   : > { %5821 = vmatprep.mubr.msk.bf16.mxu0 %vm1722_vm3, %v2120_v51  ;;  %v2121_v38 = vpack.c.bf16 %v1925_v62, %v1923_v54  ;;  %v2098_v11 = vmul.f32 %v5514_v34, %v1958_v3  ;;  %v1941_v4 = vld [vmem:[#allocation2 + $0x71] ss:$2 sm:$0xff]  ;;  %v1960_v19 = vsel %vm1082_vm0, %v1957_v25, %v1959_v49  ;;  %v1961_v42 = vrot.slane %v1939_v13, 7 }
 0x1f2   : > { %v1963_v22 = vrot.slane %v1941_v4, 7  ;;  %v2303_v45 = vpack.c.bf16 %v1941_v4, %v1939_v13  ;;  %5852 = vmatpush3.bf16.msra.mxu1 %v6284_v5 }
 0x1f3   : > { %5828 = vmatpush3.bf16.msra.mxu0 %v6280_v14  ;;  %v2116_v55 = vpack.c.bf16 %v1960_v19, %v2098_v11  ;;  %v1962_v23 = vsel %vm1082_vm0, %v1959_v49, %v1961_v42  ;;  %5857 = vmatprep.subr.bf16.mxu1 %v7435_v10 }
 0x1f4   : > { %5837 = vmatprep.subr.bf16.mxu0 %v6281_v39  ;;  %v1964_v24 = vsel %vm1082_vm0, %v1961_v42, %v1963_v22 }
 0x1f5   : > { %v2117_v44 = vpack.c.bf16 %v1964_v24, %v1962_v23 }
 0x1f6   : > { %5822 = vmatmul.mubr.msk.bf16.gmra.mrb[4].mxu0 %vm1722_vm3, %v2121_v38 }
 0x1f7   : > { %5829 = vmatprep.mubr.msk.bf16.mxu0 %vm1722_vm3, %v2114_v56 }
 0x1fe   : > { %5830 = vmatmul.mubr.msk.bf16.vlgmr.msra.gmra.mrb[0].mxu0 %vm1722_vm3, %v2115_v16 }
 0x1ff   : > { %5838 = vmatpush3.bf16.msra.mxu0 %v6281_v39  ;;  %5833 = vmatprep.mubr.msk.bf16.mxu0 %vm1722_vm3, %v2116_v55 }
 0x200   : > { %5839 = vmatprep.subr.bf16.mxu0 %v6282_v21 }
 0x203   : > { %5840 = vmatpush3.bf16.msra.mxu0 %v6282_v21 }
 0x204   : > { %5909 = vmatprep.subr.bf16.mxu0 %v6677_v18 }
 0x206   : > { %5834 = vmatmul.mubr.msk.bf16.gmra.mrb[4].mxu0 %vm1722_vm3, %v2117_v44 }
 0x207   : > { %5841 = vmatprep.mubr.msk.bf16.mxu0 %vm1722_vm3, %v2300_v58 }
 0x20e   : > { %5842 = vmatmul.mubr.msk.bf16.vlgmr.msra.gmra.mrb[0].mxu0 %vm1722_vm3, %v2301_v28 }
 0x20f   : > { %5845 = vmatprep.mubr.msk.bf16.mxu0 %vm1722_vm3, %v2302_v29 }
 0x216   : > { %5846 = vmatmul.mubr.msk.bf16.gmra.mrb[4].mxu0 %vm1722_vm3, %v2303_v45 }
 0x217   : > { %5917 = vmatprep.mubr.msk.bf16.mxu0 %vm6678_vm8, %v6677_v18 }
 0x2e1   : > { %v7438_v17 = vpop.f32.mrb[0].mxu0 }
 0x2e2   : > { %v7440_v9 = vpop.f32.mrb[1].mxu0  ;;  %v2425_v7 = vmul.f32 %v7438_v17, %v7438_v17  ;;  %v2404_v14 = vsel %vm1722_vm3, %v7438_v17, 0.0 }
 0x2e3   : > { %v2423_v32 = vmul.f32 %v7440_v9, %v7440_v9  ;;  %v7444_v30 = vpop.f32.mrb[2].mxu0  ;;  %v2401_v27 = vsel %vm1722_vm3, %v7440_v9, 0.0 }
 0x2e4   : > { %v7446_v59 = vpop.f32.mrb[3].mxu0  ;;  %v2426_v35 = vmul.f32 %v7444_v30, %v7444_v30  ;;  %v2434_v53 = vsel %vm1722_vm3, %v2425_v7, 0.0  ;;  %v2406_v31 = vsel %vm1722_vm3, %v7444_v30, 0.0 }
 0x2e5   : > { %v2402_v47 = vsel %vm1722_vm3, %v7446_v59, 0.0  ;;  %v2424_v37 = vmul.f32 %v7446_v59, %v7446_v59  ;;  %v2431_v60 = vsel %vm1722_vm3, %v2423_v32, 0.0 }
 0x2e6   : > { %v2403_v20 = vadd.f32 %v2402_v47, %v2401_v27  ;;  %v2436_v54 = vsel %vm1722_vm3, %v2426_v35, 0.0 }
 0x2e7   : > { %v2432_v8 = vsel %vm1722_vm3, %v2424_v37, 0.0 }
 0x2e8   : > { %v2405_v15 = vadd.f32 %v2404_v14, %v2403_v20  ;;  %v2433_v48 = vadd.f32 %v2432_v8, %v2431_v60 }
 0x2e9   : > { %v7465_v52 = vpop.f32.mrb[4].mxu0 }
 0x2ea   : > { %v2435_v51 = vadd.f32 %v2434_v53, %v2433_v48  ;;  %v2378_v36 = vpop.f32.mrb[5].mxu0  ;;  %v2407_v39 = vadd.f32 %v2406_v31, %v2405_v15  ;;  %v2429_v33 = vmul.f32 %v7465_v52, %v7465_v52  ;;  %v2412_v49 = vsel %vm1722_vm3, %v7465_v52, 0.0 }
 0x2eb   : > { %v2408_v62 = vsel %vm1722_vm3, %v2378_v36, 0.0  ;;  %v2427_v61 = vmul.f32 %v2378_v36, %v2378_v36  ;;  %v5848_v26 = vpop.f32.mrb[6].mxu0 }
 0x2ec   : > { %v2409_v57 = vadd.f32 %v2408_v62, %v2407_v39  ;;  %v2437_v25 = vadd.f32 %v2436_v54, %v2435_v51  ;;  %v2381_v38 = vpop.f32.mrb[7].mxu0  ;;  %v2430_v12 = vmul.f32 %v5848_v26, %v5848_v26  ;;  %v2442_v4 = vsel %vm1722_vm3, %v2429_v33, 0.0  ;;  %v2456_v54 = vld [vmem:[%s7032_s11 + $0x1] sm:$0x1] }
 0x2ed   : > { %v2438_v50 = vsel %vm1722_vm3, %v2427_v61, 0.0  ;;  %v2410_v56 = vsel %vm1722_vm3, %v2381_v38, 0.0  ;;  %v2428_v63 = vmul.f32 %v2381_v38, %v2381_v38  ;;  %v2414_v16 = vsel %vm1722_vm3, %v5848_v26, 0.0 }
 0x2ee   : > { %v2439_v3 = vadd.f32 %v2438_v50, %v2437_v25  ;;  %v2411_v34 = vadd.f32 %v2410_v56, %v2409_v57  ;;  %v2444_v55 = vsel %vm1722_vm3, %v2430_v12, 0.0  ;;  %v5533_v57 = vld [vmem:[%s7039_s23 + $0x1] ss:$0 sm:$0xff] }
 0x2ef   : > { %v2440_v6 = vsel %vm1722_vm3, %v2428_v63, 0.0 }
 0x2f0   : > { %v2413_v11 = vadd.f32 %v2412_v49, %v2411_v34  ;;  %v2441_v13 = vadd.f32 %v2440_v6, %v2439_v3 }
 0x2f2   : > { %v2415_v19 = vadd.f32 %v2414_v16, %v2413_v11  ;;  %v2443_v21 = vadd.f32 %v2442_v4, %v2441_v13 }
 0x2f4   : > { %v2416_v42 = vrot.slane %v2415_v19, 4  ;;  %v2445_v22 = vadd.f32 %v2444_v55, %v2443_v21 }
 0x2f6   : > { %v2417_v23 = vadd.f32 %v2416_v42, %v2415_v19  ;;  %v2446_v24 = vrot.slane %v2445_v22, 4 }
 0x2f8   : > { %v2418_v44 = vrot.slane %v2417_v23, 2  ;;  %v2447_v58 = vadd.f32 %v2446_v24, %v2445_v22  ;;  %v1134_v22 = vadd.s32 16, %v7060_v2 }
 0x2fa   : > { %v2419_v28 = vadd.f32 %v2418_v44, %v2417_v23  ;;  %v2448_v29 = vrot.slane %v2447_v58, 2  ;;  %v2558_v24 = vand.u32 15, %v1134_v22 }
 0x2fc   : > { %v2420_v45 = vrot.slane %v2419_v28, 1  ;;  %v2449_v43 = vadd.f32 %v2448_v29, %v2447_v58  ;;  %vm2590_vm7 = vcmp.ne.s32.totalorder %v2558_v24, 0 }
 0x2fe   : > { %v2421_v5 = vadd.f32 %v2420_v45, %v2419_v28  ;;  %v2450_v32 = vrot.slane %v2449_v43, 1 }
 0x300   : > { %v2422_v7 = vmul.f32 0.015625, %v2421_v5  ;;  %v2451_v27 = vadd.f32 %v2450_v32, %v2449_v43 }
 0x302   : > { %v2452_v47 = vmul.f32 0.015625, %v2451_v27  ;;  %v2453_v37 = vmul.f32 %v2422_v7, %v2422_v7  ;;  %v2461_v20 = vsub.f32 %v7440_v9, %v2422_v7  ;;  %v2462_v14 = vsub.f32 %v7446_v59, %v2422_v7 }
 0x303   : > { %v2465_v60 = vsub.f32 %v2378_v36, %v2422_v7  ;;  %v2466_v35 = vsub.f32 %v2381_v38, %v2422_v7  ;;  %v2467_v8 = vsub.f32 %v7465_v52, %v2422_v7  ;;  %v2468_v15 = vsub.f32 %v5848_v26, %v2422_v7 }
 0x304   : > { %v2454_v48 = vsub.f32 %v2452_v47, %v2453_v37  ;;  %v2463_v53 = vsub.f32 %v7438_v17, %v2422_v7  ;;  %v2464_v31 = vsub.f32 %v7444_v30, %v2422_v7  ;;  %v2544_v59 = vand.u32 15, %v7060_v2  ;;  %v6286_v37 = vld [vmem:[%s7430_s18 + $0x8] sm:$0xff]  }
 0x306   : > { %v2455_v51 = vmax.f32 %v2454_v48, 0.0  ;;  %vm2588_vm6 = vcmp.ne.s32.totalorder %v2544_v59, 0  ;;  %v6290_v59 = vld [vmem:[%s7518_s9 + $0x28] sm:$0xff]  }
 0x307   : > { %v5534_v23 = vsel %vm2588_vm6, 1.0, %v6677_v18 }
 0x308   : > { %v2458_v39 = vadd.f32 1e-05, %v2455_v51 }
 0x30a   : > { %6403 = vrsqrt.f32 %v2458_v39 }
 0x314   : > { %v6404_v62 = vpop.eup %6403 }
 0x315   : > { %v2460_v61 = vmul.f32 %v6404_v62, %v2456_v54  ;;  %v6288_v62 = vld [vmem:[%s7430_s18 + $0x28] sm:$0xff]  }
 0x317   : > { %v2472_v9 = vrot.slane %v2460_v61, %v7150_v41 }
 0x319   : > { %v2473_v36 = vmul.f32 %v2472_v9, %v2461_v20  ;;  %v2474_v25 = vmul.f32 %v2472_v9, %v2462_v14  ;;  %v2477_v52 = vmul.f32 %v2472_v9, %v2465_v60  ;;  %v2478_v26 = vmul.f32 %v2472_v9, %v2466_v35 }
 0x31a   : > { %v2479_v38 = vmul.f32 %v2472_v9, %v2467_v8  ;;  %v2480_v33 = vmul.f32 %v2472_v9, %v2468_v15  ;;  %v2475_v17 = vmul.f32 %v2472_v9, %v2463_v53  ;;  %v2476_v50 = vmul.f32 %v2472_v9, %v2464_v31  ;;  %v6287_v15 = vld [vmem:[%s7430_s18 + $0x20] sm:$0xff]  }
 0x31b   : > { %v2485_v30 = vadd.f32 %v5533_v57, %v2473_v36  ;;  %v2486_v56 = vadd.f32 %v5533_v57, %v2474_v25  ;;  %v2489_v63 = vadd.f32 %v5533_v57, %v2477_v52  ;;  %v2490_v3 = vadd.f32 %v5533_v57, %v2478_v26  ;;  %v6291_v36 = vld [vmem:[%s7518_s9 + $0x30] sm:$0xff]   ;;  %v6292_v25 = vld [vmem:[%s7518_s9 + $0x38] sm:$0xff]  }
 0x31c   : > { %v2491_v34 = vadd.f32 %v5533_v57, %v2479_v38  ;;  %v2492_v49 = vadd.f32 %v5533_v57, %v2480_v33  ;;  %v2487_v12 = vadd.f32 %v5533_v57, %v2475_v17  ;;  %v2488_v6 = vadd.f32 %v5533_v57, %v2476_v50  ;;  %v6289_v57 = vld [vmem:[%s7518_s9 + $0x20] sm:$0xff]  }
 0x31d   : > { %v2493_v11 = vmax.f32 %v2485_v30, 0.0  ;;  %v2494_v13 = vmax.f32 %v2486_v56, 0.0  ;;  %v2497_v4 = vmax.f32 %v2489_v63, 0.0  ;;  %v2498_v16 = vmax.f32 %v2490_v3, 0.0 }
 0x31e   : > { %v2499_v19 = vmax.f32 %v2491_v34, 0.0  ;;  %v2500_v21 = vmax.f32 %v2492_v49, 0.0  ;;  %v2495_v55 = vmax.f32 %v2487_v12, 0.0  ;;  %v2496_v42 = vmax.f32 %v2488_v6, 0.0 }
 0x31f   : > { %2506 = vst.msk [vmem:[#allocation3 + $0x28] sm:$0xff] %vm1722_vm3, %v2498_v16  ;;  %2501 = vst.msk [vmem:[#allocation3] sm:$0xff] %vm1722_vm3, %v2493_v11  ;;  %v5535_v31 = vsel %vm2590_vm7, 1.0, %v6677_v18 }
 0x320   : > { %2502 = vst.msk [vmem:[#allocation3 + $0x8] sm:$0xff] %vm1722_vm3, %v2494_v13  ;;  %2505 = vst.msk [vmem:[#allocation3 + $0x20] sm:$0xff] %vm1722_vm3, %v2497_v4 }
 0x321   : > { %2507 = vst.msk [vmem:[#allocation3 + $0x30] sm:$0xff] %vm1722_vm3, %v2499_v19  ;;  %2508 = vst.msk [vmem:[#allocation3 + $0x38] sm:$0xff] %vm1722_vm3, %v2500_v21 }
 0x322   : > { %2503 = vst.msk [vmem:[#allocation3 + $0x10] sm:$0xff] %vm1722_vm3, %v2495_v55  ;;  %2504 = vst.msk [vmem:[#allocation3 + $0x18] sm:$0xff] %vm1722_vm3, %v2496_v42 }
 0x327   : > { %v2509_v44 = vld [vmem:[#allocation3] ss:$2 sm:$0xff]  ;;  %v2517_v28 = vld [vmem:[#allocation3 + $0x1] ss:$2 sm:$0xff] }
 0x328   : > { %v2513_v58 = vld [vmem:[#allocation3 + $0x20] ss:$2 sm:$0xff]  ;;  %v2515_v45 = vld [vmem:[#allocation3 + $0x30] ss:$2 sm:$0xff]  ;;  %v2528_v7 = vrot.slane %v2517_v28, 7 }
 0x329   : > { %v2511_v29 = vld [vmem:[#allocation3 + $0x10] ss:$2 sm:$0xff]  ;;  %v2519_v43 = vld [vmem:[#allocation3 + $0x11] ss:$2 sm:$0xff]  ;;  %v2619_v32 = vpack.c.bf16 %v2515_v45, %v2513_v58  ;;  %v2521_v47 = vld [vmem:[#allocation3 + $0x21] ss:$2 sm:$0xff] }
 0x32a   : > { %v2618_v5 = vpack.c.bf16 %v2511_v29, %v2509_v44  ;;  %v2529_v27 = vrot.slane %v2519_v43, 7  ;;  %v2539_v20 = vsel %vm1082_vm0, 0.0, %v2528_v7  ;;  %v2531_v14 = vrot.slane %v2521_v47, 7  ;;  %v2523_v48 = vld [vmem:[#allocation3 + $0x31] ss:$2 sm:$0xff] }
 0x32b   : > { %v2600_v60 = vmul.f32 %v5534_v23, %v2539_v20  ;;  %v2533_v51 = vrot.slane %v2523_v48, 7  ;;  %v2754_v61 = vpack.c.bf16 %v2519_v43, %v2517_v28  ;;  %v2755_v9 = vpack.c.bf16 %v2523_v48, %v2521_v47 }
 0x32c   : > { %5853 = vmatprep.mubr.msk.bf16.mxu1 %vm1722_vm3, %v2618_v5  ;;  %v2530_v35 = vsel %vm1082_vm0, %v2528_v7, %v2529_v27  ;;  %v2532_v53 = vsel %vm1082_vm0, %v2529_v27, %v2531_v14 }
 0x32d   : > { %5854 = vmatmul.mubr.msk.bf16.vlgmr.msra.gmra.mrb[0].mxu1 %vm1722_vm3, %v2619_v32  ;;  %v2616_v8 = vpack.c.bf16 %v2530_v35, %v2600_v60  ;;  %v2602_v39 = vmul.f32 %v5535_v31, %v2532_v53  ;;  %v2534_v54 = vsel %vm1082_vm0, %v2531_v14, %v2533_v51  ;;  %v2863_v53 = vld [vmem:[%s7032_s11 + $0x2] sm:$0x1] }
 0x32e   : > { %5858 = vmatpush3.bf16.msra.mxu1 %v7435_v10 }
 0x32f   : > { %5859 = vmatprep.subr.bf16.mxu1 %v6286_v37  ;;  %5861 = vmatprep.mubr.msk.bf16.mxu1 %vm1722_vm3, %v2616_v8  ;;  %v2617_v10 = vpack.c.bf16 %v2534_v54, %v2602_v39  ;;  %v5548_v54 = vld [vmem:[%s7039_s23 + $0x2] ss:$0 sm:$0xff] }
 0x332   : > { %5860 = vmatpush3.bf16.msra.mxu1 %v6286_v37 }
 0x333   : > { %5865 = vmatprep.subr.bf16.mxu1 %v6287_v15 }
 0x339   : > { %5862 = vmatmul.mubr.msk.bf16.vlgmr.msra.gmra.mrb[0].mxu1 %vm1722_vm3, %v2617_v10 }
 0x33a   : > { %5866 = vmatpush3.bf16.msra.mxu1 %v6287_v15  ;;  %5869 = vmatprep.mubr.msk.bf16.mxu1 %vm1722_vm3, %v2754_v61 }
 0x33b   : > { %5867 = vmatprep.subr.bf16.mxu1 %v6288_v62 }
 0x33e   : > { %5868 = vmatpush3.bf16.msra.mxu1 %v6288_v62 }
 0x33f   : > { %5873 = vmatprep.subr.bf16.mxu1 %v6677_v18 }
 0x345   : > { %5870 = vmatmul.mubr.msk.bf16.vlgmr.msra.gmra.mrb[0].mxu1 %vm1722_vm3, %v2755_v9  ;;  %vm4725_vm3 = vcmask 130048  }
 0x346   : > { %5874 = vmatpush3.bf16.msra.mxu1 %v6289_v57  ;;  %5881 = vmatprep.mubr.msk.bf16.mxu1 %vm6678_vm8, %v6677_v18 }
 0x347   : > { %5875 = vmatprep.subr.bf16.mxu1 %v6677_v18 }
 0x34a   : > { %5876 = vmatpush3.bf16.msra.mxu1 %v6290_v59 }
 0x34b   : > { %5877 = vmatprep.subr.bf16.mxu1 %v6677_v18 }
 0x34e   : > { %5878 = vmatpush3.bf16.msra.mxu1 %v6291_v36 }
 0x34f   : > { %5879 = vmatprep.subr.bf16.mxu1 %v6677_v18 }
 0x352   : > { %5880 = vmatpush3.bf16.msra.mxu1 %v6292_v25 }
 0x353   : > { %5885 = vmatprep.subr.bf16.mxu1 %v6677_v18 }
 0x418   : > { %v5871_v52 = vpop.f32.mrb[0].mxu1 }
 0x419   : > { %v2808_v26 = vpop.f32.mrb[1].mxu1  ;;  %v2844_v50 = vmul.f32 %v5871_v52, %v5871_v52  ;;  %v2831_v34 = vsel %vm2827_vm9, %v5871_v52, 0.0 }
 0x41a   : > { %v2842_v38 = vmul.f32 %v2808_v26, %v2808_v26  ;;  %v5872_v33 = vpop.f32.mrb[2].mxu1  ;;  %v2828_v30 = vsel %vm2827_vm9, %v2808_v26, 0.0 }
 0x41b   : > { %v2811_v17 = vpop.f32.mrb[3].mxu1  ;;  %v2845_v12 = vmul.f32 %v5872_v33, %v5872_v33  ;;  %v2849_v4 = vsel %vm2827_vm9, %v2844_v50, 0.0  ;;  %v2833_v16 = vsel %vm2827_vm9, %v5872_v33, 0.0 }
 0x41c   : > { %v2829_v56 = vsel %vm2827_vm9, %v2811_v17, 0.0  ;;  %v2843_v63 = vmul.f32 %v2811_v17, %v2811_v17  ;;  %v2846_v49 = vsel %vm2827_vm9, %v2842_v38, 0.0 }
 0x41d   : > { %v2830_v3 = vadd.f32 %v2829_v56, %v2828_v30  ;;  %v2851_v55 = vsel %vm2827_vm9, %v2845_v12, 0.0  ;;  %v6293_v56 = vld [vmem:[%s7518_s9] sm:$0xff]  }
 0x41e   : > { %v2847_v6 = vsel %vm2827_vm9, %v2843_v63, 0.0 }
 0x41f   : > { %v2832_v11 = vadd.f32 %v2831_v34, %v2830_v3  ;;  %v2848_v13 = vadd.f32 %v2847_v6, %v2846_v49  ;;  %v2913_v49 = vand.u32 7, %v7060_v2  ;;  %v6294_v6 = vld [vmem:[%s7518_s9 + $0x8] sm:$0xff]  }
 0x421   : > { %v2834_v19 = vadd.f32 %v2833_v16, %v2832_v11  ;;  %v2850_v21 = vadd.f32 %v2849_v4, %v2848_v13  ;;  %vm2933_vm10 = vcmp.ne.s32.totalorder %v2913_v49, 0  ;;  %v6295_v4 = vld [vmem:[%s7518_s9 + $0x10] sm:$0xff]  }
 0x423   : > { %v2835_v42 = vrot.slane %v2834_v19, 4  ;;  %v2852_v22 = vadd.f32 %v2851_v55, %v2850_v21  ;;  %v5549_v21 = vsel %vm2933_vm10, 1.0, %v6677_v18  ;;  %vm5063_vm10 = vcmask 8200  }
 0x425   : > { %v2836_v23 = vadd.f32 %v2835_v42, %v2834_v19  ;;  %v2853_v24 = vrot.slane %v2852_v22, 4  ;;  %v6296_v42 = vld [vmem:[%s7518_s9 + $0x18] sm:$0xff]  }
 0x427   : > { %v2837_v44 = vrot.slane %v2836_v23, 2  ;;  %v2854_v58 = vadd.f32 %v2853_v24, %v2852_v22  ;;  %v6297_v24 = vld [vmem:[%s7518_s9 + $0x40] sm:$0xff]  }
 0x429   : > { %v2838_v28 = vadd.f32 %v2837_v44, %v2836_v23  ;;  %v2855_v29 = vrot.slane %v2854_v58, 2 }
 0x42b   : > { %v2839_v45 = vrot.slane %v2838_v28, 1  ;;  %v2856_v43 = vadd.f32 %v2855_v29, %v2854_v58  ;;  %v6298_v58 = vld [vmem:[%s7518_s9 + $0x48] sm:$0xff]   ;;  %v6300_v29 = vld [vmem:[%s7518_s9 + $0x58] sm:$0xff]  }
 0x42d   : > { %v2840_v5 = vadd.f32 %v2839_v45, %v2838_v28  ;;  %v2857_v32 = vrot.slane %v2856_v43, 1  ;;  %v6299_v28 = vld [vmem:[%s7518_s9 + $0x50] sm:$0xff]  }
 0x42f   : > { %v2841_v7 = vmul.f32 0.03125, %v2840_v5  ;;  %v2858_v27 = vadd.f32 %v2857_v32, %v2856_v43  ;;  %v6301_v43 = vld [vmem:[%s7024_s16 + $0x20] sm:$0xff]   ;;  %v6302_v5 = vld [vmem:[%s7024_s16 + $0x28] sm:$0xff]   ;;  %v6303_v32 = vld [vmem:[%s7024_s16 + $0x30] sm:$0xff]  }
 0x430   : > { %5910 = vmatpush3.bf16.msra.mxu0 %v6301_v43  ;;  %v6308_v43 = vld [vmem:[%s7024_s16 + $0x18] sm:$0xff]  }
 0x431   : > { %v2859_v47 = vmul.f32 0.03125, %v2858_v27  ;;  %v2860_v37 = vmul.f32 %v2841_v7, %v2841_v7  ;;  %v2868_v20 = vsub.f32 %v2808_v26, %v2841_v7  ;;  %v2869_v14 = vsub.f32 %v2811_v17, %v2841_v7  ;;  %5911 = vmatprep.subr.bf16.mxu0 %v6677_v18 }
 0x432   : > { %v2870_v60 = vsub.f32 %v5871_v52, %v2841_v7  ;;  %v2871_v35 = vsub.f32 %v5872_v33, %v2841_v7  ;;  %v1133_v17 = vadd.s32 8, %v7060_v2  ;;  %v6304_v7 = vld [vmem:[%s7024_s16 + $0x38] sm:$0xff]  }
 0x433   : > { %v2861_v8 = vsub.f32 %v2859_v47, %v2860_v37 }
 0x434   : > { %v2920_v12 = vand.u32 7, %v1133_v17  ;;  %5912 = vmatpush3.bf16.msra.mxu0 %v6302_v5 }
 0x435   : > { %v2862_v15 = vmax.f32 %v2861_v8, 0.0  ;;  %5913 = vmatprep.subr.bf16.mxu0 %v6677_v18 }
 0x436   : > { %vm2934_vm11 = vcmp.ne.s32.totalorder %v2920_v12, 0 }
 0x437   : > { %v2865_v48 = vadd.f32 1e-05, %v2862_v15  ;;  %v5550_v55 = vsel %vm2934_vm11, 1.0, %v6677_v18 }
 0x438   : > { %5914 = vmatpush3.bf16.msra.mxu0 %v6303_v32  ;;  %v6309_v32 = vld [vmem:[%s7024_s16 + $0x40] sm:$0xff]  }
 0x439   : > { %6405 = vrsqrt.f32 %v2865_v48  ;;  %5915 = vmatprep.subr.bf16.mxu0 %v6677_v18 }
 0x43c   : > { %5916 = vmatpush3.bf16.msra.mxu0 %v6304_v7 }
 0x43d   : > { %5921 = vmatprep.subr.bf16.mxu0 %v6677_v18 }
 0x443   : > { %v6406_v31 = vpop.eup %6405 }
 0x444   : > { %v2867_v51 = vmul.f32 %v6406_v31, %v2863_v53 }
 0x446   : > { %v2875_v39 = vrot.slane %v2867_v51, %v7150_v41 }
 0x448   : > { %v2876_v10 = vmul.f32 %v2875_v39, %v2868_v20  ;;  %v2877_v62 = vmul.f32 %v2875_v39, %v2869_v14  ;;  %v2878_v61 = vmul.f32 %v2875_v39, %v2870_v60  ;;  %v2879_v9 = vmul.f32 %v2875_v39, %v2871_v35 }
 0x44a   : > { %v2884_v57 = vadd.f32 %v5548_v54, %v2876_v10  ;;  %v2885_v59 = vadd.f32 %v5548_v54, %v2877_v62  ;;  %v2886_v36 = vadd.f32 %v5548_v54, %v2878_v61  ;;  %v2887_v25 = vadd.f32 %v5548_v54, %v2879_v9 }
 0x44c   : > { %v2888_v52 = vmax.f32 %v2884_v57, 0.0  ;;  %v2889_v26 = vmax.f32 %v2885_v59, 0.0  ;;  %v2890_v38 = vmax.f32 %v2886_v36, 0.0  ;;  %v2891_v33 = vmax.f32 %v2887_v25, 0.0 }
 0x44e   : > { %2892 = vst.msk [vmem:[#allocation2] sm:$0xff] %vm2827_vm9, %v2888_v52  ;;  %2893 = vst.msk [vmem:[#allocation2 + $0x8] sm:$0xff] %vm2827_vm9, %v2889_v26 }
 0x44f   : > { %2894 = vst.msk [vmem:[#allocation2 + $0x10] sm:$0xff] %vm2827_vm9, %v2890_v38  ;;  %2895 = vst.msk [vmem:[#allocation2 + $0x18] sm:$0xff] %vm2827_vm9, %v2891_v33 }
 0x455   : > { %v2896_v50 = vld [vmem:[#allocation2] ss:$2 sm:$0xff]  ;;  %v2899_v3 = vld [vmem:[#allocation2 + $0x1] ss:$2 sm:$0xff] }
 0x456   : > { %v2898_v30 = vld [vmem:[#allocation2 + $0x10] ss:$2 sm:$0xff]  ;;  %v2900_v34 = vld [vmem:[#allocation2 + $0x11] ss:$2 sm:$0xff]  ;;  %v2903_v11 = vrot.slane %v2899_v3, 7 }
 0x457   : > { %v2966_v63 = vpack.c.bf16 %v2898_v30, %v2896_v50  ;;  %v2904_v13 = vrot.slane %v2900_v34, 7  ;;  %v3103_v45 = vpack.c.bf16 %v2900_v34, %v2899_v3  ;;  %v3199_v3 = vld [vmem:[%s7032_s11 + $0x3] sm:$0x1] }
 0x458   : > { %v2908_v19 = vsel %vm1082_vm0, 0.0, %v2903_v11 }
 0x459   : > { %5882 = vmatmul.mubr.msk.bf16.vlgmr.msra.gmra.mrb[4].mxu1 %vm2827_vm9, %v2966_v63  ;;  %v2905_v16 = vsel %vm1082_vm0, %v2903_v11, %v2904_v13  ;;  %v2939_v22 = vmul.f32 %v5549_v21, %v2908_v19 }
 0x45a   : > { %5886 = vmatpush3.bf16.msra.mxu1 %v6293_v56  ;;  %5893 = vmatprep.mubr.msk.bf16.mxu1 %vm6678_vm8, %v6677_v18  ;;  %v2940_v23 = vmul.f32 %v5550_v55, %v2905_v16 }
 0x45b   : > { %5887 = vmatprep.subr.bf16.mxu1 %v6677_v18 }
 0x45c   : > { %v2965_v44 = vpack.c.bf16 %v2940_v23, %v2939_v22 }
 0x45e   : > { %5888 = vmatpush3.bf16.msra.mxu1 %v6294_v6  ;;  %v5566_v6 = vld [vmem:[%s7039_s23 + $0x3] ss:$0 sm:$0xff] }
 0x45f   : > { %5889 = vmatprep.subr.bf16.mxu1 %v6677_v18 }
 0x462   : > { %5890 = vmatpush3.bf16.msra.mxu1 %v6295_v4 }
 0x463   : > { %5891 = vmatprep.subr.bf16.mxu1 %v6677_v18 }
 0x466   : > { %5892 = vmatpush3.bf16.msra.mxu1 %v6296_v42  ;;  %v6305_v42 = vld [vmem:[%s7024_s16] sm:$0xff]  }
 0x467   : > { %5897 = vmatprep.subr.bf16.mxu1 %v6677_v18 }
 0x469   : > { %5894 = vmatmul.mubr.msk.bf16.vlgmr.msra.gmra.mrb[4].mxu1 %vm2827_vm9, %v2965_v44  ;;  %v6306_v44 = vld [vmem:[%s7024_s16 + $0x8] sm:$0xff]  }
 0x46a   : > { %5898 = vmatpush3.bf16.msra.mxu1 %v6297_v24  ;;  %5905 = vmatprep.mubr.msk.bf16.mxu1 %vm6678_vm8, %v6677_v18  ;;  %v3232_v24 = vand.u32 3, %v7060_v2 }
 0x46b   : > { %5899 = vmatprep.subr.bf16.mxu1 %v6677_v18 }
 0x46c   : > { %vm3240_vm12 = vcmp.ne.s32.totalorder %v3232_v24, 0  ;;  %v6322_v24 = vld [vmem:[%s7091_s17 + $0x8] sm:$0xff]  }
 0x46e   : > { %5900 = vmatpush3.bf16.msra.mxu1 %v6298_v58 }
 0x46f   : > { %5901 = vmatprep.subr.bf16.mxu1 %v6677_v18 }
 0x472   : > { %5902 = vmatpush3.bf16.msra.mxu1 %v6299_v28  ;;  %v6307_v28 = vld [vmem:[%s7024_s16 + $0x10] sm:$0xff]  }
 0x473   : > { %5903 = vmatprep.subr.bf16.mxu1 %v6677_v18 }
 0x476   : > { %5904 = vmatpush3.bf16.msra.mxu1 %v6300_v29 }
 0x477   : > { %5945 = vmatprep.subr.bf16.mxu1 %v6677_v18 }
 0x479   : > { %5906 = vmatmul.mubr.msk.bf16.vlgmr.msra.gmra.mrb[4].mxu1 %vm2827_vm9, %v3103_v45  ;;  %v5567_v45 = vsel %vm3240_vm12, 1.0, %v6677_v18 }
 0x47a   : > { %5961 = vmatprep.mubr.msk.bf16.mxu1 %vm6678_vm8, %v6677_v18 }
 0x54c   : > { %v3165_v27 = vpop.f32.mrb[4].mxu1 }
 0x54d   : > { %v3184_v47 = vmul.f32 %v3165_v27, %v3165_v27  ;;  %v5907_v37 = vpop.f32.mrb[5].mxu1  ;;  %v3174_v14 = vsel %vm2827_vm9, %v3165_v27, 0.0 }
 0x54e   : > { %v3168_v20 = vpop.f32.mrb[6].mxu1  ;;  %v6312_v37 = vld [vmem:[%s7024_s16 + $0x58] sm:$0xff]  }
 0x54f   : > { %v3175_v60 = vsel %vm2827_vm9, %v3168_v20, 0.0  ;;  %v3185_v35 = vmul.f32 %v3168_v20, %v3168_v20  ;;  %v5908_v8 = vpop.f32.mrb[7].mxu1  ;;  %v3186_v48 = vsel %vm2827_vm9, %v3184_v47, 0.0  ;;  %v6311_v47 = vld [vmem:[%s7024_s16 + $0x50] sm:$0xff]  }
 0x550   : > { %v3176_v15 = vadd.f32 %v3175_v60, %v3174_v14  ;;  %v6313_v14 = vld [vmem:[%s7091_s17 + $0x40] sm:$0xff]   ;;  %v6314_v60 = vld [vmem:[%s7091_s17 + $0x48] sm:$0xff]   ;;  %v6316_v8 = vld [vmem:[%s7091_s17 + $0x58] sm:$0xff]  }
 0x551   : > { %v3187_v53 = vsel %vm2827_vm9, %v3185_v35, 0.0  ;;  %5946 = vmatpush3.bf16.msra.mxu1 %v6313_v14  ;;  %v6315_v35 = vld [vmem:[%s7091_s17 + $0x50] sm:$0xff]   ;;  %v6330_v14 = vld [vmem:[%s7091_s17 + $0x88] sm:$0xff]  }
 0x552   : > { %v3177_v31 = vrot.slane %v3176_v15, 4  ;;  %v3188_v51 = vadd.f32 %v3187_v53, %v3186_v48  ;;  %5947 = vmatprep.subr.bf16.mxu1 %v6677_v18  ;;  %v6318_v48 = vld [vmem:[%s7091_s17 + $0x68] sm:$0xff]   ;;  %v6319_v53 = vld [vmem:[%s7091_s17 + $0x70] sm:$0xff]  }
 0x554   : > { %v3178_v39 = vadd.f32 %v3177_v31, %v3176_v15  ;;  %v3189_v54 = vrot.slane %v3188_v51, 4  ;;  %v6317_v15 = vld [vmem:[%s7091_s17 + $0x60] sm:$0xff]   ;;  %v6320_v31 = vld [vmem:[%s7091_s17 + $0x78] sm:$0xff]  }
 0x555   : > { %5948 = vmatpush3.bf16.msra.mxu1 %v6314_v60  ;;  %v6331_v60 = vld [vmem:[%s7091_s17 + $0x90] sm:$0xff]  }
 0x556   : > { %v3179_v10 = vrot.slane %v3178_v39, 2  ;;  %v3190_v62 = vadd.f32 %v3189_v54, %v3188_v51  ;;  %5949 = vmatprep.subr.bf16.mxu1 %v6677_v18 }
 0x558   : > { %v3180_v61 = vadd.f32 %v3179_v10, %v3178_v39  ;;  %v3191_v9 = vrot.slane %v3190_v62, 2 }
 0x559   : > { %5950 = vmatpush3.bf16.msra.mxu1 %v6315_v35  ;;  %v6332_v35 = vld [vmem:[%s7091_s17 + $0x98] sm:$0xff]  }
 0x55a   : > { %v3181_v57 = vrot.slane %v3180_v61, 1  ;;  %v3192_v59 = vadd.f32 %v3191_v9, %v3190_v62  ;;  %5951 = vmatprep.subr.bf16.mxu1 %v6677_v18 }
 0x55c   : > { %v3182_v36 = vadd.f32 %v3181_v57, %v3180_v61  ;;  %v3193_v25 = vrot.slane %v3192_v59, 1 }
 0x55d   : > { %5952 = vmatpush3.bf16.msra.mxu1 %v6316_v8  ;;  %v6333_v8 = vld [vmem:[%s7091_s17 + $0xa0] sm:$0xff]  }
 0x55e   : > { %v3183_v52 = vmul.f32 0.0625, %v3182_v36  ;;  %v3194_v26 = vadd.f32 %v3193_v25, %v3192_v59  ;;  %5953 = vmatprep.subr.bf16.mxu1 %v6677_v18 }
 0x560   : > { %v3195_v38 = vmul.f32 0.0625, %v3194_v26  ;;  %v3196_v33 = vmul.f32 %v3183_v52, %v3183_v52  ;;  %v3204_v17 = vsub.f32 %v3165_v27, %v3183_v52  ;;  %v3205_v50 = vsub.f32 %v3168_v20, %v3183_v52  ;;  %v6310_v27 = vld [vmem:[%s7024_s16 + $0x48] sm:$0xff]   ;;  %s8158_s16 = sld [smem:[#allocation38_spill]] }
 0x561   : > { %5954 = vmatpush3.bf16.msra.mxu1 %v6317_v15  ;;  %v6334_v15 = vld [vmem:[%s7091_s17 + $0xa8] sm:$0xff]  }
 0x562   : > { %v3197_v30 = vsub.f32 %v3195_v38, %v3196_v33  ;;  %5955 = vmatprep.subr.bf16.mxu1 %v6677_v18 }
 0x564   : > { %v3198_v56 = vmax.f32 %v3197_v30, 0.0 }
 0x565   : > { %5956 = vmatpush3.bf16.msra.mxu1 %v6318_v48  ;;  %v6335_v48 = vld [vmem:[%s7091_s17 + $0xb0] sm:$0xff]  }
 0x566   : > { %v3201_v63 = vadd.f32 1e-05, %v3198_v56  ;;  %5957 = vmatprep.subr.bf16.mxu1 %v6677_v18 }
 0x568   : > { %6407 = vrsqrt.f32 %v3201_v63 }
 0x569   : > { %5958 = vmatpush3.bf16.msra.mxu1 %v6319_v53  ;;  %v6336_v53 = vld [vmem:[%s7091_s17 + $0xb8] sm:$0xff]  }
 0x56a   : > { %5959 = vmatprep.subr.bf16.mxu1 %v6677_v18 }
 0x56d   : > { %5960 = vmatpush3.bf16.msra.mxu1 %v6320_v31  ;;  %v7685_v31 = vld [vmem:[%s7641_s25 + $0x8] ss:$12 sps:$4 sm:$0xff]  }
 0x56e   : > { %5965 = vmatprep.subr.bf16.mxu1 %v6677_v18 }
 0x572   : > { %v6408_v34 = vpop.eup %6407 }
 0x573   : > { %v3203_v49 = vmul.f32 %v6408_v34, %v3199_v3 }
 0x575   : > { %v3209_v12 = vrot.slane %v3203_v49, %v7150_v41 }
 0x577   : > { %v3210_v11 = vmul.f32 %v3209_v12, %v3204_v17  ;;  %v3211_v13 = vmul.f32 %v3209_v12, %v3205_v50  ;;  %v3491_v12 = vld [vmem:[%s7032_s11 + $0x4] sm:$0x1] }
 0x579   : > { %v3216_v4 = vadd.f32 %v5566_v6, %v3210_v11  ;;  %v3217_v16 = vadd.f32 %v5566_v6, %v3211_v13 }
 0x57b   : > { %v3218_v19 = vmax.f32 %v3216_v4, 0.0  ;;  %v3219_v21 = vmax.f32 %v3217_v16, 0.0  ;;  %v5583_v16 = vld [vmem:[%s7039_s23 + $0x4] ss:$0 sm:$0xff] }
 0x57d   : > { %3220 = vst.msk [vmem:[#allocation3] sm:$0xff] %vm2827_vm9, %v3218_v19  ;;  %3221 = vst.msk [vmem:[#allocation3 + $0x8] sm:$0xff] %vm2827_vm9, %v3219_v21 }
 0x584   : > { %v3222_v55 = vld [vmem:[#allocation3] ss:$2 sm:$0xff]  ;;  %v3223_v23 = vld [vmem:[#allocation3 + $0x1] ss:$2 sm:$0xff] }
 0x585   : > { %v3269_v22 = vpack.c.bf16 %v3222_v55, %v3222_v55  ;;  %v3225_v58 = vrot.slane %v3223_v23, 7  ;;  %v3404_v20 = vpack.c.bf16 %v3223_v23, %v3223_v23 }
 0x587   : > { %5918 = vmatmul.mubr.msk.bf16.vlgmr.msra.gmra.mrb[8].mxu0 %vm2827_vm9, %v3269_v22  ;;  %v3227_v29 = vsel %vm1082_vm0, 0.0, %v3225_v58  ;;  %v6321_v22 = vld [vmem:[%s7091_s17] sm:$0xff]   ;;  %v6324_v58 = vld [vmem:[%s7091_s17 + $0x18] sm:$0xff]  }
 0x588   : > { %5922 = vmatpush3.bf16.msra.mxu0 %v6305_v42  ;;  %5929 = vmatprep.mubr.msk.bf16.mxu0 %vm6678_vm8, %v6677_v18  ;;  %v3243_v5 = vmul.f32 %v5567_v45, %v3227_v29  ;;  %v3519_v45 = vand.u32 1, %v7060_v2 }
 0x589   : > { %5923 = vmatprep.subr.bf16.mxu0 %v6677_v18 }
 0x58a   : > { %v3268_v7 = vpack.c.bf16 %v3243_v5, %v3243_v5  ;;  %vm3527_vm13 = vcmp.ne.s32.totalorder %v3519_v45, 0 }
 0x58c   : > { %5924 = vmatpush3.bf16.msra.mxu0 %v6306_v44  ;;  %v6323_v44 = vld [vmem:[%s7091_s17 + $0x10] sm:$0xff]  }
 0x58d   : > { %5925 = vmatprep.subr.bf16.mxu0 %v6677_v18 }
 0x590   : > { %5926 = vmatpush3.bf16.msra.mxu0 %v6307_v28  ;;  %v6325_v28 = vld [vmem:[%s7091_s17 + $0x20] sm:$0xff]  }
 0x591   : > { %5927 = vmatprep.subr.bf16.mxu0 %v6677_v18 }
 0x594   : > { %5928 = vmatpush3.bf16.msra.mxu0 %v6308_v43  ;;  %v6326_v43 = vld [vmem:[%s7091_s17 + $0x28] sm:$0xff]  }
 0x595   : > { %5933 = vmatprep.subr.bf16.mxu0 %v6677_v18 }
 0x597   : > { %5930 = vmatmul.mubr.msk.bf16.vlgmr.msra.gmra.mrb[8].mxu0 %vm2827_vm9, %v3268_v7 }
 0x598   : > { %5934 = vmatpush3.bf16.msra.mxu0 %v6309_v32  ;;  %5941 = vmatprep.mubr.msk.bf16.mxu0 %vm6678_vm8, %v6677_v18  ;;  %v6327_v32 = vld [vmem:[%s7091_s17 + $0x30] sm:$0xff]  }
 0x599   : > { %5935 = vmatprep.subr.bf16.mxu0 %v6677_v18 }
 0x59c   : > { %5936 = vmatpush3.bf16.msra.mxu0 %v6310_v27  ;;  %v5584_v27 = vsel %vm3527_vm13, 1.0, %v6677_v18 }
 0x59d   : > { %5937 = vmatprep.subr.bf16.mxu0 %v6677_v18 }
 0x5a0   : > { %5938 = vmatpush3.bf16.msra.mxu0 %v6311_v47  ;;  %v6328_v47 = vld [vmem:[%s7091_s17 + $0x38] sm:$0xff]  }
 0x5a1   : > { %5939 = vmatprep.subr.bf16.mxu0 %v6677_v18 }
 0x5a4   : > { %5940 = vmatpush3.bf16.msra.mxu0 %v6312_v37  ;;  %v6329_v37 = vld [vmem:[%s7091_s17 + $0x80] sm:$0xff]  }
 0x5a7   : > { %5942 = vmatmul.mubr.msk.bf16.vlgmr.msra.gmra.mrb[8].mxu0 %vm2827_vm9, %v3404_v20  ;;  %vm4834_vm9 = vcmask 0  }
 0x5a8   : > { %4130 = vmatprep.mubr.bf16.mxu0 %v6676_v0 }
 0x67a   : > { %v3466_v51 = vpop.f32.mrb[8].mxu0 }
 0x67b   : > { %v3473_v39 = vrot.slane %v3466_v51, 4  ;;  %v3480_v54 = vmul.f32 %v3466_v51, %v3466_v51  ;;  %v5943_v10 = vpop.f32.mrb[9].mxu0 }
 0x67c   : > { %v3469_v62 = vpop.f32.mrb[10].mxu0  ;;  %v7703_v10 = vld [vmem:[%s7641_s25 + $0x50] ss:$12 sps:$4 sm:$0xff]  }
 0x67d   : > { %v3474_v61 = vadd.f32 %v3473_v39, %v3466_v51  ;;  %v3481_v9 = vrot.slane %v3480_v54, 4  ;;  %v5944_v57 = vpop.f32.mrb[11].mxu0  ;;  %v7690_v39 = vld [vmem:[%s7641_s25 + $0x20] ss:$12 sps:$4 sm:$0xff]   ;;  %v7708_v62 = vld [vmem:[%s7641_s25 + $0x68] ss:$12 sps:$4 sm:$0xff]  }
 0x67e   : > { %v7723_v57 = vld [vmem:[%s7641_s25 + $0xb0] ss:$12 sps:$4 sm:$0xff]  }
 0x67f   : > { %v3475_v59 = vrot.slane %v3474_v61, 2  ;;  %v3482_v36 = vadd.f32 %v3481_v9, %v3480_v54  ;;  %v7698_v54 = vld [vmem:[%s7641_s25 + $0x38] ss:$12 sps:$4 sm:$0xff]  }
 0x680   : > { %v7718_v9 = vld [vmem:[%s7641_s25 + $0x98] ss:$12 sps:$4 sm:$0xff]  }
 0x681   : > { %v3476_v25 = vadd.f32 %v3475_v59, %v3474_v61  ;;  %v3483_v52 = vrot.slane %v3482_v36, 2  ;;  %v7713_v61 = vld [vmem:[%s7641_s25 + $0x80] ss:$12 sps:$4 sm:$0xff]   ;;  %v7733_v59 = vld [vmem:[%s7729_s20 + $0x4] ss:$12 sps:$4 sm:$0xff]  }
 0x682   : > { %4098 = vmatprep.subr.bf16.mxu0 %v7733_v59 }
 0x683   : > { %v3477_v26 = vrot.slane %v3476_v25, 1  ;;  %v3484_v38 = vadd.f32 %v3483_v52, %v3482_v36  ;;  %v7736_v36 = vld [vmem:[%s7729_s20] ss:$12 sps:$4 sm:$0xff]   ;;  %v7747_v52 = vld [vmem:[%s7729_s20 + $0x1c] ss:$12 sps:$4 sm:$0xff]  }
 0x684   : > { %4099 = vmatpush1.bf16.msra.mxu0 %v7736_v36 }
 0x685   : > { %v3478_v33 = vadd.f32 %v3477_v26, %v3476_v25  ;;  %v3485_v17 = vrot.slane %v3484_v38, 1  ;;  %v7741_v25 = vld [vmem:[%s7729_s20 + $0x8] ss:$12 sps:$4 sm:$0xff]   ;;  %v7752_v26 = vld [vmem:[%s7729_s20 + $0x18] ss:$12 sps:$4 sm:$0xff]   ;;  %4100 = vmatprep.subr.bf16.mxu0 %v7747_v52 }
 0x687   : > { %v3479_v50 = vmul.f32 0.125, %v3478_v33  ;;  %v3486_v30 = vadd.f32 %v3485_v17, %v3484_v38  ;;  %v7757_v38 = vld [vmem:[%s7729_s20 + $0x20] ss:$12 sps:$4 sm:$0xff]   ;;  %v7765_v17 = vld [vmem:[%s7729_s20 + $0x30] ss:$12 sps:$4 sm:$0xff]  }
 0x688   : > { %4101 = vmatpush1.bf16.msra.mxu0 %v7752_v26  ;;  %v7762_v33 = vld [vmem:[%s7729_s20 + $0x34] ss:$12 sps:$4 sm:$0xff]  }
 0x689   : > { %v3487_v56 = vmul.f32 0.125, %v3486_v30  ;;  %v3488_v63 = vmul.f32 %v3479_v50, %v3479_v50  ;;  %v3496_v13 = vsub.f32 %v3466_v51, %v3479_v50  ;;  %4102 = vmatprep.subr.bf16.mxu0 %v7762_v33  ;;  %v7770_v50 = vld [vmem:[%s7729_s20 + $0x38] ss:$12 sps:$4 sm:$0xff]  }
 0x68a   : > { %v7775_v30 = vld [vmem:[%s7729_s20 + $0x4c] ss:$12 sps:$4 sm:$0xff]  }
 0x68b   : > { %v3489_v3 = vsub.f32 %v3487_v56, %v3488_v63  ;;  %v7778_v56 = vld [vmem:[%s7729_s20 + $0x48] ss:$12 sps:$4 sm:$0xff]   ;;  %v7783_v63 = vld [vmem:[%s7729_s20 + $0x50] ss:$12 sps:$4 sm:$0xff]  }
 0x68c   : > { %4103 = vmatpush1.bf16.msra.mxu0 %v7765_v17 }
 0x68d   : > { %v3490_v34 = vmax.f32 %v3489_v3, 0.0  ;;  %4104 = vmatprep.subr.bf16.mxu0 %v7775_v30  ;;  %v7788_v3 = vld [vmem:[%s7729_s20 + $0x64] ss:$12 sps:$4 sm:$0xff]  }
 0x68f   : > { %v3493_v49 = vadd.f32 1e-05, %v3490_v34  ;;  %v7791_v34 = vld [vmem:[%s7729_s20 + $0x60] ss:$12 sps:$4 sm:$0xff]  }
 0x690   : > { %4105 = vmatpush1.bf16.msra.mxu0 %v7778_v56 }
 0x691   : > { %6409 = vrsqrt.f32 %v3493_v49  ;;  %4106 = vmatprep.subr.bf16.mxu0 %v7788_v3  ;;  %v7796_v49 = vld [vmem:[%s7729_s20 + $0x68] ss:$12 sps:$4 sm:$0xff]  }
 0x694   : > { %4107 = vmatpush1.bf16.msra.mxu0 %v7791_v34 }
 0x69b   : > { %v6410_v6 = vpop.eup %6409 }
 0x69c   : > { %v3495_v11 = vmul.f32 %v6410_v6, %v3491_v12  ;;  %v7801_v12 = vld [vmem:[%s7729_s20 + $0x7c] ss:$12 sps:$4 sm:$0xff]   ;;  %v7804_v6 = vld [vmem:[%s7729_s20 + $0x78] ss:$12 sps:$4 sm:$0xff]  }
 0x69d   : > { %4108 = vmatprep.subr.bf16.mxu0 %v7801_v12 }
 0x69e   : > { %v3500_v4 = vrot.slane %v3495_v11, %v7150_v41  ;;  %v7808_v11 = vld [vmem:[%s7729_s20 + $0x80] ss:$12 sps:$4 sm:$0xff]   ;;  %4109 = vmatpush1.bf16.msra.mxu0 %v7804_v6 }
 0x6a0   : > { %v3501_v19 = vmul.f32 %v3500_v4, %v3496_v13  ;;  %v7812_v13 = vld [vmem:[%s7729_s20 + $0x94] ss:$12 sps:$4 sm:$0xff]   ;;  %v7816_v4 = vld [vmem:[%s7729_s20 + $0x90] ss:$12 sps:$4 sm:$0xff]  }
 0x6a1   : > { %4110 = vmatprep.subr.bf16.mxu0 %v7812_v13 }
 0x6a2   : > { %v3506_v21 = vadd.f32 %v5583_v16, %v3501_v19  ;;  %v7821_v16 = vld [vmem:[%s7729_s20 + $0x98] ss:$12 sps:$4 sm:$0xff]   ;;  %4111 = vmatpush1.bf16.msra.mxu0 %v7816_v4 }
 0x6a3   : > { %v7824_v19 = vld [vmem:[%s7729_s20 + $0xac] ss:$12 sps:$4 sm:$0xff]  }
 0x6a4   : > { %v3507_v55 = vmax.f32 %v3506_v21, 0.0  ;;  %v7829_v21 = vld [vmem:[%s7729_s20 + $0xa8] ss:$12 sps:$4 sm:$0xff]   ;;  %4112 = vmatprep.subr.bf16.mxu0 %v7824_v19 }
 0x6a6   : > { %3508 = vst [vmem:[#allocation2] sm:$0xff] %v3507_v55  ;;  %v7834_v55 = vld [vmem:[%s7729_s20 + $0xb0] ss:$12 sps:$4 sm:$0xff]   ;;  %4113 = vmatpush1.bf16.msra.mxu0 %v7829_v21  ;;  %s989_s20 = scalar_lea.vmem %s8154_s22, %s7051_s28 }
 0x6a7   : > { %6005 = vmatprep.subr.bf16.mxu0 %v6677_v18 }
 0x6ad   : > { %v3509_v42 = vld [vmem:[#allocation2] ss:$2 sm:$0xf]  ;;  %v3510_v29 = vld [vmem:[#allocation2 + $0x1] ss:$2 sm:$0xf] }
 0x6ae   : > { %v3580_v23 = vpack.c.bf16 %v3509_v42, %v3509_v42  ;;  %v3512_v5 = vrot.slane %v3510_v29, 7  ;;  %v3757_v51 = vpack.c.bf16 %v3510_v29, %v3510_v29 }
 0x6b0   : > { %5962 = vmatmul.mubr.bf16.vlgmr.msra.gmra.mrb[8].mxu1 %v3580_v23  ;;  %v3514_v7 = vsel %vm1082_vm0, 0.0, %v3512_v5  ;;  %vm4701_vm0 = vcmask 123904  }
 0x6b1   : > { %5966 = vmatpush3.bf16.msra.mxu1 %v6321_v22  ;;  %5981 = vmatprep.mubr.msk.bf16.mxu1 %vm6678_vm8, %v6677_v18  ;;  %v3530_v2 = vmul.f32 %v5584_v27, %v3514_v7 }
 0x6b2   : > { %5967 = vmatprep.subr.bf16.mxu1 %v6677_v18 }
 0x6b3   : > { %v3579_v20 = vpack.c.bf16 %v3530_v2, %v3530_v2 }
 0x6b5   : > { %5968 = vmatpush3.bf16.msra.mxu1 %v6322_v24 }
 0x6b6   : > { %5969 = vmatprep.subr.bf16.mxu1 %v6677_v18 }
 0x6b9   : > { %5970 = vmatpush3.bf16.msra.mxu1 %v6323_v44 }
 0x6ba   : > { %5971 = vmatprep.subr.bf16.mxu1 %v6677_v18 }
 0x6bd   : > { %5972 = vmatpush3.bf16.msra.mxu1 %v6324_v58 }
 0x6be   : > { %5973 = vmatprep.subr.bf16.mxu1 %v6677_v18 }
 0x6c1   : > { %5974 = vmatpush3.bf16.msra.mxu1 %v6325_v28 }
 0x6c2   : > { %5975 = vmatprep.subr.bf16.mxu1 %v6677_v18 }
 0x6c5   : > { %5976 = vmatpush3.bf16.msra.mxu1 %v6326_v43 }
 0x6c6   : > { %5977 = vmatprep.subr.bf16.mxu1 %v6677_v18 }
 0x6c9   : > { %5978 = vmatpush3.bf16.msra.mxu1 %v6327_v32 }
 0x6ca   : > { %5979 = vmatprep.subr.bf16.mxu1 %v6677_v18 }
 0x6cd   : > { %5980 = vmatpush3.bf16.msra.mxu1 %v6328_v47 }
 0x6ce   : > { %5985 = vmatprep.subr.bf16.mxu1 %v6677_v18 }
 0x6d0   : > { %5982 = vmatmul.mubr.bf16.vlgmr.msra.gmra.mrb[8].mxu1 %v3579_v20 }
 0x6d1   : > { %5986 = vmatpush3.bf16.msra.mxu1 %v6329_v37  ;;  %6001 = vmatprep.mubr.msk.bf16.mxu1 %vm6678_vm8, %v6677_v18 }
 0x6d2   : > { %5987 = vmatprep.subr.bf16.mxu1 %v6677_v18 }
 0x6d5   : > { %5988 = vmatpush3.bf16.msra.mxu1 %v6330_v14 }
 0x6d6   : > { %5989 = vmatprep.subr.bf16.mxu1 %v6677_v18 }
 0x6d9   : > { %5990 = vmatpush3.bf16.msra.mxu1 %v6331_v60 }
 0x6da   : > { %5991 = vmatprep.subr.bf16.mxu1 %v6677_v18 }
 0x6dd   : > { %5992 = vmatpush3.bf16.msra.mxu1 %v6332_v35 }
 0x6de   : > { %5993 = vmatprep.subr.bf16.mxu1 %v6677_v18 }
 0x6e1   : > { %5994 = vmatpush3.bf16.msra.mxu1 %v6333_v8 }
 0x6e2   : > { %5995 = vmatprep.subr.bf16.mxu1 %v6677_v18 }
 0x6e5   : > { %5996 = vmatpush3.bf16.msra.mxu1 %v6334_v15 }
 0x6e6   : > { %5997 = vmatprep.subr.bf16.mxu1 %v6677_v18 }
 0x6e9   : > { %5998 = vmatpush3.bf16.msra.mxu1 %v6335_v48 }
 0x6ea   : > { %5999 = vmatprep.subr.bf16.mxu1 %v6677_v18 }
 0x6ed   : > { %6000 = vmatpush3.bf16.msra.mxu1 %v6336_v53 }
 0x6ee   : > { %6025 = vmatprep.subr.bf16.mxu1 %v6677_v18 }
 0x6f0   : > { %6002 = vmatmul.mubr.bf16.vlgmr.msra.gmra.mrb[8].mxu1 %v3757_v51  ;;  %v3868_v51 = vld [vmem:[%s7032_s11 + $0x5] sm:$0x1]  ;;  %s6198_s11 = smul.u32 3, %s7051_s28 }
 0x6f1   : > { %6026 = vmatpush3.bf16.msra.mxu1 %v7685_v31  ;;  %6041 = vmatprep.mubr.msk.bf16.mxu1 %vm6678_vm8, %v6677_v18 }
 0x6f2   : > { %6027 = vmatprep.subr.bf16.mxu1 %v6677_v18  ;;  %s982_s14 = scalar_lea.vmem %s8151_s15, %s6198_s11  ;;  %s1001_s15 = scalar_lea.vmem %s8155_s3, %s7134_s24 }
 0x6f3   : > { %s8156_s24 = sld [smem:[#allocation22_spill]] }
 0x6f5   : > { %6028 = vmatpush3.bf16.msra.mxu1 %v7690_v39 }
 0x6f6   : > { %6029 = vmatprep.subr.bf16.mxu1 %v6677_v18 }
 0x6f9   : > { %6030 = vmatpush3.bf16.msra.mxu1 %v7698_v54  ;;  %p8159_p11 = scmp.ne.s32.totalorder %s8156_s24, 0 }
 0x6fa   : > { %6031 = vmatprep.subr.bf16.mxu1 %v6677_v18 }
 0x6fd   : > { %6032 = vmatpush3.bf16.msra.mxu1 %v7703_v10 }
 0x6fe   : > { %6033 = vmatprep.subr.bf16.mxu1 %v6677_v18 }
 0x701   : > { %6034 = vmatpush3.bf16.msra.mxu1 %v7708_v62 }
 0x702   : > { %6035 = vmatprep.subr.bf16.mxu1 %v6677_v18 }
 0x705   : > { %6036 = vmatpush3.bf16.msra.mxu1 %v7713_v61 }
 0x706   : > { %6037 = vmatprep.subr.bf16.mxu1 %v6677_v18 }
 0x709   : > { %6038 = vmatpush3.bf16.msra.mxu1 %v7718_v9 }
 0x70a   : > { %6039 = vmatprep.subr.bf16.mxu1 %v6677_v18 }
 0x70d   : > { %6040 = vmatpush3.bf16.msra.mxu1 %v7723_v57 }
 0x70e   : > { %6045 = vmatprep.subr.bf16.mxu1 %v6677_v18 }
 0x710   : > { %6042 = vmatmul.mubr.bf16.vlgmr.msra.gmra.mrb[12].mxu1 %v6676_v0 }
 0x711   : > { %6046 = vmatpush3.bf16.msra.mxu1 %v7741_v25  ;;  %6061 = vmatprep.mubr.msk.bf16.mxu1 %vm6678_vm8, %v6677_v18 }
 0x712   : > { %6047 = vmatprep.subr.bf16.mxu1 %v6677_v18 }
 0x715   : > { %6048 = vmatpush3.bf16.msra.mxu1 %v7757_v38 }
 0x716   : > { %6049 = vmatprep.subr.bf16.mxu1 %v6677_v18 }
 0x719   : > { %6050 = vmatpush3.bf16.msra.mxu1 %v7770_v50 }
 0x71a   : > { %6051 = vmatprep.subr.bf16.mxu1 %v6677_v18 }
 0x71d   : > { %6052 = vmatpush3.bf16.msra.mxu1 %v7783_v63 }
 0x71e   : > { %6053 = vmatprep.subr.bf16.mxu1 %v6677_v18 }
 0x721   : > { %6054 = vmatpush3.bf16.msra.mxu1 %v7796_v49 }
 0x722   : > { %6055 = vmatprep.subr.bf16.mxu1 %v6677_v18 }
 0x725   : > { %6056 = vmatpush3.bf16.msra.mxu1 %v7808_v11 }
 0x726   : > { %6057 = vmatprep.subr.bf16.mxu1 %v6677_v18 }
 0x729   : > { %6058 = vmatpush3.bf16.msra.mxu1 %v7821_v16 }
 0x72a   : > { %6059 = vmatprep.subr.bf16.mxu1 %v6677_v18 }
 0x72d   : > { %6060 = vmatpush3.bf16.msra.mxu1 %v7834_v55 }
 0x72e   : > { %6065 = vmatprep.subr.bf16.mxu1 %v6677_v18 }
 0x7c3   : > { %v3840_v42 = vpop.f32.mrb[8].mxu1 }
 0x7c4   : > { %v3848_v22 = vsel %vm3847_vm14, %v3840_v42, 0.0  ;;  %v3856_v23 = vmul.f32 %v3840_v42, %v3840_v42  ;;  %v6003_v24 = vpop.f32.mrb[9].mxu1 }
 0x7c5   : > { %v3849_v44 = vrot.slane %v3848_v22, 4  ;;  %v3843_v58 = vpop.f32.mrb[10].mxu1 }
 0x7c6   : > { %v3857_v28 = vsel %vm3847_vm14, %v3856_v23, 0.0  ;;  %v6004_v29 = vpop.f32.mrb[11].mxu1  ;;  %v5609_v58 = vld [vmem:[%s7039_s23 + $0x5] ss:$0 sm:$0xff] }
 0x7c7   : > { %v3850_v45 = vadd.f32 %v3849_v44, %v3848_v22  ;;  %v3858_v43 = vrot.slane %v3857_v28, 4 }
 0x7c9   : > { %v3851_v5 = vrot.slane %v3850_v45, 2  ;;  %v3859_v32 = vadd.f32 %v3858_v43, %v3857_v28 }
 0x7cb   : > { %v3852_v7 = vadd.f32 %v3851_v5, %v3850_v45  ;;  %v3860_v27 = vrot.slane %v3859_v32, 2 }
 0x7cd   : > { %v3853_v47 = vrot.slane %v3852_v7, 1  ;;  %v3861_v2 = vadd.f32 %v3860_v27, %v3859_v32  ;;  %v6398_v27 = vld [vmem:[%s7641_s25 + $0xa8] ss:$12 sps:$4 sm:$0xff]  }
 0x7cf   : > { %v3854_v37 = vadd.f32 %v3853_v47, %v3852_v7  ;;  %v3862_v20 = vrot.slane %v3861_v2, 1 }
 0x7d1   : > { %v3855_v14 = vmul.f32 0.25, %v3854_v37  ;;  %v3863_v60 = vadd.f32 %v3862_v20, %v3861_v2 }
 0x7d3   : > { %v3864_v35 = vmul.f32 0.25, %v3863_v60  ;;  %v3865_v8 = vmul.f32 %v3855_v14, %v3855_v14  ;;  %v3873_v24 = vsub.f32 %v3840_v42, %v3855_v14 }
 0x7d5   : > { %v3866_v15 = vsub.f32 %v3864_v35, %v3865_v8 }
 0x7d7   : > { %v3867_v48 = vmax.f32 %v3866_v15, 0.0 }
 0x7d9   : > { %v3870_v53 = vadd.f32 1e-05, %v3867_v48 }
 0x7db   : > { %6411 = vrsqrt.f32 %v3870_v53 }
 0x7e5   : > { %v6412_v22 = vpop.eup %6411 }
 0x7e6   : > { %v3872_v23 = vmul.f32 %v6412_v22, %v3868_v51 }
 0x7e8   : > { %v3877_v44 = vrot.slane %v3872_v23, %v7150_v41 }
 0x7ea   : > { %v3878_v28 = vmul.f32 %v3877_v44, %v3873_v24 }
 0x7ec   : > { %v3883_v29 = vadd.f32 %v5609_v58, %v3878_v28 }
 0x7ee   : > { %v3884_v45 = vmax.f32 %v3883_v29, 0.0 }
 0x7f0   : > { %3885 = vst [vmem:[#allocation3] sm:$0xf] %v3884_v45 }
 0x7f7   : > { %v3952_v43 = vld [vmem:[#allocation3] ss:$2 sm:$0x3]  ;;  %v4425_v5 = vld [vmem:[#allocation3 + $0x1] ss:$2 sm:$0x3] }
 0x7f8   : > { %v3953_v32 = vpack.c.bf16 %v3952_v43, %v3952_v43  ;;  %v7844_v7 = vpack.c.bf16 %v4425_v5, %v4425_v5 }
 0x7fa   : > { %4131 = vmatmul.mubr.bf16.vlgmr.msra.gmra.mrb[12].mxu0 %v3953_v32  ;;  %6062 = vmatmul.mubr.bf16.vlgmr.msra.gmra.mrb[16].mxu1 %v7844_v7 }
 0x7fb   : > { %6006 = vmatpush3.bf16.msra.mxu0 %v7741_v25  ;;  %6021 = vmatprep.mubr.msk.bf16.mxu0 %vm6678_vm8, %v6677_v18  ;;  %v6386_v25 = vld [vmem:[%s7641_s25 + $0x48] ss:$12 sps:$4 sm:$0xff]  }
 0x7fc   : > { %6007 = vmatprep.subr.bf16.mxu0 %v6677_v18  ;;  %6066 = vmatpush3.bf16.msra.mxu1 %v7685_v31  ;;  %v6379_v31 = vld [vmem:[%s7641_s25 + $0x4] ss:$12 sps:$4 sm:$0xff]  }
 0x7fd   : > { %6067 = vmatprep.subr.bf16.mxu1 %v6677_v18  ;;  %6081 = vmatprep.mubr.msk.bf16.mxu1 %vm6678_vm8, %v6677_v18 }
 0x7ff   : > { %6008 = vmatpush3.bf16.msra.mxu0 %v7757_v38  ;;  %v6389_v38 = vld [vmem:[%s7641_s25 + $0x60] ss:$12 sps:$4 sm:$0xff]  }
 0x800   : > { %6009 = vmatprep.subr.bf16.mxu0 %v6677_v18  ;;  %6068 = vmatpush3.bf16.msra.mxu1 %v7690_v39  ;;  %v6377_v39 = vld [vmem:[%s7641_s25] ss:$12 sps:$4 sm:$0xff]  }
 0x801   : > { %6069 = vmatprep.subr.bf16.mxu1 %v6677_v18 }
 0x803   : > { %6010 = vmatpush3.bf16.msra.mxu0 %v7770_v50  ;;  %v6394_v50 = vld [vmem:[%s7641_s25 + $0x7c] ss:$12 sps:$4 sm:$0xff]  }
 0x804   : > { %6011 = vmatprep.subr.bf16.mxu0 %v6677_v18  ;;  %6070 = vmatpush3.bf16.msra.mxu1 %v7698_v54  ;;  %v6382_v54 = vld [vmem:[%s7641_s25 + $0x1c] ss:$12 sps:$4 sm:$0xff]  }
 0x805   : > { %6071 = vmatprep.subr.bf16.mxu1 %v6677_v18 }
 0x807   : > { %6012 = vmatpush3.bf16.msra.mxu0 %v7783_v63  ;;  %v6392_v63 = vld [vmem:[%s7641_s25 + $0x78] ss:$12 sps:$4 sm:$0xff]  }
 0x808   : > { %6013 = vmatprep.subr.bf16.mxu0 %v6677_v18  ;;  %6072 = vmatpush3.bf16.msra.mxu1 %v7703_v10  ;;  %v6380_v10 = vld [vmem:[%s7641_s25 + $0x18] ss:$12 sps:$4 sm:$0xff]  }
 0x809   : > { %6073 = vmatprep.subr.bf16.mxu1 %v6677_v18 }
 0x80b   : > { %6014 = vmatpush3.bf16.msra.mxu0 %v7796_v49  ;;  %v6397_v49 = vld [vmem:[%s7641_s25 + $0x94] ss:$12 sps:$4 sm:$0xff]  }
 0x80c   : > { %6015 = vmatprep.subr.bf16.mxu0 %v6677_v18  ;;  %6074 = vmatpush3.bf16.msra.mxu1 %v7708_v62  ;;  %v6385_v62 = vld [vmem:[%s7641_s25 + $0x34] ss:$12 sps:$4 sm:$0xff]  }
 0x80d   : > { %6075 = vmatprep.subr.bf16.mxu1 %v6677_v18 }
 0x80f   : > { %6016 = vmatpush3.bf16.msra.mxu0 %v7808_v11  ;;  %v6395_v11 = vld [vmem:[%s7641_s25 + $0x90] ss:$12 sps:$4 sm:$0xff]  }
 0x810   : > { %6017 = vmatprep.subr.bf16.mxu0 %v6677_v18  ;;  %6076 = vmatpush3.bf16.msra.mxu1 %v7713_v61  ;;  %v6383_v61 = vld [vmem:[%s7641_s25 + $0x30] ss:$12 sps:$4 sm:$0xff]  }
 0x811   : > { %6077 = vmatprep.subr.bf16.mxu1 %v6677_v18 }
 0x813   : > { %6018 = vmatpush3.bf16.msra.mxu0 %v7821_v16  ;;  %v6400_v16 = vld [vmem:[%s7641_s25 + $0xac] ss:$12 sps:$4 sm:$0xff]  }
 0x814   : > { %6019 = vmatprep.subr.bf16.mxu0 %v6677_v18  ;;  %6078 = vmatpush3.bf16.msra.mxu1 %v7718_v9  ;;  %v6388_v9 = vld [vmem:[%s7641_s25 + $0x4c] ss:$12 sps:$4 sm:$0xff]  }
 0x815   : > { %6079 = vmatprep.subr.bf16.mxu1 %v6677_v18 }
 0x817   : > { %6020 = vmatpush3.bf16.msra.mxu0 %v7834_v55  ;;  %v7897_v55 = vpop.f32.mrb[12].mxu1 }
 0x818   : > { %4323 = vmatprep.subr.bf16.mxu0 %v6379_v31  ;;  %6080 = vmatpush3.bf16.msra.mxu1 %v7723_v57  ;;  %v6391_v57 = vld [vmem:[%s7641_s25 + $0x64] ss:$12 sps:$4 sm:$0xff]   ;;  %v6043_v42 = vpop.f32.mrb[13].mxu1  ;;  %s7973_s25 = scalar_lea.vmem %s8153_s29, %s5677_s5 }
 0x819   : > { %v4401_v47 = vpop.f32.mrb[14].mxu1 }
 0x81a   : > { %6022 = vmatmul.mubr.bf16.vlgmr.msra.gmra.mrb[16].mxu0 %v3953_v32  ;;  %v6044_v2 = vpop.f32.mrb[15].mxu1 }
 0x81b   : > { %4324 = vmatpush1.bf16.msra.mxu0 %v6377_v39  ;;  %4355 = vmatprep.mubr.bf16.mxu0 %v6676_v0 }
 0x81c   : > { %4325 = vmatprep.subr.bf16.mxu0 %v6382_v54 }
 0x81f   : > { %4326 = vmatpush1.bf16.msra.mxu0 %v6380_v10 }
 0x820   : > { %4327 = vmatprep.subr.bf16.mxu0 %v6385_v62 }
 0x823   : > { %4328 = vmatpush1.bf16.msra.mxu0 %v6383_v61 }
 0x824   : > { %4329 = vmatprep.subr.bf16.mxu0 %v6388_v9 }
 0x827   : > { %4330 = vmatpush1.bf16.msra.mxu0 %v6386_v25 }
 0x828   : > { %4331 = vmatprep.subr.bf16.mxu0 %v6391_v57 }
 0x82b   : > { %4332 = vmatpush1.bf16.msra.mxu0 %v6389_v38 }
 0x82c   : > { %4333 = vmatprep.subr.bf16.mxu0 %v6394_v50 }
 0x82f   : > { %4334 = vmatpush1.bf16.msra.mxu0 %v6392_v63 }
 0x830   : > { %4335 = vmatprep.subr.bf16.mxu0 %v6397_v49 }
 0x833   : > { %4336 = vmatpush1.bf16.msra.mxu0 %v6395_v11 }
 0x834   : > { %4337 = vmatprep.subr.bf16.mxu0 %v6400_v16 }
 0x837   : > { %4338 = vmatpush1.bf16.msra.mxu0 %v6398_v27 }
 0x838   : > { %4427 = vmatprep.subr.bf16.mxu0 %v7733_v59 }
 0x83a   : > { %4356 = vmatmul.mubr.bf16.vlgmr.msra.gmra.mrb[12].mxu0 %v6676_v0 }
 0x83b   : > { %4428 = vmatpush1.bf16.msra.mxu0 %v7736_v36  ;;  %4459 = vmatprep.mubr.bf16.mxu0 %v6676_v0 }
 0x83c   : > { %4429 = vmatprep.subr.bf16.mxu0 %v7747_v52 }
 0x83f   : > { %4430 = vmatpush1.bf16.msra.mxu0 %v7752_v26 }
 0x840   : > { %4431 = vmatprep.subr.bf16.mxu0 %v7762_v33 }
 0x843   : > { %4432 = vmatpush1.bf16.msra.mxu0 %v7765_v17 }
 0x844   : > { %4433 = vmatprep.subr.bf16.mxu0 %v7775_v30 }
 0x847   : > { %4434 = vmatpush1.bf16.msra.mxu0 %v7778_v56 }
 0x848   : > { %4435 = vmatprep.subr.bf16.mxu0 %v7788_v3 }
 0x84b   : > { %4436 = vmatpush1.bf16.msra.mxu0 %v7791_v34 }
 0x84c   : > { %4437 = vmatprep.subr.bf16.mxu0 %v7801_v12  ;;  %v3951_v12 = vld [vmem:[%s7041_s19] sm:$0x7]  ;;  %s5465_s19 = sshll.u32 %s7020_s26, 5 }
 0x84d   : > { %s7938_s2 = scalar_lea.vmem [#allocation12], %s5465_s19  ;;  %s5672_s19 = sshll.u32 %s6802_s1, 4 }
 0x84e   : > { %s8027_s29 = scalar_lea.hbm %s8158_s16, %s5672_s19  ;;  %s5080_s1 = scalar_lea.sflag [#allocation6], %s7020_s26 }
 0x84f   : > { %4438 = vmatpush1.bf16.msra.mxu0 %v7804_v6 }
 0x850   : > { %4439 = vmatprep.subr.bf16.mxu0 %v7812_v13  ;;  %v4183_v13 = vrot.slane %v3951_v12, %v7150_v41 }
 0x853   : > { %4440 = vmatpush1.bf16.msra.mxu0 %v7816_v4 }
 0x854   : > { %4441 = vmatprep.subr.bf16.mxu0 %v7824_v19  ;;  %v4187_v19 = vrot.slane %v3951_v12, %v7147_v40 }
 0x857   : > { %4442 = vmatpush1.bf16.msra.mxu0 %v7829_v21 }
 0x858   : > { %4509 = vmatprep.subr.bf16.mxu0 %v6379_v31 }
 0x85a   : > { %4460 = vmatmul.mubr.bf16.vlgmr.msra.gmra.mrb[20].mxu0 %v7844_v7 }
 0x85b   : > { %4510 = vmatpush1.bf16.msra.mxu0 %v6377_v39  ;;  %4541 = vmatprep.mubr.bf16.mxu0 %v6676_v0  ;;  %v3950_v0 = vld [vmem:[%s982_s14] sm:$0x7]  ;;  %s8006_s14 = scalar_lea.vmem [#allocation13], %s7020_s26 }
 0x85c   : > { %4511 = vmatprep.subr.bf16.mxu0 %v6382_v54  ;;  %v3966_v59 = vrot.slane %v3950_v0, %v7163_v46  ;;  %v3958_v6 = vrot.slane %v3950_v0, %v7150_v41  ;;  %v3962_v4 = vrot.slane %v3950_v0, %v7147_v40  ;;  %v4191_v41 = vrot.slane %v3951_v12, %v7163_v46  ;;  %v4614_v54 = vld [vmem:[%s7938_s2] sm:$0xff] }
 0x85d   : > { %v6679_v46 = vmov 0.0|0.0  }
 0x85e   : > { %v6125_v21 = vadd.f32 %v4183_v13, %v3958_v6  ;;  %v6127_v20 = vadd.f32 %v4187_v19, %v3962_v4  ;;  %v4399_v40 = vadd.f32 %v7897_v55, %v4191_v41 }
 0x85f   : > { %4512 = vmatpush1.bf16.msra.mxu0 %v6380_v10  ;;  %v4615_v10 = vld [vmem:[%s7938_s2 + $0x8] sm:$0xff] }
 0x860   : > { %4513 = vmatprep.subr.bf16.mxu0 %v6385_v62  ;;  %v6114_v62 = vpack.c.bf16 %v4615_v10, %v4614_v54 }
 0x863   : > { %4514 = vmatpush1.bf16.msra.mxu0 %v6383_v61 }
 0x864   : > { %4515 = vmatprep.subr.bf16.mxu0 %v6388_v9 }
 0x867   : > { %4516 = vmatpush1.bf16.msra.mxu0 %v6386_v25 }
 0x868   : > { %4517 = vmatprep.subr.bf16.mxu0 %v6391_v57 }
 0x86b   : > { %4518 = vmatpush1.bf16.msra.mxu0 %v6389_v38 }
 0x86c   : > { %4519 = vmatprep.subr.bf16.mxu0 %v6394_v50 }
 0x86f   : > { %4520 = vmatpush1.bf16.msra.mxu0 %v6392_v63 }
 0x870   : > { %4521 = vmatprep.subr.bf16.mxu0 %v6397_v49 }
 0x873   : > { %4522 = vmatpush1.bf16.msra.mxu0 %v6395_v11 }
 0x874   : > { %4523 = vmatprep.subr.bf16.mxu0 %v6400_v16 }
 0x877   : > { %4524 = vmatpush1.bf16.msra.mxu0 %v6398_v27 }
 0x878   : > { %6113 = vmatprep.subr.bf16.mxu0 %v6679_v46 }
 0x8cd   : > { %v4502_v36 = vpop.f32.mrb[16].mxu1 }
 0x8ce   : > { %v7925_v52 = vadd.f32 %v4502_v36, %v3966_v59  ;;  %v6063_v26 = vpop.f32.mrb[17].mxu1 }
 0x8cf   : > { %v4505_v33 = vpop.f32.mrb[18].mxu1 }
 0x8d0   : > { %v6064_v17 = vpop.f32.mrb[19].mxu1 }
 0x8ed   : > { %v4173_v30 = vpop.f32.mrb[16].mxu0 }
 0x8ee   : > { %v6023_v56 = vpop.f32.mrb[17].mxu0  ;;  %v4174_v58 = vadd.f32 %v4173_v30, %v3966_v59 }
 0x8ef   : > { %v4176_v3 = vpop.f32.mrb[18].mxu0 }
 0x8f0   : > { %v6024_v34 = vpop.f32.mrb[19].mxu0 }
 0x90d   : > { %v4357_v37 = vpop.f32.mrb[12].mxu0 }
 0x90e   : > { %v6126_v14 = vadd.f32 %v6125_v21, %v4357_v37  ;;  %v4359_v60 = vpop.f32.mrb[13].mxu0  ;;  %v5662_v37 = vld [vmem:[%s7952_s7] ss:$0 sm:$0xff] }
 0x90f   : > { %v4361_v35 = vpop.f32.mrb[14].mxu0  ;;  %v6128_v48 = vadd.f32 %v6127_v20, %v4359_v60 }
 0x910   : > { %v5658_v8 = vmul.f32 -1.442695, %v6126_v14  ;;  %v4362_v15 = vpop.f32.mrb[15].mxu0  ;;  %v7957_v35 = vand.u32 127, %v1131_v1 }
 0x911   : > { %v5659_v53 = vmul.f32 -1.442695, %v6128_v48 }
 0x912   : > { %6413 = vpow2.f32 %v5658_v8 }
 0x913   : > { %6415 = vpow2.f32 %v5659_v53 }
 0x91c   : > { %v6414_v51 = vpop.eup %6413 }
 0x91d   : > { %v4408_v22 = vadd.f32 1.0, %v6414_v51  ;;  %v6416_v23 = vpop.eup %6415 }
 0x91e   : > { %v4415_v24 = vadd.f32 1.0, %v6416_v23 }
 0x91f   : > { %6417 = vrcp.f32 %v4408_v22 }
 0x920   : > { %6419 = vrcp.f32 %v4415_v24 }
 0x929   : > { %v6418_v44 = vpop.eup %6417 }
 0x92a   : > { %v4418_v28 = vmul.f32 %v6418_v44, %v4399_v40  ;;  %v6420_v45 = vpop.eup %6419 }
 0x92b   : > { %v4421_v43 = vsub.f32 1.0, %v6420_v45  ;;  %v4423_v7 = vmul.f32 0.0, %v6420_v45 }
 0x92c   : > { %v4419_v29 = vadd.f32 %v4418_v28, %v4174_v58  ;;  %v5666_v28 = vld [vmem:[%s7938_s2 + $0x10] sm:$0xff] }
 0x92e   : > { %6421 = vtanh.f32 %v4419_v29  ;;  %v5667_v29 = vld [vmem:[%s7938_s2 + $0x18] sm:$0xff]  ;;  %s5101_s2 = sshll.u32 %s8006_s14, 4  ;;  %s8029_s2 = int_to_ptr.vmem [resolvable:$true] %s5101_s2 }
 0x938   : > { %v6422_v5 = vpop.eup %6421 }
 0x939   : > { %v4422_v32 = vmul.f32 %v6422_v5, %v4421_v43  ;;  %v6120_v43 = vpack.c.bf16 %v5667_v29, %v5666_v28 }
 0x93b   : > { %v4424_v31 = vadd.f32 %v4423_v7, %v4422_v32 }
 0x93d   : > { %v4508_v39 = vpack.c.bf16 %v4424_v31, %v4424_v31 }
 0x93f   : > { %4542 = vmatmul.mubr.bf16.vlgmr.msra.gmra.mrb[20].mxu0 %v4508_v39  ;;  %6082 = vmatmul.mubr.bf16.vlgmr.msra.gmra.mrb[20].mxu1 %v4508_v39 }
 0x940   : > { %6089 = vmatprep.mubr.msk.f32.mxu0 %vm6678_vm8, %v6677_v18  ;;  %6115 = vmatpush3.bf16.xpose.msra.mxu0 %v6114_v62 }
 0x941   : > { %6116 = vmatprep.subr.bf16.mxu0 %v6679_v46 }
 0xa12   : > { %v4543_v61 = vpop.f32.mrb[20].mxu0  ;;  %v4584_v9 = vpop.f32.mrb[20].mxu1 }
 0xa13   : > { %v6130_v25 = vadd.f32 %v6125_v21, %v4543_v61  ;;  %v4545_v57 = vpop.f32.mrb[21].mxu0  ;;  %v6083_v38 = vpop.f32.mrb[21].mxu1  ;;  %v4585_v59 = vadd.f32 %v4584_v9, %v4191_v41  ;;  %v5669_v9 = vld [vmem:[%s7952_s7 + $0x1] ss:$0 sm:$0xff]  ;;  %s997_s7 = scalar_lea.vmem %s8157_s0, %s7051_s28  ;;  %s6680_s28 = smov [#allocation13]  }
 0xa14   : > { %v4547_v50 = vpop.f32.mrb[22].mxu0  ;;  %v4587_v63 = vpop.f32.mrb[22].mxu1  ;;  %v6132_v55 = vadd.f32 %v6127_v20, %v4545_v57  ;;  %s6595_s17 = sshll.u32 %s6680_s28, 4  ;;  %s6596_s17 = int_to_ptr.vmem [resolvable:$false] %s6595_s17 }
 0xa15   : > { %v5660_v49 = vmul.f32 -1.442695, %v6130_v25  ;;  %v4548_v11 = vpop.f32.mrb[23].mxu0  ;;  %v6084_v16 = vpop.f32.mrb[23].mxu1  ;;  %s6597_s27 = scalar_lea.vmem %s6596_s17, 32  ;;  %p6598_p7 = scmp.lt.s32.totalorder %s8029_s2, %s6596_s17 }
 0xa16   : > { %v5661_v42 = vmul.f32 -1.442695, %v6132_v55 }
 0xa17   : > { %6423 = vpow2.f32 %v5660_v49 }
 0xa18   : > { %6425 = vpow2.f32 %v5661_v42 }
 0xa21   : > { %v6424_v27 = vpop.eup %6423 }
 0xa22   : > { %v4594_v47 = vadd.f32 1.0, %v6424_v27  ;;  %v6426_v2 = vpop.eup %6425 }
 0xa23   : > { %v4601_v0 = vadd.f32 1.0, %v6426_v2 }
 0xa24   : > { %6427 = vrcp.f32 %v4594_v47 }
 0xa25   : > { %6429 = vrcp.f32 %v4601_v0 }
 0xa2e   : > { %v6428_v36 = vpop.eup %6427 }
 0xa2f   : > { %v4604_v26 = vmul.f32 %v6428_v36, %v4585_v59  ;;  %v6430_v17 = vpop.eup %6429 }
 0xa30   : > { %v4607_v30 = vsub.f32 1.0, %v6430_v17  ;;  %v4609_v34 = vmul.f32 %v6430_v17, %v4424_v31 }
 0xa31   : > { %v4605_v33 = vadd.f32 %v4604_v26, %v7925_v52 }
 0xa33   : > { %6431 = vtanh.f32 %v4605_v33 }
 0xa3d   : > { %v6432_v56 = vpop.eup %6431 }
 0xa3e   : > { %v4608_v3 = vmul.f32 %v6432_v56, %v4607_v30 }
 0xa40   : > { %v4610_v12 = vadd.f32 %v4609_v34, %v4608_v3 }
 0xa42   : > { %6090 = vmatmul.mubr.f32.vlgmr.msra.gmra.mrb[24].mxu0 %v4610_v12  ;;  %v4686_v6 = vmul.f32 %v4610_v12, %v4610_v12 }
 0xa43   : > { %6118 = vmatpush3.bf16.msra.mxu0 %v6114_v62  ;;  %6096 = vmatprep.mubr.msk.f32.mxu0 %vm6678_vm8, %v6677_v18 }
 0xa44   : > { %v4688_v13 = vsel %vm4687_vm15, %v4686_v6, 0.0  ;;  %6119 = vmatprep.subr.bf16.mxu0 %v6679_v46  ;;  %v5665_v6 = vld [vmem:[%s989_s20] ss:$0 sm:$0xff] }
 0xa45   : > { %4689 = vadd.xlane.f32.xlu0 %v4688_v13 }
 0xad2   : > { %v4690_v21 = vpop.xlane.xlu0 %4689 }
 0xb15   : > { %v4682_v52 = vpop.f32.mrb[24].mxu0 }
 0xb16   : > { %v4691_v4 = vmul.f32 2.0, %v4682_v52  ;;  %v6091_v19 = vpop.f32.mrb[25].mxu0 }
 0xb18   : > { %v4692_v20 = vsub.f32 %v4690_v21, %v4691_v4 }
 0xb1a   : > { %v4700_v14 = vadd.f32 %v5662_v37, %v4692_v20 }
 0xb1c   : > { %v4702_v60 = vsel %vm4701_vm0, %v4700_v14, inf }
 0xb1d   : > { %4703 = vmin.xlane.f32.xlu1 %v4702_v60 }
 0xbaa   : > { %v4704_v8 = vpop.xlane.xlu1 %4703 }
 0xbab   : > { %vm4705_vm1 = vcmp.le.f32.partialorder %v4700_v14, %v4704_v8 }
 0xbac   : > { %v4706_v15 = vsel %vm4705_vm1, %v7957_v35, 16 }
 0xbad   : > { %v4707_v48 = vsel %vm4701_vm0, %v4706_v15, 2147483647 }
 0xbae   : > { %v4709_v53 = vshra.s32 %v4707_v48, 16  ;;  %v4708_v22 = vand.u32 65535, %v4707_v48 }
 0xbb0   : > { %v4711_v51 = vcvt.s32.f32 %v4709_v53  ;;  %v4710_v23 = vcvt.s32.f32 %v4708_v22 }
 0xbb2   : > { %4712 = vmin.xlane.f32.xlu0 %v4711_v51 }
 0xc3f   : > { %v4713_v41 = vpop.xlane.xlu0 %4712 }
 0xc40   : > { %vm4714_vm2 = vcmp.eq.f32.partialorder %v4711_v51, %v4713_v41  ;;  %v4719_v1 = vcvt.f32.s32 %v4713_v41 }
 0xc41   : > { %v4715_v40 = vsel %vm4714_vm2, %v4710_v23, inf }
 0xc42   : > { %4716 = vmin.xlane.f32.xlu0 %v4715_v40  ;;  %v4720_v44 = vshll.u32 %v4719_v1, 16 }
 0xccf   : > { %v4717_v24 = vpop.xlane.xlu0 %4716 }
 0xcd0   : > { %v4718_v58 = vcvt.f32.s32 %v4717_v24 }
 0xcd2   : > { %v4721_v45 = vadd.s32 %v4720_v44, %v4718_v58 }
 0xcd4   : > { %vm4722_vm4 = vcmp.eq.s32.totalorder %v7957_v35, %v4721_v45 }
 0xcd5   : > { %v5663_v5 = vsel %vm4722_vm4, 1.0, %v6677_v18 }
 0xcd6   : > { %6097 = vmatmul.mubr.msk.f32.vlgmr.msra.gmra.mrb[26].mxu0 %vm4725_vm3, %v5663_v5  ;;  %v4815_v55 = vsel %vm4701_vm0, %v5663_v5, 0.0  ;;  %v4843_v52 = vmul.f32 %v5665_v6, %v5663_v5 }
 0xcd7   : > { %6121 = vmatpush3.bf16.xpose.msra.mxu0 %v6120_v43  ;;  %6103 = vmatprep.mubr.msk.f32.mxu0 %vm6678_vm8, %v6677_v18  ;;  %v4816_v42 = vrot.slane %v4815_v55, 4 }
 0xcd8   : > { %6122 = vmatprep.subr.bf16.mxu0 %v6679_v46  ;;  %v4844_v4 = vsel %vm4701_vm0, %v4843_v52, 0.0 }
 0xcd9   : > { %v4817_v27 = vadd.f32 %v4816_v42, %v4815_v55 }
 0xcdb   : > { %v4818_v47 = vrot.slane %v4817_v27, 2 }
 0xcdd   : > { %v4819_v2 = vadd.f32 %v4818_v47, %v4817_v27 }
 0xcdf   : > { %v4820_v0 = vrot.slane %v4819_v2, 1 }
 0xce1   : > { %v4821_v59 = vadd.f32 %v4820_v0, %v4819_v2 }
 0xce3   : > { %v4823_v36 = vmul.f32 0.5, %v4821_v59 }
 0xce5   : > { %v4824_v26 = vadd.f32 1e-10, %v4823_v36 }
 0xce7   : > { %6433 = vlog2.f32 %v4824_v26 }
 0xcf1   : > { %v6434_v33 = vpop.eup %6433 }
 0xcf2   : > { %v4826_v30 = vmul.f32 0.6931472, %v6434_v33 }
 0xda9   : > { %v4795_v32 = vpop.f32.mrb[26].mxu0 }
 0xdaa   : > { %v7975_v7 = vsub.f32 %v4610_v12, %v4795_v32  ;;  %4836 = vst [vmem:[%s7973_s25] sm:$0x3] %v4795_v32  ;;  %v6098_v31 = vpop.f32.mrb[27].mxu0  ;;  %v4827_v12 = vmul.f32 %v4826_v30, %v4823_v36 }
 0xdac   : > { %6104 = vmatmul.mubr.f32.vlgmr.msra.gmra.mrb[28].mxu0 %v7975_v7  ;;  %v4800_v39 = vmul.f32 %v7975_v7, %v7975_v7  ;;  %v4828_v13 = vsel %vm4725_vm3, %v4827_v12, 0.0 }
 0xdad   : > { %6124 = vmatpush3.bf16.msra.mxu0 %v6120_v43  ;;  %6110 = vmatprep.mubr.msk.f32.mxu0 %vm6678_vm8, %v6677_v18  ;;  %vm4848_vm8 = vcmask 1024  }
 0xdae   : > { %v4801_v46 = vsel %vm4687_vm15, %v4800_v39, 0.0 }
 0xdaf   : > { %4802 = vadd.xlane.f32.xlu1 %v4801_v46 }
 0xe3c   : > { %v7984_v61 = vpop.xlane.xlu1 %4802 }
 0xe7f   : > { %v4919_v54 = vpop.f32.mrb[28].mxu0 }
 0xe80   : > { %v4923_v10 = vmul.f32 2.0, %v4919_v54  ;;  %v6105_v62 = vpop.f32.mrb[29].mxu0 }
 0xe82   : > { %v4924_v25 = vsub.f32 %v7984_v61, %v4923_v10  ;;  %v4804_v10 = vsel %vm4687_vm15, %v7984_v61, 0.0 }
 0xe83   : > { %v4805_v62 = vrot.slane %v4804_v10, 4 }
 0xe84   : > { %v4933_v57 = vadd.f32 %v5669_v9, %v4924_v25 }
 0xe85   : > { %v4806_v9 = vadd.f32 %v4805_v62, %v4804_v10 }
 0xe86   : > { %v4934_v38 = vsel %vm4701_vm0, %v4933_v57, inf }
 0xe87   : > { %4935 = vmin.xlane.f32.xlu0 %v4934_v38  ;;  %v4807_v25 = vrot.slane %v4806_v9, 2 }
 0xf14   : > { %v4936_v50 = vpop.xlane.xlu0 %4935 }
 0xf15   : > { %vm4937_vm5 = vcmp.le.f32.partialorder %v4933_v57, %v4936_v50  ;;  %v4808_v57 = vadd.f32 %v4807_v25, %v4806_v9 }
 0xf16   : > { %v4938_v63 = vsel %vm4937_vm5, %v7957_v35, 16 }
 0xf17   : > { %v4939_v49 = vsel %vm4701_vm0, %v4938_v63, 2147483647  ;;  %v4809_v63 = vrot.slane %v4808_v57, 1 }
 0xf18   : > { %v4941_v11 = vshra.s32 %v4939_v49, 16  ;;  %v4940_v17 = vand.u32 65535, %v4939_v49 }
 0xf19   : > { %v4810_v27 = vadd.f32 %v4809_v63, %v4808_v57 }
 0xf1a   : > { %v4943_v16 = vcvt.s32.f32 %v4941_v11  ;;  %v4942_v3 = vcvt.s32.f32 %v4940_v17 }
 0xf1b   : > { %v4811_v2 = vmul.f32 1.2, %v4810_v27 }
 0xf1c   : > { %4944 = vmin.xlane.f32.xlu1 %v4943_v16 }
 0xf1d   : > { %v4813_v36 = vmul.f32 0.00390625, %v4811_v2 }
 0xfa9   : > { %v4945_v56 = vpop.xlane.xlu1 %4944 }
 0xfaa   : > { %vm4946_vm6 = vcmp.eq.f32.partialorder %v4943_v16, %v4945_v56  ;;  %v4951_v19 = vcvt.f32.s32 %v4945_v56 }
 0xfab   : > { %v4947_v34 = vsel %vm4946_vm6, %v4942_v3, inf }
 0xfac   : > { %4948 = vmin.xlane.f32.xlu0 %v4947_v34  ;;  %v4952_v37 = vshll.u32 %v4951_v19, 16 }
 0xfb0   : > { %4829 = vadd.xlane.f32.xlu0 %v4828_v13 }
 0xfb4   : > { %4845 = vadd.xlane.f32.xlu0 %v4844_v4 }
0x1039   : > { %v4949_v21 = vpop.xlane.xlu0 %4948 }
0x103a   : > { %v4950_v20 = vcvt.f32.s32 %v4949_v21 }
0x103c   : > { %v4953_v14 = vadd.s32 %v4952_v37, %v4950_v20 }
0x103d   : > { %v4830_v60 = vpop.xlane.xlu0 %4829 }
0x103e   : > { %vm4954_vm7 = vcmp.eq.s32.totalorder %v7957_v35, %v4953_v14  ;;  %v4831_v8 = vsub.f32 0.0, %v4830_v60 }
0x103f   : > { %v5670_v15 = vsel %vm4954_vm7, 1.0, %v6677_v18 }
0x1040   : > { %v4832_v48 = vmul.f32 1.442695, %v4831_v8  ;;  %6111 = vmatmul.mubr.msk.f32.vlgmr.msra.gmra.mrb[30].mxu0 %vm4725_vm3, %v5670_v15  ;;  %v5045_v18 = vsel %vm4701_vm0, %v5670_v15, 0.0 }
0x1041   : > { %v4846_v53 = vpop.xlane.xlu0 %4845  ;;  %v5046_v35 = vrot.slane %v5045_v18, 4 }
0x1042   : > { %6435 = vpow2.f32 %v4832_v48  ;;  %v6199_v51 = vtrunc.f32 %v4846_v53 }
0x1043   : > { %v5047_v23 = vadd.f32 %v5046_v35, %v5045_v18 }
0x1044   : > { %v6200_v22 = vcvt.f32.s32 %v6199_v51 }
0x1045   : > { %v5048_v40 = vrot.slane %v5047_v23, 2 }
0x1046   : > { %4849 = vst.msk [vmem:[%s1001_s15] sm:$0x3] %vm4848_vm8, %v6200_v22 }
0x1047   : > { %v5049_v1 = vadd.f32 %v5048_v40, %v5047_v23 }
0x1049   : > { %v5050_v24 = vrot.slane %v5049_v1, 1 }
0x104b   : > { %v5051_v44 = vadd.f32 %v5050_v24, %v5049_v1 }
0x104c   : > { %v6436_v41 = vpop.eup %6435 }
0x104d   : > { %4835 = vst.msk [vmem:[%s8006_s14] sm:$0x1] %vm4834_vm9, %v6436_v41  ;;  %v5052_v58 = vmul.f32 0.5, %v5051_v44 }
0x104f   : > { %v5053_v28 = vadd.f32 1e-10, %v5052_v58 }
0x1051   : > { %6437 = vlog2.f32 %v5053_v28 }
0x105b   : > { %v6438_v29 = vpop.eup %6437 }
0x105c   : > { %v5055_v32 = vmul.f32 0.6931472, %v6438_v29 }
0x105e   : > { %v5056_v46 = vmul.f32 %v5055_v32, %v5052_v58 }
0x1060   : > { %v5057_v54 = vsel %vm4725_vm3, %v5056_v46, 0.0 }
0x1113   : > { %v5026_v45 = vpop.f32.mrb[30].mxu0 }
0x1114   : > { %v5030_v43 = vsub.f32 %v7975_v7, %v5026_v45  ;;  %5065 = vst [vmem:[%s7973_s25 + $0x2] sm:$0x3] %v5026_v45  ;;  %v6112_v5 = vpop.f32.mrb[31].mxu0  ;;  %s6591_s25 = scalar_lea.vmem %s8029_s2, 16 }
0x1115   : > { %p6592_p12 = scmp.ne.s32.totalorder %s8029_s2, %s6591_s25  ;;  %p6599_p3 = scmp.lt.s32.totalorder %s6597_s27, %s6591_s25 }
0x1116   : > { %v5031_v31 = vmul.f32 %v5030_v43, %v5030_v43 }
0x1117   : > { %p6593_p13 = pnand %p6592_p12, %p8159_p11  ;;  %p6600_p6 = por %p6599_p3, %p6598_p7 }
0x1118   : > { %v5032_v39 = vsel %vm4687_vm15, %v5031_v31, 0.0 }
0x1119   : > { %5033 = vadd.xlane.f32.xlu1 %v5032_v39  ;;  %p6594_p1 = pneg %p6593_p13 }
0x111b   : > { %p6601_p9 = pnand %p6600_p6, %p6594_p1 }
0x111d   : > { %5058 = vadd.xlane.f32.xlu1 %v5057_v54 }
0x11a6   : > { %v5034_v38 = vpop.xlane.xlu1 %5033 }
0x11a7   : > { %v5035_v7 = vsel %vm4687_vm15, %v5034_v38, 0.0 }
0x11a8   : > { %v5036_v50 = vrot.slane %v5035_v7, 4 }
0x11aa   : > { %v5037_v49 = vadd.f32 %v5036_v50, %v5035_v7  ;;  %v5059_v11 = vpop.xlane.xlu1 %5058 }
0x11ab   : > { %v5060_v16 = vsub.f32 0.0, %v5059_v11 }
0x11ac   : > { %v5038_v55 = vrot.slane %v5037_v49, 2 }
0x11ad   : > { %v5061_v42 = vmul.f32 1.442695, %v5060_v16 }
0x11ae   : > { %v5039_v47 = vadd.f32 %v5038_v55, %v5037_v49 }
0x11af   : > { %6439 = vpow2.f32 %v5061_v42 }
0x11b0   : > { %v5040_v61 = vrot.slane %v5039_v47, 1 }
0x11b2   : > { %v5041_v0 = vadd.f32 %v5040_v61, %v5039_v47 }
0x11b4   : > { %v5042_v59 = vmul.f32 1.2, %v5041_v0 }
0x11b6   : > { %v5043_v26 = vmul.f32 0.00390625, %v5042_v59 }
0x11b8   : > { %v5044_v33 = vadd.f32 %v5043_v26, %v4813_v36 }
0x11b9   : > { %v6440_v17 = vpop.eup %6439 }
0x11ba   : > { %5064 = vst.msk [vmem:[%s8006_s14] sm:$0x1] %vm5063_vm10, %v6440_v17 }
0x11bb   : > { %5066 = vst.msk [vmem:[%s997_s7] sm:$0x1] %vm4834_vm9, %v5044_v33 }
0x11bc   : > { %6604 = shalt.err (!%p6601_p9)
}
0x11bd   : > { %s6605_s26 = scalar_lea.hbm %s8027_s29, 16  ;;  %s6609_s11 = scalar_lea.hbm %s8158_s16, 48 }
0x11be   : > { %p6606_p4 = scmp.ne.s32.totalorder %s8027_s29, %s6605_s26  ;;  %p6610_p0 = scmp.lt.u32.totalorder %s8027_s29, %s8158_s16 }
0x11bf   : > { %p6611_p2 = scmp.lt.u32.totalorder %s6609_s11, %s6605_s26  ;;  %p6613_p12 = scmp.lt.u32.totalorder %s6605_s26, %s8027_s29 }
0x11c0   : > { %p6607_p5 = pnand %p6606_p4, %p8159_p11 }
0x11c1   : > { %p6612_p10 = por %p6611_p2, %p6610_p0 }
0x11c2   : > { %p6608_p8 = pneg %p6607_p5 }
0x11c3   : > { %p6614_p13 = por %p6613_p12, %p6612_p10 }
0x11c5   : > { %p6615_p1 = pnand %p6614_p13, %p6608_p8 }
0x11c7   : > { %6618 = shalt.err (!%p6615_p1)
}
0x11c8   : > { %6211 = dma.vmem_to_hbm [thread:$0]  (%p8159_p11), %s8029_s2, 16, %s8027_s29, %s5080_s1  }
0x11c9 PF: > { %s8160_s15 = sld [smem:[#allocation18_spill]]  ;;  %s8161_s14 = sld [smem:[#allocation23_spill]] }
0x11ca   : > { %p6234_p7 = scmp.ge.s32.totalorder %s6665_s21, 2 }
0x11cf   : > { %s5134_s19 = sand.u32 1, %s8160_s15   ;;  %p8162_p3 = scmp.ne.s32.totalorder %s8161_s14, 0 }
0x11d0   : > { %s5135_s12 = scalar_lea.sflag [#allocation6], %s5134_s19 }
0x11d1   : > { %p6230_p6 = pnand %p6234_p7, %p8162_p3 }
0x11d3   : > { %6648 = dma.done.wait (!%p6230_p6), %s5135_s12, 16  }
0x11d4   : > { %6650 = vsyncadd (!%p6230_p6), %s5135_s12, 4294967280  ;;  %s8163_s21 = sld [smem:[#allocation20_spill]]  ;;  %s8164_s18 = sld [smem:[#allocation19_spill]] }
0x11d5   : > { %s8165_s20 = sld [smem:[#allocation21_spill]]  ;;  %s8166_s0 = smov %s6657_s30 }
0x11da   : > { %p39_p9 = scmp.ge.s32.totalorder %s8163_s21, 5   ;;  %s8167_s30 = smov %s8164_s18 }
0x11dc   :  { %41 = sbr.rel (!%p39_p9) target bundleno = 25 (0x19), region = 302 }
0x11e3   :  { %5139 = vsyncpa [#allocation5], 1 }
0x11e4   :  { %5141 = vsyncpa [#allocation5 + $0x1], 1 }
0x11e5   :  { %5142 = vsyncpa [#allocation8], 1 }
0x11e6   :  { %5144 = vsyncpa [#allocation8 + $0x1], 1 }
0x11e7   :  { %5145 = vsyncpa [#allocation11], 1 }
0x11e8   :  { %5147 = vsyncpa [#allocation11 + $0x1], 1 }
0x11e9   :  { %5148 = vsyncpa [#allocation6], 1 }
0x11ea   :  { %5150 = vsyncpa [#allocation6 + $0x1], 1 }

</bundles_post_ra>
